<compile_context>
chip_gen: v5e
topology: v5e:2x2
jax: 0.10.0
libtpu: 0.0.40
codegen_flags: <defaults>
</compile_context>

<pallas_src>
import jax
import jax.numpy as jnp
import numpy as np
from jax import lax
from jax.experimental import pallas as pl
from jax.experimental.pallas import tpu as pltpu

EXPANSION = 4
BN_EPS = 1e-5
LANE = 128


def _round_up(x, m):
    return ((x + m - 1) // m) * m


def _pick_tile_h(h, w, target_rows=128):
    """Largest row-tile height th that divides h, keeps th*w a multiple of 8,
    and keeps th*w <= target_rows (falls back to the smallest legal tile)."""
    cands = [d for d in range(1, h + 1) if h % d == 0 and (d * w) % 8 == 0]
    assert cands, "no legal row tile: need a divisor th of H with (th*W) % 8 == 0"
    small = [d for d in cands if d * w <= target_rows]
    return max(small) if small else min(cands)


# ----------------------------------------------------------------------------
# Kernel: one (image b, row-tile t) block of TH*W pixels per grid step.
# ----------------------------------------------------------------------------
def make_kernel(w, th, pln_p, has_sc):
    tile_rows = th * w
    ms = _round_up(w + 1, 16)        # main-region start row inside the a2 scratch

    def kernel(xm_ref, xu_ref, xd_ref,
               s1_ref, t1_ref, w1_ref,
               s2_ref, t2_ref, w2_ref,
               s3_ref, t3_ref, w3_ref, *rest):
        if has_sc:
            wsc_ref, out_ref, a2p_ref = rest
        else:
            out_ref, a2p_ref = rest

        t = pl.program_id(1)
        n_t = pl.num_programs(1)

        s1 = s1_ref[...]; t1 = t1_ref[...]
        s2 = s2_ref[...]; t2 = t2_ref[...]

        def a2_of(x):  # relu(bn2(conv1(relu(bn1(x))))) -> bf16
            pre = jnp.maximum(x * s1 + t1, 0.0).astype(jnp.bfloat16)
            y1 = jnp.dot(pre, w1_ref[...], preferred_element_type=jnp.float32)
            return jnp.maximum(y1 * s2 + t2, 0.0).astype(jnp.bfloat16)

        # ---- main rows: bn1+relu kept in f32 (residual / shortcut input) ----
        pre_mid = jnp.maximum(xm_ref[...] * s1 + t1, 0.0)
        pre_mid_bf = pre_mid.astype(jnp.bfloat16)
        y1_mid = jnp.dot(pre_mid_bf, w1_ref[...], preferred_element_type=jnp.float32)
        a2p_ref[ms:ms + tile_rows, :] = jnp.maximum(
            y1_mid * s2 + t2, 0.0).astype(jnp.bfloat16)

        # ---- halo rows: recompute one image row above / below the tile, ----
        # ---- or zero at the image boundary (conv2 zero-pads its input). ----
        zero_row = jnp.zeros((w, pln_p), jnp.bfloat16)

        @pl.when(t > 0)
        def _():
            a2p_ref[ms - w:ms, :] = a2_of(xu_ref[...])

        @pl.when(t == 0)
        def _():
            a2p_ref[ms - w:ms, :] = zero_row

        @pl.when(t < n_t - 1)
        def _():
            a2p_ref[ms + tile_rows:ms + tile_rows + w, :] = a2_of(xd_ref[...])

        @pl.when(t == n_t - 1)
        def _():
            a2p_ref[ms + tile_rows:ms + tile_rows + w, :] = zero_row

        # ---- conv2 (3x3, pad=1): 9 row-shifted bf16 taps, MXU-accumulated ----
        col = lax.broadcasted_iota(jnp.int32, (tile_rows, 1), 0) % w
        ok_left = col != 0            # needed by dw == -1 taps
        ok_right = col != (w - 1)     # needed by dw == +1 taps

        y2 = jnp.zeros((tile_rows, pln_p), jnp.float32)
        for kh in range(3):
            for kw in range(3):
                tap_i = 3 * kh + kw
                off = (kh - 1) * w + (kw - 1)
                tap = a2p_ref[ms + off:ms + off + tile_rows, :]   # bf16, static slice
                if kw == 0:
                    tap = jnp.where(ok_left, tap, 0.0)
                elif kw == 2:
                    tap = jnp.where(ok_right, tap, 0.0)
                y2 = y2 + jnp.dot(tap,
                                  w2_ref[tap_i * pln_p:(tap_i + 1) * pln_p, :],
                                  preferred_element_type=jnp.float32)

        # ---- bn3 + relu + conv3 (+ shortcut); out_ref written exactly once ----
        a3 = jnp.maximum(y2 * s3_ref[...] + t3_ref[...], 0.0).astype(jnp.bfloat16)
        y3 = jnp.dot(a3, w3_ref[...], preferred_element_type=jnp.float32)
        if has_sc:
            out_ref[...] = y3 + jnp.dot(pre_mid_bf, wsc_ref[...],
                                        preferred_element_type=jnp.float32)
        else:
            # this module's identity path adds relu(bn1(x)), not raw x
            out_ref[...] = y3 + pre_mid

    return kernel


# ----------------------------------------------------------------------------
# Wrappers
# ----------------------------------------------------------------------------
def _pad_cols(a, target):
    d = target - a.shape[-1]
    return a if d == 0 else jnp.pad(a, [(0, 0)] * (a.ndim - 1) + [(0, d)])


def _pad_mat(m, rows, cols):
    return jnp.zeros((rows, cols), m.dtype).at[:m.shape[0], :m.shape[1]].set(m)


def preact_bottleneck_rows(x2d, n, h, w, params, stride=1, tile_h=None):
    """Fused block on the padded channels-last layout.

    x2d: (n*h*w, cin_p) f32 with channels zero-padded to a multiple of 128.
    Returns (n*h*w, cout_p) f32 in the same layout (chainable between blocks
    without NCHW<->NHWC transposes / pad / slice round trips).
    """
    assert stride == 1  # TODO(synk): stride > 1 not implemented
    cin = params["s1"].shape[-1]
    planes = params["w1"].shape[1]
    cout = EXPANSION * planes
    has_sc = bool(params["has_sc"])

    cin_p = _round_up(cin, LANE)
    pln_p = _round_up(planes, LANE)
    cout_p = _round_up(cout, LANE)
    assert x2d.shape == (n * h * w, cin_p)
    assert w % 8 == 0, "TODO(synk): pad W to a multiple of 8 for 7x7/14x14 maps"
    if not has_sc:
        assert cin == cout and cin_p == cout_p

    th = tile_h if tile_h is not None else _pick_tile_h(h, w)
    assert h % th == 0 and (th * w) % 8 == 0
    n_t = h // th
    tile_rows = th * w
    ms = _round_up(w + 1, 16)
    a2p_rows = _round_up(ms + tile_rows + w + 1, 16)

    # folded-BN vectors + bf16 MXU weights, channel-padded (padding is exact:
    # padded scale/shift entries and weight rows/cols are zero).
    s1 = _pad_cols(params["s1"], cin_p); t1 = _pad_cols(params["t1"], cin_p)
    s2 = _pad_cols(params["s2"], pln_p); t2 = _pad_cols(params["t2"], pln_p)
    s3 = _pad_cols(params["s3"], pln_p); t3 = _pad_cols(params["t3"], pln_p)
    w1 = _pad_mat(params["w1"], cin_p, pln_p).astype(jnp.bfloat16)
    w2p = jnp.zeros((3, 3, pln_p, pln_p), jnp.float32)
    w2p = w2p.at[:, :, :planes, :planes].set(params["w2_hwio"])
    w2 = w2p.reshape(9 * pln_p, pln_p).astype(jnp.bfloat16)     # tap-major rows
    w3 = _pad_mat(params["w3"], pln_p, cout_p).astype(jnp.bfloat16)

    def tile_spec(c):
        return pl.BlockSpec((tile_rows, c), lambda b, t: (b * n_t + t, 0))

    def const_spec(shape):
        # TODO(synk): pipeline_mode=pl.Buffered(1) would single-buffer these
        # VMEM-resident constants once verified on the target JAX version.
        return pl.BlockSpec(shape, lambda b, t: (0,) * len(shape))

    # clamped halo fetches: one W-pixel image row above / below the tile
    # (fetched data is ignored in-kernel at the image boundary).
    halo_up = pl.BlockSpec(
        (w, cin_p), lambda b, t: (b * h + jnp.maximum(t * th - 1, 0), 0))
    halo_dn = pl.BlockSpec(
        (w, cin_p), lambda b, t: (b * h + jnp.minimum((t + 1) * th, h - 1), 0))

    args = [x2d, x2d, x2d, s1, t1, w1, s2, t2, w2, s3, t3, w3]
    in_specs = [tile_spec(cin_p), halo_up, halo_dn,
                const_spec((1, cin_p)), const_spec((1, cin_p)),
                const_spec((cin_p, pln_p)),
                const_spec((1, pln_p)), const_spec((1, pln_p)),
                const_spec((9 * pln_p, pln_p)),
                const_spec((1, pln_p)), const_spec((1, pln_p)),
                const_spec((pln_p, cout_p))]
    if has_sc:
        wsc = _pad_mat(params["wsc"], cin_p, cout_p).astype(jnp.bfloat16)
        args.append(wsc)
        in_specs.append(const_spec((cin_p, cout_p)))

    return pl.pallas_call(
        make_kernel(w, th, pln_p, has_sc),
        out_shape=jax.ShapeDtypeStruct((n * h * w, cout_p), jnp.float32),
        grid_spec=pltpu.PrefetchScalarGridSpec(
            num_scalar_prefetch=0,
            grid=(n, n_t),
            in_specs=in_specs,
            out_specs=tile_spec(cout_p),
            scratch_shapes=[pltpu.VMEM((a2p_rows, pln_p), jnp.bfloat16)]),
        compiler_params=pltpu.CompilerParams(
            dimension_semantics=("parallel", "parallel"),
            vmem_limit_bytes=48 * 1024 * 1024),
    )(*args)


def preact_bottleneck_pallas(x_nchw, params, stride=1, tile_h=None):
    """NCHW adapter around the channels-last kernel (matches the PyTorch module)."""
    n, cin, h, w = x_nchw.shape
    planes = params["w1"].shape[1]
    cout = EXPANSION * planes
    cin_p = _round_up(cin, LANE)
    x2d = _pad_cols(jnp.transpose(x_nchw, (0, 2, 3, 1)).reshape(n * h * w, cin), cin_p)
    out2d = preact_bottleneck_rows(x2d, n, h, w, params, stride=stride, tile_h=tile_h)
    out = out2d[:, :cout].reshape(n, h, w, cout)
    return jnp.transpose(out, (0, 3, 1, 2))


# ----------------------------------------------------------------------------
# Deterministic parameter construction (mirrors the PyTorch module's shapes)
# ----------------------------------------------------------------------------
def fold_bn(gamma, beta, mean, var):
    scale = gamma / jnp.sqrt(var + BN_EPS)
    shift = beta - mean * scale
    return scale.reshape(1, -1), shift.reshape(1, -1)


def make_params(key, in_planes, planes, stride=1):
    cout = EXPANSION * planes
    ks = jax.random.split(key, 16)

    def bn(kg, kb, km, kv, c):
        gamma = 1.0 + 0.1 * jax.random.normal(kg, (c,), jnp.float32)
        beta = 0.1 * jax.random.normal(kb, (c,), jnp.float32)
        mean = 0.1 * jax.random.normal(km, (c,), jnp.float32)
        var = jax.random.uniform(kv, (c,), jnp.float32, 0.5, 1.5)
        return fold_bn(gamma, beta, mean, var)

    s1, t1 = bn(ks[0], ks[1], ks[2], ks[3], in_planes)
    s2, t2 = bn(ks[4], ks[5], ks[6], ks[7], planes)
    s3, t3 = bn(ks[8], ks[9], ks[10], ks[11], planes)

    w1 = 0.2 * jax.random.normal(ks[12], (in_planes, planes), jnp.float32)          # 1x1
    w2_hwio = 0.2 * jax.random.normal(ks[13], (3, 3, planes, planes), jnp.float32)  # 3x3
    w3 = 0.2 * jax.random.normal(ks[14], (planes, cout), jnp.float32)               # 1x1

    has_sc = (stride != 1) or (in_planes != cout)
    wsc = (0.2 * jax.random.normal(ks[15], (in_planes, cout), jnp.float32)
           if has_sc else None)

    return dict(s1=s1, t1=t1, s2=s2, t2=t2, s3=s3, t3=t3,
                w1=w1, w2_hwio=w2_hwio, w3=w3, wsc=wsc, has_sc=has_sc)


# ----------------------------------------------------------------------------
# Pure-JAX f32 reference (matches the given module's forward, BN folded)
# ----------------------------------------------------------------------------
def preact_bottleneck_ref(x_nchw, p):
    x = jnp.transpose(x_nchw, (0, 2, 3, 1))  # NHWC
    pre = jax.nn.relu(x * p["s1"] + p["t1"])
    shortcut = (jnp.einsum("nhwc,co->nhwo", pre, p["wsc"])
                if p["has_sc"] else pre)      # identity path adds relu(bn1(x))
    y1 = jnp.einsum("nhwc,co->nhwo", pre, p["w1"])
    a2 = jax.nn.relu(y1 * p["s2"] + p["t2"])
    y2 = lax.conv_general_dilated(a2, p["w2_hwio"], (1, 1), "SAME",
                                  dimension_numbers=("NHWC", "HWIO", "NHWC"))
    a3 = jax.nn.relu(y2 * p["s3"] + p["t3"])
    y3 = jnp.einsum("nhwc,co->nhwo", a3, p["w3"])
    return jnp.transpose(y3 + shortcut, (0, 3, 1, 2))


# ----------------------------------------------------------------------------
if __name__ == "__main__":
    key = jax.random.PRNGKey(0)
    k_x1, k_x2, k_p1, k_p2 = jax.random.split(key, 4)

    N, H, W = 2, 16, 16

    # Case 1: projection shortcut (in_planes != expansion * planes).
    in_planes1, planes1 = 4, 4
    x1 = jax.random.normal(k_x1, (N, in_planes1, H, W), jnp.float32)  # NCHW
    p1 = make_params(k_p1, in_planes1, planes1)
    out1 = jax.block_until_ready(preact_bottleneck_pallas(x1, p1))
    ref1 = preact_bottleneck_ref(x1, p1)
    # bf16 MXU operands with f32 accumulation -> loose-ish tolerance vs f32 ref
    np.testing.assert_allclose(np.asarray(out1), np.asarray(ref1),
                               rtol=3e-2, atol=3e-2)
    assert out1.shape == (N, EXPANSION * planes1, H, W)

    # Case 2: identity shortcut (in_planes == expansion * planes).
    in_planes2, planes2 = 16, 4
    x2 = jax.random.normal(k_x2, (N, in_planes2, H, W), jnp.float32)
    p2 = make_params(k_p2, in_planes2, planes2)
    out2 = jax.block_until_ready(preact_bottleneck_pallas(x2, p2))
    ref2 = preact_bottleneck_ref(x2, p2)
    np.testing.assert_allclose(np.asarray(out2), np.asarray(ref2),
                               rtol=3e-2, atol=3e-2)
    assert out2.shape == (N, EXPANSION * planes2, H, W)

    print("KERNEL_OK")
</pallas_src>

<mosaic_0001>
module attributes {stable_mosaic.version = 11 : i64} {
  func.func @kernel(%arg0: i32, %arg1: i32, %arg2: memref<128x128xf32, #tpu.memory_space<vmem>>, %arg3: memref<16x128xf32, #tpu.memory_space<vmem>>, %arg4: memref<16x128xf32, #tpu.memory_space<vmem>>, %arg5: memref<1x128xf32, #tpu.memory_space<vmem>>, %arg6: memref<1x128xf32, #tpu.memory_space<vmem>>, %arg7: memref<128x128xbf16, #tpu.memory_space<vmem>>, %arg8: memref<1x128xf32, #tpu.memory_space<vmem>>, %arg9: memref<1x128xf32, #tpu.memory_space<vmem>>, %arg10: memref<1152x128xbf16, #tpu.memory_space<vmem>>, %arg11: memref<1x128xf32, #tpu.memory_space<vmem>>, %arg12: memref<1x128xf32, #tpu.memory_space<vmem>>, %arg13: memref<128x128xbf16, #tpu.memory_space<vmem>>, %arg14: memref<128x128xbf16, #tpu.memory_space<vmem>>, %arg15: memref<128x128xf32, #tpu.memory_space<vmem>>, %arg16: memref<192x128xbf16, #tpu.memory_space<vmem>>) attributes {dimension_semantics = [#tpu.dimension_semantics<parallel>, #tpu.dimension_semantics<parallel>], iteration_bounds = array<i64: 2, 2>, scalar_prefetch = 0 : i64, scratch_operands = 1 : i64, tpu.core_type = #tpu.core_type<tc>, window_params = [{transform_indices = @transform_0, window_bounds = array<i64: 128, 128>}, {transform_indices = @transform_1, window_bounds = array<i64: 16, 128>}, {transform_indices = @transform_2, window_bounds = array<i64: 16, 128>}, {pipeline_mode = #tpu.pipeline_mode<synchronous>, transform_indices = @transform_3, window_bounds = array<i64: 1, 128>}, {pipeline_mode = #tpu.pipeline_mode<synchronous>, transform_indices = @transform_4, window_bounds = array<i64: 1, 128>}, {pipeline_mode = #tpu.pipeline_mode<synchronous>, transform_indices = @transform_5, window_bounds = array<i64: 128, 128>}, {pipeline_mode = #tpu.pipeline_mode<synchronous>, transform_indices = @transform_6, window_bounds = array<i64: 1, 128>}, {pipeline_mode = #tpu.pipeline_mode<synchronous>, transform_indices = @transform_7, window_bounds = array<i64: 1, 128>}, {pipeline_mode = #tpu.pipeline_mode<synchronous>, transform_indices = @transform_8, window_bounds = array<i64: 1152, 128>}, {pipeline_mode = #tpu.pipeline_mode<synchronous>, transform_indices = @transform_9, window_bounds = array<i64: 1, 128>}, {pipeline_mode = #tpu.pipeline_mode<synchronous>, transform_indices = @transform_10, window_bounds = array<i64: 1, 128>}, {pipeline_mode = #tpu.pipeline_mode<synchronous>, transform_indices = @transform_11, window_bounds = array<i64: 128, 128>}, {pipeline_mode = #tpu.pipeline_mode<synchronous>, transform_indices = @transform_12, window_bounds = array<i64: 128, 128>}, {transform_indices = @transform_13, window_bounds = array<i64: 128, 128>}]} {
    %c0 = arith.constant 0 : index
    %c0_0 = arith.constant 0 : index
    %0 = vector.load %arg5[%c0, %c0_0] : memref<1x128xf32, #tpu.memory_space<vmem>>, vector<1x128xf32>
    %c0_1 = arith.constant 0 : index
    %c0_2 = arith.constant 0 : index
    %1 = vector.load %arg6[%c0_1, %c0_2] : memref<1x128xf32, #tpu.memory_space<vmem>>, vector<1x128xf32>
    %c0_3 = arith.constant 0 : index
    %c0_4 = arith.constant 0 : index
    %2 = vector.load %arg8[%c0_3, %c0_4] : memref<1x128xf32, #tpu.memory_space<vmem>>, vector<1x128xf32>
    %c0_5 = arith.constant 0 : index
    %c0_6 = arith.constant 0 : index
    %3 = vector.load %arg9[%c0_5, %c0_6] : memref<1x128xf32, #tpu.memory_space<vmem>>, vector<1x128xf32>
    %c0_7 = arith.constant 0 : index
    %c0_8 = arith.constant 0 : index
    %4 = vector.load %arg2[%c0_7, %c0_8] : memref<128x128xf32, #tpu.memory_space<vmem>>, vector<128x128xf32>
    %5 = vector.broadcast %0 : vector<1x128xf32> to vector<128x128xf32>
    %6 = arith.mulf %4, %5 : vector<128x128xf32>
    %7 = vector.broadcast %1 : vector<1x128xf32> to vector<128x128xf32>
    %8 = arith.addf %6, %7 : vector<128x128xf32>
    %cst = arith.constant 0.000000e+00 : f32
    %9 = vector.broadcast %cst : f32 to vector<128x128xf32>
    %10 = arith.maximumf %8, %9 : vector<128x128xf32>
    %11 = arith.truncf %10 : vector<128x128xf32> to vector<128x128xbf16>
    %c0_9 = arith.constant 0 : index
    %c0_10 = arith.constant 0 : index
    %12 = vector.load %arg7[%c0_9, %c0_10] : memref<128x128xbf16, #tpu.memory_space<vmem>>, vector<128x128xbf16>
    %cst_11 = arith.constant dense<0.000000e+00> : vector<128x128xf32>
    %13 = tpu.matmul %11, %12, %cst_11 {dimension_numbers = #tpu.dot_dimension_numbers<[1], [0], [0], [1], [0, 0, 1, 1], [], []>} : vector<128x128xbf16>, vector<128x128xbf16>, vector<128x128xf32> -> vector<128x128xf32>
    %14 = vector.broadcast %2 : vector<1x128xf32> to vector<128x128xf32>
    %15 = arith.mulf %13, %14 : vector<128x128xf32>
    %16 = vector.broadcast %3 : vector<1x128xf32> to vector<128x128xf32>
    %17 = arith.addf %15, %16 : vector<128x128xf32>
    %cst_12 = arith.constant 0.000000e+00 : f32
    %18 = vector.broadcast %cst_12 : f32 to vector<128x128xf32>
    %19 = arith.maximumf %17, %18 : vector<128x128xf32>
    %20 = arith.truncf %19 : vector<128x128xf32> to vector<128x128xbf16>
    %c32 = arith.constant 32 : index
    %c0_13 = arith.constant 0 : index
    %21 = vector.load %arg16[%c32, %c0_13] : memref<192x128xbf16, #tpu.memory_space<vmem>>, vector<128x128xbf16>
    tpu.vector_store %arg16[%c32, %c0_13], %20 {strides = array<i32>} : memref<192x128xbf16, #tpu.memory_space<vmem>>, vector<128x128xbf16>,
    %cst_14 = arith.constant 0.000000e+00 : bf16
    %22 = vector.broadcast %cst_14 : bf16 to vector<16x128xbf16>
    %c0_i32 = arith.constant 0 : i32
    %23 = arith.cmpi sgt, %arg1, %c0_i32 : i32
    %24 = arith.extui %23 : i1 to i32
    %c0_i32_15 = arith.constant 0 : i32
    %25 = arith.cmpi ne, %24, %c0_i32_15 : i32
    scf.if %25 {
      %c0_76 = arith.constant 0 : index
      %c0_77 = arith.constant 0 : index
      %138 = vector.load %arg3[%c0_76, %c0_77] : memref<16x128xf32, #tpu.memory_space<vmem>>, vector<16x128xf32>
      %139 = vector.broadcast %0 : vector<1x128xf32> to vector<16x128xf32>
      %140 = arith.mulf %138, %139 : vector<16x128xf32>
      %141 = vector.broadcast %1 : vector<1x128xf32> to vector<16x128xf32>
      %142 = arith.addf %140, %141 : vector<16x128xf32>
      %cst_78 = arith.constant 0.000000e+00 : f32
      %143 = vector.broadcast %cst_78 : f32 to vector<16x128xf32>
      %144 = arith.maximumf %142, %143 : vector<16x128xf32>
      %145 = arith.truncf %144 : vector<16x128xf32> to vector<16x128xbf16>
      %c0_79 = arith.constant 0 : index
      %c0_80 = arith.constant 0 : index
      %146 = vector.load %arg7[%c0_79, %c0_80] : memref<128x128xbf16, #tpu.memory_space<vmem>>, vector<128x128xbf16>
      %cst_81 = arith.constant dense<0.000000e+00> : vector<16x128xf32>
      %147 = tpu.matmul %145, %146, %cst_81 {dimension_numbers = #tpu.dot_dimension_numbers<[1], [0], [0], [1], [0, 0, 1, 1], [], []>} : vector<16x128xbf16>, vector<128x128xbf16>, vector<16x128xf32> -> vector<16x128xf32>
      %148 = vector.broadcast %2 : vector<1x128xf32> to vector<16x128xf32>
      %149 = arith.mulf %147, %148 : vector<16x128xf32>
      %150 = vector.broadcast %3 : vector<1x128xf32> to vector<16x128xf32>
      %151 = arith.addf %149, %150 : vector<16x128xf32>
      %cst_82 = arith.constant 0.000000e+00 : f32
      %152 = vector.broadcast %cst_82 : f32 to vector<16x128xf32>
      %153 = arith.maximumf %151, %152 : vector<16x128xf32>
      %154 = arith.truncf %153 : vector<16x128xf32> to vector<16x128xbf16>
      %c16_83 = arith.constant 16 : index
      %c0_84 = arith.constant 0 : index
      %155 = vector.load %arg16[%c16_83, %c0_84] : memref<192x128xbf16, #tpu.memory_space<vmem>>, vector<16x128xbf16>
      tpu.vector_store %arg16[%c16_83, %c0_84], %154 {strides = array<i32>} : memref<192x128xbf16, #tpu.memory_space<vmem>>, vector<16x128xbf16>,
    } else {
    }
    %c0_i32_16 = arith.constant 0 : i32
    %26 = arith.cmpi eq, %arg1, %c0_i32_16 : i32
    %27 = arith.extui %26 : i1 to i32
    %c0_i32_17 = arith.constant 0 : i32
    %28 = arith.cmpi ne, %27, %c0_i32_17 : i32
    scf.if %28 {
      %c16_76 = arith.constant 16 : index
      %c0_77 = arith.constant 0 : index
      %138 = vector.load %arg16[%c16_76, %c0_77] : memref<192x128xbf16, #tpu.memory_space<vmem>>, vector<16x128xbf16>
      tpu.vector_store %arg16[%c16_76, %c0_77], %22 {strides = array<i32>} : memref<192x128xbf16, #tpu.memory_space<vmem>>, vector<16x128xbf16>,
    } else {
    }
    %c1_i32 = arith.constant 1 : i32
    %29 = arith.cmpi slt, %arg1, %c1_i32 : i32
    %30 = arith.extui %29 : i1 to i32
    %c0_i32_18 = arith.constant 0 : i32
    %31 = arith.cmpi ne, %30, %c0_i32_18 : i32
    scf.if %31 {
      %c0_76 = arith.constant 0 : index
      %c0_77 = arith.constant 0 : index
      %138 = vector.load %arg4[%c0_76, %c0_77] : memref<16x128xf32, #tpu.memory_space<vmem>>, vector<16x128xf32>
      %139 = vector.broadcast %0 : vector<1x128xf32> to vector<16x128xf32>
      %140 = arith.mulf %138, %139 : vector<16x128xf32>
      %141 = vector.broadcast %1 : vector<1x128xf32> to vector<16x128xf32>
      %142 = arith.addf %140, %141 : vector<16x128xf32>
      %cst_78 = arith.constant 0.000000e+00 : f32
      %143 = vector.broadcast %cst_78 : f32 to vector<16x128xf32>
      %144 = arith.maximumf %142, %143 : vector<16x128xf32>
      %145 = arith.truncf %144 : vector<16x128xf32> to vector<16x128xbf16>
      %c0_79 = arith.constant 0 : index
      %c0_80 = arith.constant 0 : index
      %146 = vector.load %arg7[%c0_79, %c0_80] : memref<128x128xbf16, #tpu.memory_space<vmem>>, vector<128x128xbf16>
      %cst_81 = arith.constant dense<0.000000e+00> : vector<16x128xf32>
      %147 = tpu.matmul %145, %146, %cst_81 {dimension_numbers = #tpu.dot_dimension_numbers<[1], [0], [0], [1], [0, 0, 1, 1], [], []>} : vector<16x128xbf16>, vector<128x128xbf16>, vector<16x128xf32> -> vector<16x128xf32>
      %148 = vector.broadcast %2 : vector<1x128xf32> to vector<16x128xf32>
      %149 = arith.mulf %147, %148 : vector<16x128xf32>
      %150 = vector.broadcast %3 : vector<1x128xf32> to vector<16x128xf32>
      %151 = arith.addf %149, %150 : vector<16x128xf32>
      %cst_82 = arith.constant 0.000000e+00 : f32
      %152 = vector.broadcast %cst_82 : f32 to vector<16x128xf32>
      %153 = arith.maximumf %151, %152 : vector<16x128xf32>
      %154 = arith.truncf %153 : vector<16x128xf32> to vector<16x128xbf16>
      %c160 = arith.constant 160 : index
      %c0_83 = arith.constant 0 : index
      %155 = vector.load %arg16[%c160, %c0_83] : memref<192x128xbf16, #tpu.memory_space<vmem>>, vector<16x128xbf16>
      tpu.vector_store %arg16[%c160, %c0_83], %154 {strides = array<i32>} : memref<192x128xbf16, #tpu.memory_space<vmem>>, vector<16x128xbf16>,
    } else {
    }
    %c1_i32_19 = arith.constant 1 : i32
    %32 = arith.cmpi eq, %arg1, %c1_i32_19 : i32
    %33 = arith.extui %32 : i1 to i32
    %c0_i32_20 = arith.constant 0 : i32
    %34 = arith.cmpi ne, %33, %c0_i32_20 : i32
    scf.if %34 {
      %c160 = arith.constant 160 : index
      %c0_76 = arith.constant 0 : index
      %138 = vector.load %arg16[%c160, %c0_76] : memref<192x128xbf16, #tpu.memory_space<vmem>>, vector<16x128xbf16>
      tpu.vector_store %arg16[%c160, %c0_76], %22 {strides = array<i32>} : memref<192x128xbf16, #tpu.memory_space<vmem>>, vector<16x128xbf16>,
    } else {
    }
    %35 = tpu.iota {dimensions = array<i32: 0>} : vector<128x1xi32>
    %c16_i32 = arith.constant 16 : i32
    %c0_i32_21 = arith.constant 0 : i32
    %36 = arith.cmpi eq, %c16_i32, %c0_i32_21 : i32
    %c1_i32_22 = arith.constant 1 : i32
    %37 = arith.select %36, %c1_i32_22, %c16_i32 : i32
    %38 = vector.broadcast %37 : i32 to vector<128x1xi32>
    %39 = arith.remsi %35, %38 : vector<128x1xi32>
    %c0_i32_23 = arith.constant 0 : i32
    %40 = vector.broadcast %c0_i32_23 : i32 to vector<128x1xi32>
    %41 = arith.cmpi ne, %39, %40 : vector<128x1xi32>
    %c0_i32_24 = arith.constant 0 : i32
    %42 = vector.broadcast %c0_i32_24 : i32 to vector<128x1xi32>
    %43 = arith.cmpi slt, %39, %42 : vector<128x1xi32>
    %c0_i32_25 = arith.constant 0 : i32
    %44 = arith.cmpi slt, %37, %c0_i32_25 : i32
    %45 = vector.broadcast %44 : i1 to vector<128x1xi1>
    %46 = vector.broadcast %45 : vector<128x1xi1> to vector<128x1xi1>
    %47 = arith.xori %43, %46 : vector<128x1xi1>
    %48 = arith.andi %47, %41 : vector<128x1xi1>
    %49 = vector.broadcast %37 : i32 to vector<128x1xi32>
    %50 = arith.addi %39, %49 : vector<128x1xi32>
    %51 = arith.select %48, %50, %39 : vector<128x1xi1>, vector<128x1xi32>
    %c0_i32_26 = arith.constant 0 : i32
    %52 = vector.broadcast %c0_i32_26 : i32 to vector<128x1xi32>
    %53 = arith.cmpi ne, %51, %52 : vector<128x1xi32>
    %c15_i32 = arith.constant 15 : i32
    %54 = vector.broadcast %c15_i32 : i32 to vector<128x1xi32>
    %55 = arith.cmpi ne, %51, %54 : vector<128x1xi32>
    %cst_27 = arith.constant 0.000000e+00 : f32
    %56 = vector.broadcast %cst_27 : f32 to vector<128x128xf32>
    %c15 = arith.constant 15 : index
    %c0_28 = arith.constant 0 : index
    %57 = vector.load %arg16[%c15, %c0_28] : memref<192x128xbf16, #tpu.memory_space<vmem>>, vector<128x128xbf16>
    %cst_29 = arith.constant 0.000000e+00 : f32
    %58 = arith.truncf %cst_29 : f32 to bf16
    %59 = vector.shape_cast %53 : vector<128x1xi1> to vector<128x1xi1>
    %60 = vector.broadcast %59 : vector<128x1xi1> to vector<128x128xi1>
    %61 = vector.broadcast %58 : bf16 to vector<128x128xbf16>
    %62 = arith.select %60, %57, %61 : vector<128x128xi1>, vector<128x128xbf16>
    %c0_30 = arith.constant 0 : index
    %c0_31 = arith.constant 0 : index
    %63 = vector.load %arg10[%c0_30, %c0_31] : memref<1152x128xbf16, #tpu.memory_space<vmem>>, vector<128x128xbf16>
    %cst_32 = arith.constant dense<0.000000e+00> : vector<128x128xf32>
    %64 = tpu.matmul %62, %63, %cst_32 {dimension_numbers = #tpu.dot_dimension_numbers<[1], [0], [0], [1], [0, 0, 1, 1], [], []>} : vector<128x128xbf16>, vector<128x128xbf16>, vector<128x128xf32> -> vector<128x128xf32>
    %65 = arith.addf %56, %64 : vector<128x128xf32>
    %c16 = arith.constant 16 : index
    %c0_33 = arith.constant 0 : index
    %66 = vector.load %arg16[%c16, %c0_33] : memref<192x128xbf16, #tpu.memory_space<vmem>>, vector<128x128xbf16>
    %c128 = arith.constant 128 : index
    %c0_34 = arith.constant 0 : index
    %67 = vector.load %arg10[%c128, %c0_34] : memref<1152x128xbf16, #tpu.memory_space<vmem>>, vector<128x128xbf16>
    %cst_35 = arith.constant dense<0.000000e+00> : vector<128x128xf32>
    %68 = tpu.matmul %66, %67, %cst_35 {dimension_numbers = #tpu.dot_dimension_numbers<[1], [0], [0], [1], [0, 0, 1, 1], [], []>} : vector<128x128xbf16>, vector<128x128xbf16>, vector<128x128xf32> -> vector<128x128xf32>
    %69 = arith.addf %65, %68 : vector<128x128xf32>
    %c17 = arith.constant 17 : index
    %c0_36 = arith.constant 0 : index
    %70 = vector.load %arg16[%c17, %c0_36] : memref<192x128xbf16, #tpu.memory_space<vmem>>, vector<128x128xbf16>
    %cst_37 = arith.constant 0.000000e+00 : f32
    %71 = arith.truncf %cst_37 : f32 to bf16
    %72 = vector.shape_cast %55 : vector<128x1xi1> to vector<128x1xi1>
    %73 = vector.broadcast %72 : vector<128x1xi1> to vector<128x128xi1>
    %74 = vector.broadcast %71 : bf16 to vector<128x128xbf16>
    %75 = arith.select %73, %70, %74 : vector<128x128xi1>, vector<128x128xbf16>
    %c256 = arith.constant 256 : index
    %c0_38 = arith.constant 0 : index
    %76 = vector.load %arg10[%c256, %c0_38] : memref<1152x128xbf16, #tpu.memory_space<vmem>>, vector<128x128xbf16>
    %cst_39 = arith.constant dense<0.000000e+00> : vector<128x128xf32>
    %77 = tpu.matmul %75, %76, %cst_39 {dimension_numbers = #tpu.dot_dimension_numbers<[1], [0], [0], [1], [0, 0, 1, 1], [], []>} : vector<128x128xbf16>, vector<128x128xbf16>, vector<128x128xf32> -> vector<128x128xf32>
    %78 = arith.addf %69, %77 : vector<128x128xf32>
    %c31 = arith.constant 31 : index
    %c0_40 = arith.constant 0 : index
    %79 = vector.load %arg16[%c31, %c0_40] : memref<192x128xbf16, #tpu.memory_space<vmem>>, vector<128x128xbf16>
    %cst_41 = arith.constant 0.000000e+00 : f32
    %80 = arith.truncf %cst_41 : f32 to bf16
    %81 = vector.shape_cast %53 : vector<128x1xi1> to vector<128x1xi1>
    %82 = vector.broadcast %81 : vector<128x1xi1> to vector<128x128xi1>
    %83 = vector.broadcast %80 : bf16 to vector<128x128xbf16>
    %84 = arith.select %82, %79, %83 : vector<128x128xi1>, vector<128x128xbf16>
    %c384 = arith.constant 384 : index
    %c0_42 = arith.constant 0 : index
    %85 = vector.load %arg10[%c384, %c0_42] : memref<1152x128xbf16, #tpu.memory_space<vmem>>, vector<128x128xbf16>
    %cst_43 = arith.constant dense<0.000000e+00> : vector<128x128xf32>
    %86 = tpu.matmul %84, %85, %cst_43 {dimension_numbers = #tpu.dot_dimension_numbers<[1], [0], [0], [1], [0, 0, 1, 1], [], []>} : vector<128x128xbf16>, vector<128x128xbf16>, vector<128x128xf32> -> vector<128x128xf32>
    %87 = arith.addf %78, %86 : vector<128x128xf32>
    %c32_44 = arith.constant 32 : index
    %c0_45 = arith.constant 0 : index
    %88 = vector.load %arg16[%c32_44, %c0_45] : memref<192x128xbf16, #tpu.memory_space<vmem>>, vector<128x128xbf16>
    %c512 = arith.constant 512 : index
    %c0_46 = arith.constant 0 : index
    %89 = vector.load %arg10[%c512, %c0_46] : memref<1152x128xbf16, #tpu.memory_space<vmem>>, vector<128x128xbf16>
    %cst_47 = arith.constant dense<0.000000e+00> : vector<128x128xf32>
    %90 = tpu.matmul %88, %89, %cst_47 {dimension_numbers = #tpu.dot_dimension_numbers<[1], [0], [0], [1], [0, 0, 1, 1], [], []>} : vector<128x128xbf16>, vector<128x128xbf16>, vector<128x128xf32> -> vector<128x128xf32>
    %91 = arith.addf %87, %90 : vector<128x128xf32>
    %c33 = arith.constant 33 : index
    %c0_48 = arith.constant 0 : index
    %92 = vector.load %arg16[%c33, %c0_48] : memref<192x128xbf16, #tpu.memory_space<vmem>>, vector<128x128xbf16>
    %cst_49 = arith.constant 0.000000e+00 : f32
    %93 = arith.truncf %cst_49 : f32 to bf16
    %94 = vector.shape_cast %55 : vector<128x1xi1> to vector<128x1xi1>
    %95 = vector.broadcast %94 : vector<128x1xi1> to vector<128x128xi1>
    %96 = vector.broadcast %93 : bf16 to vector<128x128xbf16>
    %97 = arith.select %95, %92, %96 : vector<128x128xi1>, vector<128x128xbf16>
    %c640 = arith.constant 640 : index
    %c0_50 = arith.constant 0 : index
    %98 = vector.load %arg10[%c640, %c0_50] : memref<1152x128xbf16, #tpu.memory_space<vmem>>, vector<128x128xbf16>
    %cst_51 = arith.constant dense<0.000000e+00> : vector<128x128xf32>
    %99 = tpu.matmul %97, %98, %cst_51 {dimension_numbers = #tpu.dot_dimension_numbers<[1], [0], [0], [1], [0, 0, 1, 1], [], []>} : vector<128x128xbf16>, vector<128x128xbf16>, vector<128x128xf32> -> vector<128x128xf32>
    %100 = arith.addf %91, %99 : vector<128x128xf32>
    %c47 = arith.constant 47 : index
    %c0_52 = arith.constant 0 : index
    %101 = vector.load %arg16[%c47, %c0_52] : memref<192x128xbf16, #tpu.memory_space<vmem>>, vector<128x128xbf16>
    %cst_53 = arith.constant 0.000000e+00 : f32
    %102 = arith.truncf %cst_53 : f32 to bf16
    %103 = vector.shape_cast %53 : vector<128x1xi1> to vector<128x1xi1>
    %104 = vector.broadcast %103 : vector<128x1xi1> to vector<128x128xi1>
    %105 = vector.broadcast %102 : bf16 to vector<128x128xbf16>
    %106 = arith.select %104, %101, %105 : vector<128x128xi1>, vector<128x128xbf16>
    %c768 = arith.constant 768 : index
    %c0_54 = arith.constant 0 : index
    %107 = vector.load %arg10[%c768, %c0_54] : memref<1152x128xbf16, #tpu.memory_space<vmem>>, vector<128x128xbf16>
    %cst_55 = arith.constant dense<0.000000e+00> : vector<128x128xf32>
    %108 = tpu.matmul %106, %107, %cst_55 {dimension_numbers = #tpu.dot_dimension_numbers<[1], [0], [0], [1], [0, 0, 1, 1], [], []>} : vector<128x128xbf16>, vector<128x128xbf16>, vector<128x128xf32> -> vector<128x128xf32>
    %109 = arith.addf %100, %108 : vector<128x128xf32>
    %c48 = arith.constant 48 : index
    %c0_56 = arith.constant 0 : index
    %110 = vector.load %arg16[%c48, %c0_56] : memref<192x128xbf16, #tpu.memory_space<vmem>>, vector<128x128xbf16>
    %c896 = arith.constant 896 : index
    %c0_57 = arith.constant 0 : index
    %111 = vector.load %arg10[%c896, %c0_57] : memref<1152x128xbf16, #tpu.memory_space<vmem>>, vector<128x128xbf16>
    %cst_58 = arith.constant dense<0.000000e+00> : vector<128x128xf32>
    %112 = tpu.matmul %110, %111, %cst_58 {dimension_numbers = #tpu.dot_dimension_numbers<[1], [0], [0], [1], [0, 0, 1, 1], [], []>} : vector<128x128xbf16>, vector<128x128xbf16>, vector<128x128xf32> -> vector<128x128xf32>
    %113 = arith.addf %109, %112 : vector<128x128xf32>
    %c49 = arith.constant 49 : index
    %c0_59 = arith.constant 0 : index
    %114 = vector.load %arg16[%c49, %c0_59] : memref<192x128xbf16, #tpu.memory_space<vmem>>, vector<128x128xbf16>
    %cst_60 = arith.constant 0.000000e+00 : f32
    %115 = arith.truncf %cst_60 : f32 to bf16
    %116 = vector.shape_cast %55 : vector<128x1xi1> to vector<128x1xi1>
    %117 = vector.broadcast %116 : vector<128x1xi1> to vector<128x128xi1>
    %118 = vector.broadcast %115 : bf16 to vector<128x128xbf16>
    %119 = arith.select %117, %114, %118 : vector<128x128xi1>, vector<128x128xbf16>
    %c1024 = arith.constant 1024 : index
    %c0_61 = arith.constant 0 : index
    %120 = vector.load %arg10[%c1024, %c0_61] : memref<1152x128xbf16, #tpu.memory_space<vmem>>, vector<128x128xbf16>
    %cst_62 = arith.constant dense<0.000000e+00> : vector<128x128xf32>
    %121 = tpu.matmul %119, %120, %cst_62 {dimension_numbers = #tpu.dot_dimension_numbers<[1], [0], [0], [1], [0, 0, 1, 1], [], []>} : vector<128x128xbf16>, vector<128x128xbf16>, vector<128x128xf32> -> vector<128x128xf32>
    %122 = arith.addf %113, %121 : vector<128x128xf32>
    %c0_63 = arith.constant 0 : index
    %c0_64 = arith.constant 0 : index
    %123 = vector.load %arg11[%c0_63, %c0_64] : memref<1x128xf32, #tpu.memory_space<vmem>>, vector<1x128xf32>
    %124 = vector.broadcast %123 : vector<1x128xf32> to vector<128x128xf32>
    %125 = arith.mulf %122, %124 : vector<128x128xf32>
    %c0_65 = arith.constant 0 : index
    %c0_66 = arith.constant 0 : index
    %126 = vector.load %arg12[%c0_65, %c0_66] : memref<1x128xf32, #tpu.memory_space<vmem>>, vector<1x128xf32>
    %127 = vector.broadcast %126 : vector<1x128xf32> to vector<128x128xf32>
    %128 = arith.addf %125, %127 : vector<128x128xf32>
    %cst_67 = arith.constant 0.000000e+00 : f32
    %129 = vector.broadcast %cst_67 : f32 to vector<128x128xf32>
    %130 = arith.maximumf %128, %129 : vector<128x128xf32>
    %131 = arith.truncf %130 : vector<128x128xf32> to vector<128x128xbf16>
    %c0_68 = arith.constant 0 : index
    %c0_69 = arith.constant 0 : index
    %132 = vector.load %arg13[%c0_68, %c0_69] : memref<128x128xbf16, #tpu.memory_space<vmem>>, vector<128x128xbf16>
    %cst_70 = arith.constant dense<0.000000e+00> : vector<128x128xf32>
    %133 = tpu.matmul %131, %132, %cst_70 {dimension_numbers = #tpu.dot_dimension_numbers<[1], [0], [0], [1], [0, 0, 1, 1], [], []>} : vector<128x128xbf16>, vector<128x128xbf16>, vector<128x128xf32> -> vector<128x128xf32>
    %c0_71 = arith.constant 0 : index
    %c0_72 = arith.constant 0 : index
    %134 = vector.load %arg14[%c0_71, %c0_72] : memref<128x128xbf16, #tpu.memory_space<vmem>>, vector<128x128xbf16>
    %cst_73 = arith.constant dense<0.000000e+00> : vector<128x128xf32>
    %135 = tpu.matmul %11, %134, %cst_73 {dimension_numbers = #tpu.dot_dimension_numbers<[1], [0], [0], [1], [0, 0, 1, 1], [], []>} : vector<128x128xbf16>, vector<128x128xbf16>, vector<128x128xf32> -> vector<128x128xf32>
    %136 = arith.addf %133, %135 : vector<128x128xf32>
    %c0_74 = arith.constant 0 : index
    %c0_75 = arith.constant 0 : index
    %137 = vector.load %arg15[%c0_74, %c0_75] : memref<128x128xf32, #tpu.memory_space<vmem>>, vector<128x128xf32>
    tpu.vector_store %arg15[%c0_74, %c0_75], %136 {strides = array<i32>} : memref<128x128xf32, #tpu.memory_space<vmem>>, vector<128x128xf32>,
    return
  }
  func.func @transform_0(%arg0: i32, %arg1: i32) -> (i32, i32) {
    %c2_i32 = arith.constant 2 : i32
    %0 = arith.muli %arg0, %c2_i32 : i32
    %1 = arith.addi %0, %arg1 : i32
    %c0_i32 = arith.constant 0 : i32
    %c0_i32_0 = arith.constant 0 : i32
    return %1, %c0_i32 : i32, i32
  }
  func.func @transform_1(%arg0: i32, %arg1: i32) -> (i32, i32) {
    %c16_i32 = arith.constant 16 : i32
    %0 = arith.muli %arg0, %c16_i32 : i32
    %c8_i32 = arith.constant 8 : i32
    %1 = arith.muli %arg1, %c8_i32 : i32
    %c1_i32 = arith.constant 1 : i32
    %2 = arith.subi %1, %c1_i32 : i32
    %c0_i32 = arith.constant 0 : i32
    %3 = arith.maxsi %2, %c0_i32 : i32
    %4 = arith.addi %0, %3 : i32
    %c0_i32_0 = arith.constant 0 : i32
    %c0_i32_1 = arith.constant 0 : i32
    return %4, %c0_i32_0 : i32, i32
  }
  func.func @transform_2(%arg0: i32, %arg1: i32) -> (i32, i32) {
    %c16_i32 = arith.constant 16 : i32
    %0 = arith.muli %arg0, %c16_i32 : i32
    %c1_i32 = arith.constant 1 : i32
    %1 = arith.addi %arg1, %c1_i32 : i32
    %c8_i32 = arith.constant 8 : i32
    %2 = arith.muli %1, %c8_i32 : i32
    %c15_i32 = arith.constant 15 : i32
    %3 = arith.minsi %2, %c15_i32 : i32
    %4 = arith.addi %0, %3 : i32
    %c0_i32 = arith.constant 0 : i32
    %c0_i32_0 = arith.constant 0 : i32
    return %4, %c0_i32 : i32, i32
  }
  func.func @transform_3(%arg0: i32, %arg1: i32) -> (i32, i32) {
    %c0_i32 = arith.constant 0 : i32
    %c0_i32_0 = arith.constant 0 : i32
    %c0_i32_1 = arith.constant 0 : i32
    return %c0_i32, %c0_i32_0 : i32, i32
  }
  func.func @transform_4(%arg0: i32, %arg1: i32) -> (i32, i32) {
    %c0_i32 = arith.constant 0 : i32
    %c0_i32_0 = arith.constant 0 : i32
    %c0_i32_1 = arith.constant 0 : i32
    return %c0_i32, %c0_i32_0 : i32, i32
  }
  func.func @transform_5(%arg0: i32, %arg1: i32) -> (i32, i32) {
    %c0_i32 = arith.constant 0 : i32
    %c0_i32_0 = arith.constant 0 : i32
    %c0_i32_1 = arith.constant 0 : i32
    return %c0_i32, %c0_i32_0 : i32, i32
  }
  func.func @transform_6(%arg0: i32, %arg1: i32) -> (i32, i32) {
    %c0_i32 = arith.constant 0 : i32
    %c0_i32_0 = arith.constant 0 : i32
    %c0_i32_1 = arith.constant 0 : i32
    return %c0_i32, %c0_i32_0 : i32, i32
  }
  func.func @transform_7(%arg0: i32, %arg1: i32) -> (i32, i32) {
    %c0_i32 = arith.constant 0 : i32
    %c0_i32_0 = arith.constant 0 : i32
    %c0_i32_1 = arith.constant 0 : i32
    return %c0_i32, %c0_i32_0 : i32, i32
  }
  func.func @transform_8(%arg0: i32, %arg1: i32) -> (i32, i32) {
    %c0_i32 = arith.constant 0 : i32
    %c0_i32_0 = arith.constant 0 : i32
    %c0_i32_1 = arith.constant 0 : i32
    return %c0_i32, %c0_i32_0 : i32, i32
  }
  func.func @transform_9(%arg0: i32, %arg1: i32) -> (i32, i32) {
    %c0_i32 = arith.constant 0 : i32
    %c0_i32_0 = arith.constant 0 : i32
    %c0_i32_1 = arith.constant 0 : i32
    return %c0_i32, %c0_i32_0 : i32, i32
  }
  func.func @transform_10(%arg0: i32, %arg1: i32) -> (i32, i32) {
    %c0_i32 = arith.constant 0 : i32
    %c0_i32_0 = arith.constant 0 : i32
    %c0_i32_1 = arith.constant 0 : i32
    return %c0_i32, %c0_i32_0 : i32, i32
  }
  func.func @transform_11(%arg0: i32, %arg1: i32) -> (i32, i32) {
    %c0_i32 = arith.constant 0 : i32
    %c0_i32_0 = arith.constant 0 : i32
    %c0_i32_1 = arith.constant 0 : i32
    return %c0_i32, %c0_i32_0 : i32, i32
  }
  func.func @transform_12(%arg0: i32, %arg1: i32) -> (i32, i32) {
    %c0_i32 = arith.constant 0 : i32
    %c0_i32_0 = arith.constant 0 : i32
    %c0_i32_1 = arith.constant 0 : i32
    return %c0_i32, %c0_i32_0 : i32, i32
  }
  func.func @transform_13(%arg0: i32, %arg1: i32) -> (i32, i32) {
    %c2_i32 = arith.constant 2 : i32
    %0 = arith.muli %arg0, %c2_i32 : i32
    %1 = arith.addi %0, %arg1 : i32
    %c0_i32 = arith.constant 0 : i32
    %c0_i32_0 = arith.constant 0 : i32
    return %1, %c0_i32 : i32, i32
  }
}

</mosaic_0001>

<bundles_post_ra>
// kernel: tpu_custom_call.1
= control target key start
LH: loop header
LB: loop body
LE: loop exit
PB: predicated region body
PF: predicated region fallthrough
CT: control target
= control target key end

     0   :  { %s8042_s0 = inlined_call_operand.hbm [shape: f32[512,128], index: 0, kind: input, shape index: {}]   ;;  %s8043_s1 = inlined_call_operand.hbm [shape: f32[512,128], index: 1, kind: input, shape index: {}]   ;;  %s8044_s2 = inlined_call_operand.hbm [shape: f32[512,128], index: 2, kind: input, shape index: {}]   ;;  %s8045_s3 = inlined_call_operand.vmem [shape: f32[1,128], index: 3, kind: input, shape index: {}]   ;;  %s8046_s4 = inlined_call_operand.vmem [shape: f32[1,128], index: 4, kind: input, shape index: {}]   ;;  %s8047_s5 = inlined_call_operand.hbm [shape: bf16[128,128], index: 5, kind: input, shape index: {}]   ;;  %s8048_s6 = inlined_call_operand.vmem [shape: f32[1,128], index: 6, kind: input, shape index: {}]   ;;  %s8049_s7 = inlined_call_operand.vmem [shape: f32[1,128], index: 7, kind: input, shape index: {}]   ;;  %s8050_s8 = inlined_call_operand.hbm [shape: bf16[1152,128], index: 8, kind: input, shape index: {}]   ;;  %s8051_s9 = inlined_call_operand.vmem [shape: f32[1,128], index: 9, kind: input, shape index: {}]   ;;  %s8052_s10 = inlined_call_operand.vmem [shape: f32[1,128], index: 10, kind: input, shape index: {}]   ;;  %s8053_s11 = inlined_call_operand.hbm [shape: bf16[128,128], index: 11, kind: input, shape index: {}]   ;;  %s8054_s12 = inlined_call_operand.hbm [shape: bf16[128,128], index: 12, kind: input, shape index: {}]   ;;  %s8055_s13 = inlined_call_operand.hbm [shape: f32[512,128], index: 13, kind: output, shape index: {}]  }
   0x1   :  { %8136 = sst [smem:[#allocation47_spill]] %s8042_s0 }
   0x2   :  { %8137 = sst [smem:[#allocation48_spill]] %s8043_s1 }
   0x3   :  { %8138 = sst [smem:[#allocation49_spill]] %s8044_s2 }
   0x4   :  { %8139 = sst [smem:[#allocation50_spill]] %s8045_s3 }
   0x5   :  { %8140 = sst [smem:[#allocation51_spill]] %s8046_s4 }
   0x6   :  { %8141 = sst [smem:[#allocation52_spill]] %s8047_s5 }
   0x7   :  { %8142 = sst [smem:[#allocation53_spill]] %s8048_s6 }
   0x8   :  { %8143 = sst [smem:[#allocation54_spill]] %s8049_s7 }
   0x9   :  { %8144 = sst [smem:[#allocation55_spill]] %s8050_s8 }
   0xa   :  { %8145 = sst [smem:[#allocation56_spill]] %s8051_s9 }
   0xb   :  { %8146 = sst [smem:[#allocation57_spill]] %s8052_s10 }
   0xc   :  { %8147 = sst [smem:[#allocation58_spill]] %s8053_s11 }
   0xd   :  { %8148 = sst [smem:[#allocation59_spill]] %s8054_s12 }
   0xe   :  { %8149 = sst [smem:[#allocation60_spill]] %s8055_s13 }
   0xf   :  { %18 = vsyncpa [#allocation4], 0 }
  0x10   :  { %20 = vsyncpa [#allocation4 + $0x1], 0 }
  0x11   :  { %21 = vsyncpa [#allocation7], 0 }
  0x12   :  { %23 = vsyncpa [#allocation7 + $0x1], 0 }
  0x13   :  { %24 = vsyncpa [#allocation10], 0 }
  0x14   :  { %25 = vsyncpa [#allocation13], 0 }
  0x15   :  { %26 = vsyncpa [#allocation5], 0 }
  0x16   :  { %28 = vsyncpa [#allocation5 + $0x1], 0  ;;  %s6330_s25 = smov 0   ;;  %s6332_s26 = smov 0  }
  0x17   :  { %s6334_s27 = smov 0   ;;  %s6336_s28 = smov 0  }
  0x18   :  { %s6338_s29 = smov 0   ;;  %s6340_s30 = smov 0  }
  0x19   :  { %s6342_s14 = smov 0   ;;  %s6344_s15 = smov 0  }
  0x1a   :  { %s6346_s16 = smov 0   ;;  %s6348_s17 = smov 0  }
  0x1b   :  { %s6350_s18 = smov 0   ;;  %s6352_s19 = smov 0  }
  0x1c   :  { %s6354_s20 = smov 0   ;;  %s6356_s21 = smov 0  }
  0x1d LB: > { %8150 = sst [smem:[#allocation22_spill]] %s6192_s25  ;;  %s6401_s22 = sadd.s32 4294967295, %s6244_s21   ;;  %s6244_s21 = sphi %s6356_s21, %s34_s21   ;;  %s6240_s20 = sphi %s6354_s20, %s8419_s20   ;;  %s6236_s19 = sphi %s6352_s19, %s8418_s19   ;;  %s6232_s18 = sphi %s6350_s18, %s8408_s18   ;;  %s6228_s17 = sphi %s6348_s17, %s8417_s17   ;;  %s6224_s16 = sphi %s6346_s16, %s8416_s16   ;;  %s6220_s15 = sphi %s6344_s15, %s8415_s15   ;;  %s6216_s14 = sphi %s6342_s14, %s8414_s14   ;;  %s6212_s30 = sphi %s6340_s30, %s8413_s30   ;;  %s6208_s29 = sphi %s6338_s29, %s8412_s29   ;;  %s6204_s28 = sphi %s6336_s28, %s8406_s28   ;;  %s6200_s27 = sphi %s6334_s27, %s8411_s27   ;;  %s6196_s26 = sphi %s6332_s26, %s8405_s26   ;;  %s6192_s25 = sphi %s6330_s25, %s8404_s25  }
  0x1e   : > { %8151 = sst [smem:[#allocation23_spill]] %s6196_s26  ;;  %p4841_p0 = scmp.ge.s32.totalorder %s6244_s21, 1 }
  0x1f   : > { %8152 = sst [smem:[#allocation24_spill]] %s6200_s27  ;;  %p71_p1 = scmp.eq.s32.totalorder %s6401_s22, 0 }
  0x20   : > { %8153 = sst [smem:[#allocation25_spill]] %s6208_s29  ;;  %p397_p2 = scmp.lt.s32.totalorder %s6244_s21, 5 }
  0x21   : > { %8154 = sst [smem:[#allocation26_spill]] %s6216_s14  ;;  %s6246_s10 = smov [#allocation9]  }
  0x22   : > { %8155 = sst [smem:[#allocation27_spill]] %s6228_s17  ;;  %p6409_p3 = pnand %p4841_p0, %p397_p2 }
  0x23   : > { %8156 = sst [smem:[#allocation28_spill]] %s6232_s18  ;;  %s416_s9 = sshll.u32 %s6246_s10, 4  ;;  %s417_s9 = int_to_ptr.vmem [resolvable:$true] %s416_s9 }
  0x24   : > { %8157 = sst [smem:[#allocation29_spill]] %s6240_s20  ;;  %p5703_p4 = pneg %p6409_p3 }
  0x25   : > { %8158 = sst [smem:[#allocation30_spill]] %s6401_s22  ;;  %s8057_s7 = smov 64  }
  0x26   : > { %s8159_s5 = sld [smem:[#allocation52_spill]]  ;;  %p6417_p5 = pnand %p5703_p4, %p71_p1 }
  0x27   : > { %s8160_s18 = scalar_select %p6409_p3, 1, 0 }
  0x28   : > { %s8163_s11 = sld [smem:[#allocation58_spill]]  ;;  %s8059_s6 = smov 4  }
  0x29   : > { %8161 = sst [smem:[#allocation31_spill]] %s8160_s18  ;;  %s6249_s10 = smov [#allocation12]  }
  0x2a   : > { %s456_s4 = sshll.u32 %s6249_s10, 4  ;;  %s46_s24 = sadd.s32 1, %s6240_s20  ;;  %s457_s4 = int_to_ptr.vmem [resolvable:$true] %s456_s4 }
  0x2b   : > { %p65_p7 = scmp.eq.s32.totalorder %s6244_s21, 0  ;;  %s4830_s3 = sshll.u32 %s6236_s19, 3 }
  0x2c   : > { %s414_s13 = sshll.u32 %s8159_s5, 4  ;;  %s43_s5 = sadd.s32 1, %s6236_s19  ;;  %s415_s13 = int_to_ptr.hbm [resolvable:$true] %s414_s13 }
  0x2d   : > { %5706 = dma.hbm_to_vmem [thread:$0]  (!%p6417_p5), %s415_s13, 1024, %s417_s9, [#allocation10], %s8057_s7, %s8057_s7, %s8059_s6  }
  0x2e   : > { %s454_s17 = sshll.u32 %s8163_s11, 4  ;;  %p44_p6 = scmp.ge.s32.totalorder %s43_s5, 2  ;;  %s455_s17 = int_to_ptr.hbm [resolvable:$true] %s454_s17 }
  0x2f   : > { %5712 = dma.hbm_to_vmem [thread:$0]  (!%p6417_p5), %s455_s17, 1024, %s457_s4, [#allocation13], %s8057_s7, %s8057_s7, %s8059_s6  }
  0x30   : > { %s8062_s11 = sshll.u32 %s6240_s20, 4  ;;  %s8421_s5 = smov (%p44_p6, %s43_s5), 0 }
  0x31   : > { %8164 = sst [smem:[#allocation32_spill]] %s8421_s5  ;;  %s8423_s24 = smov (!%p44_p6, %s46_s24), %s6240_s20 }
  0x32   : > { %s4831_s9 = sadd.s32 4294967295, %s4830_s3  ;;  %s4833_s13 = sshll.u32 %s8421_s5, 3 }
  0x33   : > { %p48_p8 = scmp.ge.s32.totalorder %s8423_s24, 2  ;;  %p83_p9 = scmp.gt.s32.totalorder %s4831_s9, 0 }
  0x34   : > { %s4834_s4 = sadd.s32 4294967295, %s4833_s13  ;;  %s95_s17 = sadd.s32 1, %s6212_s30 }
  0x35   : > { %s8425_s24 = smov (%p48_p8, %s8423_s24), 0  ;;  %s8427_s9 = smov (!%p83_p9, %s4831_s9), 0 }
  0x36   : > { %8165 = sst [smem:[#allocation33_spill]] %s8425_s24  ;;  %s4832_s10 = sshll.u32 %s8425_s24, 4 }
  0x37   : > { %p89_p10 = scmp.gt.s32.totalorder %s4834_s4, 0  ;;  %s85_s7 = sadd.s32 %s8062_s11, %s8427_s9 }
  0x38   : > { %p102_p11 = scmp.ne.s32.totalorder %s6212_s30, %s6208_s29  ;;  %p108_p13 = scmp.ne.s32.totalorder %s6208_s29, %s6204_s28 }
  0x39   : > { %s8429_s4 = smov (!%p89_p10, %s4834_s4), 0  ;;  %s5426_s2 = sadd.s32 8, %s4830_s3 }
  0x3a   : > { %p6453_p12 = por %p102_p11, %p65_p7  ;;  %s91_s18 = sadd.s32 %s4832_s10, %s8429_s4 }
  0x3b   : > { %s92_s0 = ssub.s32 %s85_s7, %s91_s18  ;;  %p6461_p0 = por %p108_p13, %p71_p1 }
  0x3c   : > { %p93_p2 = scmp.eq.s32.totalorder %s92_s0, 0  ;;  %p121_p4 = scmp.lt.s32.totalorder %s5426_s2, 15 }
  0x3d   : > { %s8167_s25 = scalar_select %p6461_p0, 1, 0 }
  0x3e   : > { %s5428_s9 = sadd.s32 8, %s4833_s13  ;;  %p5734_p6 = scmp.lt.s32.totalorder %s6244_s21, 4 }
  0x3f   : > { %8168 = sst [smem:[#allocation34_spill]] %s8167_s25  ;;  %s8431_s2 = smov (!%p121_p4, %s5426_s2), 15 }
  0x40   : > { %s6467_s11 = scalar_select %p93_p2, %s6212_s30, %s95_s17  }
  0x41   : > { %p127_p8 = scmp.lt.s32.totalorder %s5428_s9, 15  ;;  %s8170_s26 = sshll.u32 %s6240_s20, 4 }
  0x42   : > { %8169 = sst [smem:[#allocation35_spill]] %s6467_s11  ;;  %s6471_s28 = sadd.s32 %s8170_s26, %s8431_s2 }
  0x43   : > { %s8433_s9 = smov (!%p127_p8, %s5428_s9), 15  ;;  %s508_s3 = sand.u32 1, %s6244_s21  }
  0x44   : > { %s510_s18 = sand.u32 1, %s6212_s30   ;;  %s129_s4 = sadd.s32 %s4832_s10, %s8433_s9 }
  0x45   : > { %s130_s29 = ssub.s32 %s6471_s28, %s129_s4  ;;  %s4851_s25 = sshll.u32 %s510_s18, 4 }
  0x46   : > { %p6476_p9 = scmp.eq.s32.totalorder %s130_s29, 0  ;;  %s5430_s13 = sshll.u32 %s85_s7, 4 }
  0x47   : > { %s512_s17 = scalar_lea.vmem [#allocation6], %s4851_s25  ;;  %s8172_s1 = sld [smem:[#allocation48_spill]] }
  0x48   : > { %s526_s11 = sshll.u32 %s512_s17, 4  ;;  %p5720_p10 = pnand %p5734_p6, %p6453_p12  ;;  %s527_s11 = int_to_ptr.vmem [resolvable:$true] %s526_s11 }
  0x49   : > { %s8173_s8 = sld [smem:[#allocation55_spill]]  ;;  %s6490_s7 = scalar_lea.sflag [#allocation7], %s508_s3 }
  0x4a   : > { %s8071_s25 = smov 128   ;;  %s8073_s27 = smov 8  }
  0x4b   : > { %s8174_s12 = sld [smem:[#allocation59_spill]]  ;;  %s6252_s9 = smov [#allocation11]  }
  0x4c   : > { %s436_s3 = sshll.u32 %s6252_s9, 4  ;;  %s8175_s18 = sld [smem:[#allocation26_spill]]  ;;  %s437_s3 = int_to_ptr.vmem [resolvable:$true] %s436_s3 }
  0x4d   : > { %s523_s14 = scalar_lea.hbm %s8172_s1, %s5430_s13  ;;  %s8176_s4 = smov 4  }
  0x4e   : > { %s524_s2 = sshll.u32 %s523_s14, 4  ;;  %s8177_s13 = smov 64   ;;  %s525_s2 = int_to_ptr.hbm [resolvable:$true] %s524_s2 }
  0x4f   : > { %s434_s29 = sshll.u32 %s8173_s8, 4  ;;  %s6253_s17 = smov [#allocation14]   ;;  %s435_s29 = int_to_ptr.hbm [resolvable:$true] %s434_s29 }
  0x50   : > { %5722 = dma.hbm_to_vmem [thread:$0]  (!%p5720_p10), %s525_s2, 256, %s527_s11, %s6490_s7, %s8071_s25, %s8071_s25, %s8073_s27  }
  0x51   : > { %s468_s22 = sshll.u32 %s8174_s12, 4  ;;  %s8178_s11 = sld [smem:[#allocation30_spill]]  ;;  %s469_s22 = int_to_ptr.hbm [resolvable:$true] %s468_s22 }
  0x52   : > { %5709 = dma.hbm_to_vmem [thread:$0]  (!%p6417_p5), %s435_s29, 9216, %s437_s3, [#allocation10], %s8177_s13, %s8177_s13, %s8176_s4  }
  0x53   : > { %s470_s2 = sshll.u32 %s6253_s17, 4  ;;  %s4826_s26 = sadd.s32 4294967294, %s6244_s21   ;;  %s471_s2 = int_to_ptr.vmem [resolvable:$true] %s470_s2 }
  0x54   : > { %5715 = dma.hbm_to_vmem [thread:$0]  (!%p6417_p5), %s469_s22, 1024, %s471_s2, [#allocation13], %s8177_s13, %s8177_s13, %s8176_s4  }
  0x55   : > { %s4827_s10 = sshll.u32 %s6240_s20, 1  ;;  %s4828_s14 = sshll.u32 %s8425_s24, 1 }
  0x56   : > { %s51_s6 = sadd.s32 %s6236_s19, %s4827_s10  ;;  %s53_s9 = sadd.s32 %s4828_s14, %s8421_s5 }
  0x57   : > { %s57_s25 = sadd.s32 1, %s6224_s16  ;;  %s54_s27 = ssub.s32 %s51_s6, %s53_s9 }
  0x58   : > { %p64_p11 = scmp.ne.s32.totalorder %s6224_s16, %s6220_s15  ;;  %p55_p12 = scmp.eq.s32.totalorder %s54_s27, 0 }
  0x59   : > { %p70_p13 = scmp.ne.s32.totalorder %s6220_s15, %s8175_s18  ;;  %p384_p4 = scmp.eq.s32.totalorder %s8178_s11, 3 }
  0x5a   : > { %p6521_p2 = por %p65_p7, %p64_p11  ;;  %s8181_s3 = sld [smem:[#allocation24_spill]] }
  0x5b   : > { %s6527_s23 = scalar_select %p55_p12, %s6224_s16, %s57_s25  }
  0x5c   : > { %p6531_p5 = por %p71_p1, %p70_p13  ;;  %p6535_p8 = por %p384_p4, %p64_p11 }
  0x5d   : > { %s8183_s27 = sld [smem:[#allocation23_spill]]  ;;  %p390_p10 = scmp.eq.s32.totalorder %s4826_s26, 3 }
  0x5e   : > { %s484_s18 = sand.u32 1, %s6224_s16   ;;  %s8184_s25 = sld [smem:[#allocation22_spill]] }
  0x5f   : > { %s4847_s13 = sshll.u32 %s484_s18, 7  ;;  %p6540_p12 = por %p390_p10, %p70_p13 }
  0x60   : > { %s5429_s2 = sshll.u32 %s51_s6, 7  ;;  %s488_s10 = scalar_lea.vmem [#allocation3], %s4847_s13 }
  0x61   : > { %s498_s14 = sshll.u32 %s488_s10, 4  ;;  %s8186_s26 = sld [smem:[#allocation47_spill]]  ;;  %s499_s14 = int_to_ptr.vmem [resolvable:$true] %s498_s14 }
  0x62   : > { %p5717_p11 = pnand %p5734_p6, %p6521_p2  ;;  %s485_s24 = scalar_lea.sflag [#allocation4], %s484_s18 }
  0x63   : > { %s8187_s5 = smov 8   ;;  %s8188_s20 = smov 128  }
  0x64   : > { %s133_s6 = sadd.s32 1, %s8181_s3  ;;  %p140_p13 = scmp.ne.s32.totalorder %s8181_s3, %s8183_s27 }
  0x65   : > { %s6560_s13 = scalar_select %p6476_p9, %s8181_s3, %s133_s6  }
  0x66   : > { %p142_p4 = por %p140_p13, %p65_p7  ;;  %p146_p10 = scmp.ne.s32.totalorder %s8183_s27, %s8184_s25 }
  0x67   : > { %s495_s8 = scalar_lea.hbm %s8186_s26, %s5429_s2  ;;  %s538_s1 = sand.u32 1, %s8181_s3  }
  0x68   : > { %s496_s12 = sshll.u32 %s495_s8, 4  ;;  %s5433_s8 = sshll.u32 %s6471_s28, 4  ;;  %s497_s12 = int_to_ptr.hbm [resolvable:$true] %s496_s12 }
  0x69   : > { %5719 = dma.hbm_to_vmem [thread:$0]  (!%p5717_p11), %s497_s12, 2048, %s499_s14, %s485_s24, %s8188_s20, %s8188_s20, %s8187_s5  }
  0x6a   : > { %p6570_p2 = por %p146_p10, %p71_p1  ;;  %s4857_s18 = sshll.u32 %s538_s1, 4 }
  0x6b   : > { %s8190_s24 = sld [smem:[#allocation49_spill]]  ;;  %s540_s9 = scalar_lea.vmem [#allocation8], %s4857_s18 }
  0x6c   : > { %s554_s0 = sshll.u32 %s540_s9, 4  ;;  %p5723_p7 = pnand %p5734_p6, %p142_p4  ;;  %s555_s0 = int_to_ptr.vmem [resolvable:$true] %s554_s0 }
  0x6f   : > { %566 = sbr.rel (%p6409_p3) target bundleno = 1431 (0x597), region = 72 }
  0x71   : > { %s551_s10 = scalar_lea.hbm %s8190_s24, %s5433_s8 }
  0x72   : > { %s552_s14 = sshll.u32 %s551_s10, 4  ;;  %s553_s14 = int_to_ptr.hbm [resolvable:$true] %s552_s14 }
  0x73   : > { %5725 = dma.hbm_to_vmem [thread:$0]  (!%p5723_p7), %s553_s14, 256, %s555_s0, %s6490_s7, %s8188_s20, %s8188_s20, %s8187_s5  }
  0x74   : > { %s6586_s11 = sand.u32 1, %s6220_s15  }
  0x75   : > { %s4863_s3 = sshll.u32 %s6586_s11, 7  ;;  %s569_s27 = scalar_lea.sflag [#allocation4], %s6586_s11 }
  0x76   : > { %s6592_s25 = scalar_lea.vmem [#allocation3], %s4863_s3 }
  0x77   : > { %6167 = dma.done.wait (%p6531_p5), %s569_s27, 2048  }
  0x78   : > { %6169 = vsyncadd (%p6531_p5), %s569_s27, 4294965248  ;;  %s8192_s20 = sld [smem:[#allocation30_spill]] }
  0x79   : > { %s8193_s5 = sld [smem:[#allocation25_spill]] }
  0x7e   : > { %s578_s26 = sand.u32 1, %s8192_s20  }
  0x7f   : > { %s580_s6 = sand.u32 1, %s8193_s5   ;;  %s579_s8 = scalar_lea.sflag [#allocation7], %s578_s26 }
  0x80   : > { %s6600_s1 = sshll.u32 %s580_s6, 4 }
  0x81   : > { %s582_s18 = scalar_lea.vmem [#allocation6], %s6600_s1 }
  0x82   : > { %6171 = dma.done.wait (%p6461_p0), %s579_s8, 256  }
  0x83   : > { %6173 = vsyncadd (%p6461_p0), %s579_s8, 4294967040  ;;  %s8195_s2 = sld [smem:[#allocation23_spill]] }
  0x89   : > { %s590_s12 = sand.u32 1, %s8195_s2  }
  0x8a   : > { %s6608_s22 = sshll.u32 %s590_s12, 4 }
  0x8b   : > { %s592_s24 = scalar_lea.vmem [#allocation8], %s6608_s22 }
  0x8c   : > { %6175 = dma.done.wait (%p6570_p2), %s579_s8, 256  }
  0x8d   : > { %6177 = vsyncadd (%p6570_p2), %s579_s8, 4294967040 }
  0x8e   : > { %6179 = dma.done.wait (%p71_p1), [#allocation10], 10240  }
  0x8f   : > { %6181 = vsyncadd (%p71_p1), [#allocation10], 4294957056 }
  0x90   : > { %6183 = dma.done.wait (%p71_p1), [#allocation13], 2048  }
  0x91   : > { %6185 = vsyncadd (%p71_p1), [#allocation13], 4294965248  ;;  %v5441_v0 = vld [vmem:[#allocation9 + $0x38] sm:$0xff]  ;;  %v5440_v1 = vld [vmem:[#allocation9 + $0x30] sm:$0xff]  ;;  %s8196_s14 = sld [smem:[#allocation50_spill]]  ;;  %s6749_s6 = scalar_lea.vmem [#allocation15], %s4863_s3 }
  0x92   : > { %835 = vmatpush.bf16.msra.mxu0 %v5441_v0  ;;  %5631 = vmatpush.bf16.msra.mxu1 %v5441_v0  ;;  %v5439_v2 = vld [vmem:[#allocation9 + $0x28] sm:$0xff]  ;;  %v5438_v3 = vld [vmem:[#allocation9 + $0x20] sm:$0xff]  ;;  %v5437_v5 = vld [vmem:[#allocation9 + $0x18] sm:$0xff]  ;;  %s8197_s28 = sld [smem:[#allocation51_spill]] }
  0x93   : > { %5632 = vmatpush.bf16.msra.mxu2 %v5441_v0  ;;  %5633 = vmatpush.bf16.msra.mxu3 %v5441_v0  ;;  %v693_v6 = vld [vmem:[%s6592_s25] sm:$0xff]  ;;  %v694_v7 = vld [vmem:[%s6592_s25 + $0x8] sm:$0xff]  ;;  %v5436_v20 = vld [vmem:[#allocation9 + $0x10] sm:$0xff]  ;;  %s8206_s20 = sld [smem:[#allocation53_spill]] }
  0x94   : > { %v697_v8 = vld [vmem:[%s6592_s25 + $0x20] sm:$0xff]  ;;  %v698_v9 = vld [vmem:[%s6592_s25 + $0x28] sm:$0xff]  ;;  %v695_v44 = vld [vmem:[%s6592_s25 + $0x10] sm:$0xff]  ;;  %s8207_s26 = sld [smem:[#allocation54_spill]] }
  0x95   : > { %v701_v10 = vld [vmem:[%s6592_s25 + $0x40] sm:$0xff]  ;;  %v702_v11 = vld [vmem:[%s6592_s25 + $0x48] sm:$0xff]  ;;  %v696_v45 = vld [vmem:[%s6592_s25 + $0x18] sm:$0xff]  ;;  %s8208_s8 = sld [smem:[#allocation27_spill]] }
  0x96   : > { %836 = vmatpush.bf16.msra.mxu0 %v5440_v1  ;;  %5634 = vmatpush.bf16.msra.mxu1 %v5440_v1  ;;  %v705_v12 = vld [vmem:[%s6592_s25 + $0x60] sm:$0xff]  ;;  %v706_v13 = vld [vmem:[%s6592_s25 + $0x68] sm:$0xff]  ;;  %v699_v48 = vld [vmem:[%s6592_s25 + $0x30] sm:$0xff] }
  0x97   : > { %5635 = vmatpush.bf16.msra.mxu2 %v5440_v1  ;;  %5636 = vmatpush.bf16.msra.mxu3 %v5440_v1  ;;  %v6626_v4 = vld [vmem:[%s8196_s14] ss:$0 sm:$0xff]  ;;  %v5435_v29 = vld [vmem:[#allocation9 + $0x8] sm:$0xff]  ;;  %v700_v49 = vld [vmem:[%s6592_s25 + $0x38] sm:$0xff] }
  0x98   : > { %v712_v14 = vmul.f32 %v6626_v4, %v693_v6  ;;  %v6640_v15 = vld [vmem:[%s8197_s28] ss:$0 sm:$0xff]  ;;  %v713_v16 = vmul.f32 %v6626_v4, %v694_v7  ;;  %v716_v17 = vmul.f32 %v6626_v4, %v697_v8  ;;  %v717_v18 = vmul.f32 %v6626_v4, %v698_v9  ;;  %v703_v50 = vld [vmem:[%s6592_s25 + $0x50] sm:$0xff]  ;;  %v704_v51 = vld [vmem:[%s6592_s25 + $0x58] sm:$0xff] }
  0x99   : > { %v720_v19 = vmul.f32 %v6626_v4, %v701_v10  ;;  %v721_v21 = vmul.f32 %v6626_v4, %v702_v11  ;;  %v724_v22 = vmul.f32 %v6626_v4, %v705_v12  ;;  %v725_v23 = vmul.f32 %v6626_v4, %v706_v13  ;;  %v5434_v37 = vld [vmem:[#allocation9] sm:$0xff]  ;;  %v707_v52 = vld [vmem:[%s6592_s25 + $0x70] sm:$0xff]  ;;  %v708_v53 = vld [vmem:[%s6592_s25 + $0x78] sm:$0xff] }
  0x9a   : > { %837 = vmatpush.bf16.msra.mxu0 %v5439_v2  ;;  %5637 = vmatpush.bf16.msra.mxu1 %v5439_v2  ;;  %v731_v24 = vadd.f32 %v6640_v15, %v712_v14  ;;  %v732_v25 = vadd.f32 %v6640_v15, %v713_v16  ;;  %v735_v26 = vadd.f32 %v6640_v15, %v716_v17 }
  0x9b   : > { %5638 = vmatpush.bf16.msra.mxu2 %v5439_v2  ;;  %5639 = vmatpush.bf16.msra.mxu3 %v5439_v2  ;;  %v736_v27 = vadd.f32 %v6640_v15, %v717_v18  ;;  %v739_v28 = vadd.f32 %v6640_v15, %v720_v19  ;;  %v740_v30 = vadd.f32 %v6640_v15, %v721_v21  ;;  %p4903_p1 = scmp.le.s32.totalorder %s8208_s8, 0 }
  0x9c   : > { %v743_v31 = vadd.f32 %v6640_v15, %v724_v22  ;;  %v744_v32 = vadd.f32 %v6640_v15, %v725_v23  ;;  %v747_v33 = vmax.f32 %v731_v24, 0.0  ;;  %v748_v34 = vmax.f32 %v732_v25, 0.0  ;;  %v6708_v22 = vld [vmem:[%s8206_s20] ss:$0 sm:$0xff] }
  0x9d   : > { %v751_v35 = vmax.f32 %v735_v26, 0.0  ;;  %v752_v36 = vmax.f32 %v736_v27, 0.0  ;;  %v755_v38 = vmax.f32 %v739_v28, 0.0  ;;  %v756_v39 = vmax.f32 %v740_v30, 0.0  ;;  %v6714_v24 = vld [vmem:[%s8207_s26] ss:$0 sm:$0xff] }
  0x9e   : > { %838 = vmatpush.bf16.msra.mxu0 %v5438_v3  ;;  %5640 = vmatpush.bf16.msra.mxu1 %v5438_v3  ;;  %v759_v40 = vmax.f32 %v743_v31, 0.0  ;;  %v760_v41 = vmax.f32 %v744_v32, 0.0  ;;  %v6657_v42 = vpack.c.bf16 %v748_v34, %v747_v33  ;;  %v714_v54 = vmul.f32 %v6626_v4, %v695_v44 }
  0x9f   : > { %5641 = vmatpush.bf16.msra.mxu2 %v5438_v3  ;;  %5642 = vmatpush.bf16.msra.mxu3 %v5438_v3  ;;  %v6659_v43 = vpack.c.bf16 %v752_v36, %v751_v35  ;;  %v6663_v46 = vpack.c.bf16 %v756_v39, %v755_v38  ;;  %v715_v55 = vmul.f32 %v6626_v4, %v696_v45 }
  0xa0   : > { %8198 = vst [vmem:[#allocation36_spill] sm:$0xff] %v6657_v42  ;;  %v6665_v47 = vpack.c.bf16 %v760_v41, %v759_v40  ;;  %v718_v56 = vmul.f32 %v6626_v4, %v699_v48  ;;  %v719_v57 = vmul.f32 %v6626_v4, %v700_v49  ;;  %v722_v58 = vmul.f32 %v6626_v4, %v703_v50 }
  0xa1   : > { %8199 = vst [vmem:[#allocation37_spill] sm:$0xff] %v6659_v43  ;;  %v723_v59 = vmul.f32 %v6626_v4, %v704_v51  ;;  %v726_v60 = vmul.f32 %v6626_v4, %v707_v52  ;;  %v727_v61 = vmul.f32 %v6626_v4, %v708_v53  ;;  %v733_v62 = vadd.f32 %v6640_v15, %v714_v54 }
  0xa2   : > { %839 = vmatpush.bf16.msra.mxu0 %v5437_v5  ;;  %5643 = vmatpush.bf16.msra.mxu1 %v5437_v5  ;;  %8200 = vst [vmem:[#allocation38_spill] sm:$0xff] %v6663_v46  ;;  %v734_v63 = vadd.f32 %v6640_v15, %v715_v55  ;;  %v737_v0 = vadd.f32 %v6640_v15, %v718_v56 }
  0xa3   : > { %5644 = vmatpush.bf16.msra.mxu2 %v5437_v5  ;;  %5645 = vmatpush.bf16.msra.mxu3 %v5437_v5  ;;  %8201 = vst [vmem:[#allocation39_spill] sm:$0xff] %v6665_v47  ;;  %v738_v1 = vadd.f32 %v6640_v15, %v719_v57  ;;  %v741_v2 = vadd.f32 %v6640_v15, %v722_v58  ;;  %v749_v7 = vmax.f32 %v733_v62, 0.0 }
  0xa4   : > { %v742_v3 = vadd.f32 %v6640_v15, %v723_v59  ;;  %v745_v5 = vadd.f32 %v6640_v15, %v726_v60  ;;  %v746_v6 = vadd.f32 %v6640_v15, %v727_v61  ;;  %v750_v8 = vmax.f32 %v734_v63, 0.0 }
  0xa5   : > { %v753_v9 = vmax.f32 %v737_v0, 0.0  ;;  %v754_v10 = vmax.f32 %v738_v1, 0.0  ;;  %v757_v11 = vmax.f32 %v741_v2, 0.0 }
  0xa6   : > { %840 = vmatpush.bf16.msra.mxu0 %v5436_v20  ;;  %5646 = vmatpush.bf16.msra.mxu1 %v5436_v20  ;;  %v758_v12 = vmax.f32 %v742_v3, 0.0  ;;  %v761_v13 = vmax.f32 %v745_v5, 0.0  ;;  %v762_v14 = vmax.f32 %v746_v6, 0.0  ;;  %v6693_v16 = vpack.c.bf16 %v750_v8, %v749_v7 }
  0xa7   : > { %5647 = vmatpush.bf16.msra.mxu2 %v5436_v20  ;;  %5648 = vmatpush.bf16.msra.mxu3 %v5436_v20  ;;  %v6695_v17 = vpack.c.bf16 %v754_v10, %v753_v9 }
  0xa8   : > { %8202 = vst [vmem:[#allocation40_spill] sm:$0xff] %v6693_v16  ;;  %v6697_v18 = vpack.c.bf16 %v758_v12, %v757_v11  ;;  %v6699_v19 = vpack.c.bf16 %v762_v14, %v761_v13 }
  0xa9   : > { %8203 = vst [vmem:[#allocation41_spill] sm:$0xff] %v6695_v17 }
  0xaa   : > { %841 = vmatpush.bf16.msra.mxu0 %v5435_v29  ;;  %5649 = vmatpush.bf16.msra.mxu1 %v5435_v29  ;;  %8204 = vst [vmem:[#allocation42_spill] sm:$0xff] %v6697_v18 }
  0xab   : > { %5650 = vmatpush.bf16.msra.mxu2 %v5435_v29  ;;  %5651 = vmatpush.bf16.msra.mxu3 %v5435_v29  ;;  %8205 = vst [vmem:[#allocation43_spill] sm:$0xff] %v6699_v19 }
  0xae   : > { %842 = vmatpush.bf16.msra.mxu0 %v5434_v37  ;;  %5652 = vmatpush.bf16.msra.mxu1 %v5434_v37 }
  0xaf   : > { %5653 = vmatpush.bf16.msra.mxu2 %v5434_v37  ;;  %5654 = vmatpush.bf16.msra.mxu3 %v5434_v37 }
  0xb1   : > { %843 = vmatmul.bf16.vlgmr.msra.gmra.mxu0 %v6657_v42  ;;  %853 = vmatmul.bf16.vlgmr.msra.gmra.mxu1 %v6659_v43 }
  0xb2   : > { %863 = vmatmul.bf16.vlgmr.msra.gmra.mxu2 %v6663_v46  ;;  %873 = vmatmul.bf16.vlgmr.msra.gmra.mxu3 %v6665_v47 }
  0xc1   : > { %848 = vmatmul.bf16.gmra.mxu0 %v6693_v16  ;;  %858 = vmatmul.bf16.gmra.mxu1 %v6695_v17 }
  0xc2   : > { %868 = vmatmul.bf16.gmra.mxu2 %v6697_v18  ;;  %878 = vmatmul.bf16.gmra.mxu3 %v6699_v19 }
 0x12e   : > { %v844_v20 = vpop.f32.mrf.mxu0  ;;  %v854_v21 = vpop.f32.mrf.mxu1 }
 0x12f   : > { %v887_v23 = vmul.f32 %v6708_v22, %v844_v20  ;;  %v891_v25 = vmul.f32 %v6708_v22, %v854_v21 }
 0x131   : > { %v906_v30 = vadd.f32 %v6714_v24, %v887_v23  ;;  %v910_v31 = vadd.f32 %v6714_v24, %v891_v25 }
 0x133   : > { %v922_v38 = vmax.f32 %v906_v30, 0.0  ;;  %v926_v39 = vmax.f32 %v910_v31, 0.0 }
 0x135   : > { %v864_v26 = vpop.f32.mrf.mxu2  ;;  %v874_v27 = vpop.f32.mrf.mxu3 }
 0x136   : > { %v846_v28 = vpop.f32.mrf.mxu0  ;;  %v856_v29 = vpop.f32.mrf.mxu1  ;;  %v895_v36 = vmul.f32 %v6708_v22, %v864_v26  ;;  %v899_v37 = vmul.f32 %v6708_v22, %v874_v27 }
 0x137   : > { %v888_v32 = vmul.f32 %v6708_v22, %v846_v28  ;;  %v892_v33 = vmul.f32 %v6708_v22, %v856_v29 }
 0x138   : > { %v914_v50 = vadd.f32 %v6714_v24, %v895_v36  ;;  %v918_v51 = vadd.f32 %v6714_v24, %v899_v37 }
 0x139   : > { %v907_v34 = vadd.f32 %v6714_v24, %v888_v32  ;;  %v911_v35 = vadd.f32 %v6714_v24, %v892_v33 }
 0x13a   : > { %v930_v58 = vmax.f32 %v914_v50, 0.0  ;;  %v934_v59 = vmax.f32 %v918_v51, 0.0 }
 0x13b   : > { %v923_v40 = vmax.f32 %v907_v34, 0.0  ;;  %v927_v41 = vmax.f32 %v911_v35, 0.0 }
 0x13d   : > { %v5574_v44 = vpack.c.bf16 %v923_v40, %v922_v38  ;;  %v5584_v45 = vpack.c.bf16 %v927_v41, %v926_v39  ;;  %v866_v48 = vpop.f32.mrf.mxu2  ;;  %v876_v49 = vpop.f32.mrf.mxu3 }
 0x13e   : > { %v896_v52 = vmul.f32 %v6708_v22, %v866_v48  ;;  %v900_v53 = vmul.f32 %v6708_v22, %v876_v49  ;;  %v849_v54 = vpop.f32.mrf.mxu0  ;;  %v859_v55 = vpop.f32.mrf.mxu1 }
 0x13f   : > { %5621 = vst [vmem:[#allocation2 + $0x10] sm:$0xff] %v5574_v44   ;;  %v889_v62 = vmul.f32 %v6708_v22, %v849_v54  ;;  %v893_v63 = vmul.f32 %v6708_v22, %v859_v55 }
 0x140   : > { %5623 = vst [vmem:[#allocation2 + $0x20] sm:$0xff] %v5584_v45   ;;  %v915_v56 = vadd.f32 %v6714_v24, %v896_v52  ;;  %v919_v57 = vadd.f32 %v6714_v24, %v900_v53 }
 0x141   : > { %v908_v7 = vadd.f32 %v6714_v24, %v889_v62  ;;  %v912_v8 = vadd.f32 %v6714_v24, %v893_v63 }
 0x142   : > { %v931_v60 = vmax.f32 %v915_v56, 0.0  ;;  %v935_v61 = vmax.f32 %v919_v57, 0.0 }
 0x143   : > { %v924_v20 = vmax.f32 %v908_v7, 0.0  ;;  %v928_v21 = vmax.f32 %v912_v8, 0.0 }
 0x144   : > { %v5594_v0 = vpack.c.bf16 %v931_v60, %v930_v58  ;;  %v5604_v1 = vpack.c.bf16 %v935_v61, %v934_v59 }
 0x145   : > { %v869_v2 = vpop.f32.mrf.mxu2  ;;  %v879_v3 = vpop.f32.mrf.mxu3 }
 0x146   : > { %5625 = vst [vmem:[#allocation2 + $0x30] sm:$0xff] %v5594_v0   ;;  %v851_v5 = vpop.f32.mrf.mxu0  ;;  %v861_v6 = vpop.f32.mrf.mxu1  ;;  %v897_v13 = vmul.f32 %v6708_v22, %v869_v2  ;;  %v901_v14 = vmul.f32 %v6708_v22, %v879_v3 }
 0x147   : > { %5627 = vst [vmem:[#allocation2 + $0x40] sm:$0xff] %v5604_v1   ;;  %v890_v9 = vmul.f32 %v6708_v22, %v851_v5  ;;  %v894_v10 = vmul.f32 %v6708_v22, %v861_v6 }
 0x148   : > { %v916_v30 = vadd.f32 %v6714_v24, %v897_v13  ;;  %v920_v31 = vadd.f32 %v6714_v24, %v901_v14 }
 0x149   : > { %v909_v11 = vadd.f32 %v6714_v24, %v890_v9  ;;  %v913_v12 = vadd.f32 %v6714_v24, %v894_v10 }
 0x14a   : > { %v932_v36 = vmax.f32 %v916_v30, 0.0  ;;  %v936_v37 = vmax.f32 %v920_v31, 0.0 }
 0x14b   : > { %v925_v23 = vmax.f32 %v909_v11, 0.0  ;;  %v929_v25 = vmax.f32 %v913_v12, 0.0 }
 0x14d   : > { %v5579_v26 = vpack.c.bf16 %v925_v23, %v924_v20  ;;  %v5589_v27 = vpack.c.bf16 %v929_v25, %v928_v21  ;;  %v871_v28 = vpop.f32.mrf.mxu2  ;;  %v881_v29 = vpop.f32.mrf.mxu3 }
 0x14e   : > { %v898_v32 = vmul.f32 %v6708_v22, %v871_v28  ;;  %v902_v33 = vmul.f32 %v6708_v22, %v881_v29 }
 0x14f   : > { %5622 = vst [vmem:[#allocation2 + $0x18] sm:$0xff] %v5579_v26  }
 0x150   : > { %5624 = vst [vmem:[#allocation2 + $0x28] sm:$0xff] %v5589_v27   ;;  %v917_v34 = vadd.f32 %v6714_v24, %v898_v32  ;;  %v921_v35 = vadd.f32 %v6714_v24, %v902_v33 }
 0x152   : > { %v933_v38 = vmax.f32 %v917_v34, 0.0  ;;  %v937_v39 = vmax.f32 %v921_v35, 0.0 }
 0x153   : > { %973 = sbr.rel (%p4903_p1) target bundleno = 519 (0x207), region = 104 }
 0x154   : > { %v5599_v40 = vpack.c.bf16 %v933_v38, %v932_v36  ;;  %v5609_v41 = vpack.c.bf16 %v937_v39, %v936_v37 }
 0x156   : > { %5626 = vst [vmem:[#allocation2 + $0x38] sm:$0xff] %v5599_v40  }
 0x157   : > { %5628 = vst [vmem:[#allocation2 + $0x48] sm:$0xff] %v5609_v41  }
 0x158   : > { %v5449_v44 = vld [vmem:[#allocation9 + $0x38] sm:$0xff]  ;;  %v5448_v45 = vld [vmem:[#allocation9 + $0x30] sm:$0xff]  ;;  %v5447_v48 = vld [vmem:[#allocation9 + $0x28] sm:$0xff] }
 0x159   : > { %1047 = vmatpush.bf16.msra.mxu0 %v5449_v44  ;;  %v5446_v49 = vld [vmem:[#allocation9 + $0x20] sm:$0xff]  ;;  %v5445_v50 = vld [vmem:[#allocation9 + $0x18] sm:$0xff]  ;;  %v5444_v55 = vld [vmem:[#allocation9 + $0x10] sm:$0xff] }
 0x15a   : > { %v974_v51 = vld [vmem:[%s582_s18] sm:$0xff]  ;;  %v975_v52 = vld [vmem:[%s582_s18 + $0x8] sm:$0xff] }
 0x15b   : > { %v976_v53 = vmul.f32 %v6626_v4, %v974_v51  ;;  %v977_v54 = vmul.f32 %v6626_v4, %v975_v52  ;;  %v5443_v58 = vld [vmem:[#allocation9 + $0x8] sm:$0xff]  ;;  %v5442_v61 = vld [vmem:[#allocation9] sm:$0xff] }
 0x15d   : > { %1048 = vmatpush.bf16.msra.mxu0 %v5448_v45  ;;  %v978_v56 = vadd.f32 %v6640_v15, %v976_v53  ;;  %v979_v57 = vadd.f32 %v6640_v15, %v977_v54 }
 0x15f   : > { %v980_v59 = vmax.f32 %v978_v56, 0.0  ;;  %v981_v60 = vmax.f32 %v979_v57, 0.0 }
 0x161   : > { %1049 = vmatpush.bf16.msra.mxu0 %v5447_v48  ;;  %v982_v62 = vpack.c.bf16 %v981_v60, %v980_v59 }
 0x165   : > { %1050 = vmatpush.bf16.msra.mxu0 %v5446_v49 }
 0x169   : > { %1051 = vmatpush.bf16.msra.mxu0 %v5445_v50 }
 0x16d   : > { %1052 = vmatpush.bf16.msra.mxu0 %v5444_v55 }
 0x171   : > { %1053 = vmatpush.bf16.msra.mxu0 %v5443_v58 }
 0x175   : > { %1054 = vmatpush.bf16.msra.mxu0 %v5442_v61 }
 0x178   : > { %1055 = vmatmul.bf16.vlgmr.msra.gmra.mxu0 %v982_v62 }
 0x1f5   : > { %v1056_v63 = vpop.f32.mrf.mxu0 }
 0x1f6   : > { %v1061_v0 = vmul.f32 %v6708_v22, %v1056_v63 }
 0x1f8   : > { %v1063_v2 = vadd.f32 %v6714_v24, %v1061_v0 }
 0x1fa   : > { %v1065_v6 = vmax.f32 %v1063_v2, 0.0 }
 0x1fd   : > { %v1058_v1 = vpop.f32.mrf.mxu0 }
 0x1fe   : > { %v1062_v3 = vmul.f32 %v6708_v22, %v1058_v1 }
 0x200   : > { %v1064_v5 = vadd.f32 %v6714_v24, %v1062_v3 }
 0x202   : > { %v1066_v7 = vmax.f32 %v1064_v5, 0.0 }
 0x204   : > { %v5614_v8 = vpack.c.bf16 %v1066_v7, %v1065_v6 }
 0x206   : > { %5629 = vst [vmem:[#allocation2 + $0x8] sm:$0xff] %v5614_v8  }
 0x207 PF: > { %s8209_s3 = sld [smem:[#allocation27_spill]] }
 0x20d   : > { %p4936_p3 = scmp.ne.s32.totalorder %s8209_s3, 0 }
 0x20f   : > { %1074 = sbr.rel (%p4936_p3) target bundleno = 535 (0x217), region = 108 }
 0x214   : > { %v6254_v9 = vmov 0  }
 0x215   : > { %1075 = vst [vmem:[#allocation2 + $0x8] sm:$0xf] %v6254_v9 }
 0x216   : > { %1076 = vst [vmem:[#allocation2 + $0xc] sm:$0xf] %v6254_v9 }
 0x217 PF: > { %s8210_s1 = sld [smem:[#allocation27_spill]] }
 0x21d   : > { %p4937_p0 = scmp.ge.s32.totalorder %s8210_s1, 1 }
 0x21f   : > { %1080 = sbr.rel (%p4937_p0) target bundleno = 723 (0x2d3), region = 112 }
 0x224   : > { %v5457_v10 = vld [vmem:[#allocation9 + $0x38] sm:$0xff]  ;;  %v5456_v11 = vld [vmem:[#allocation9 + $0x30] sm:$0xff]  ;;  %v5455_v12 = vld [vmem:[#allocation9 + $0x28] sm:$0xff] }
 0x225   : > { %1154 = vmatpush.bf16.msra.mxu0 %v5457_v10  ;;  %v5454_v13 = vld [vmem:[#allocation9 + $0x20] sm:$0xff]  ;;  %v5453_v14 = vld [vmem:[#allocation9 + $0x18] sm:$0xff]  ;;  %v5452_v26 = vld [vmem:[#allocation9 + $0x10] sm:$0xff] }
 0x226   : > { %v1081_v20 = vld [vmem:[%s592_s24] sm:$0xff]  ;;  %v1082_v21 = vld [vmem:[%s592_s24 + $0x8] sm:$0xff] }
 0x227   : > { %v1083_v23 = vmul.f32 %v6626_v4, %v1081_v20  ;;  %v1084_v25 = vmul.f32 %v6626_v4, %v1082_v21  ;;  %v5451_v29 = vld [vmem:[#allocation9 + $0x8] sm:$0xff]  ;;  %v5450_v32 = vld [vmem:[#allocation9] sm:$0xff] }
 0x229   : > { %1155 = vmatpush.bf16.msra.mxu0 %v5456_v11  ;;  %v1085_v27 = vadd.f32 %v6640_v15, %v1083_v23  ;;  %v1086_v28 = vadd.f32 %v6640_v15, %v1084_v25 }
 0x22b   : > { %v1087_v30 = vmax.f32 %v1085_v27, 0.0  ;;  %v1088_v31 = vmax.f32 %v1086_v28, 0.0 }
 0x22d   : > { %1156 = vmatpush.bf16.msra.mxu0 %v5455_v12  ;;  %v1089_v33 = vpack.c.bf16 %v1088_v31, %v1087_v30 }
 0x231   : > { %1157 = vmatpush.bf16.msra.mxu0 %v5454_v13 }
 0x235   : > { %1158 = vmatpush.bf16.msra.mxu0 %v5453_v14 }
 0x239   : > { %1159 = vmatpush.bf16.msra.mxu0 %v5452_v26 }
 0x23d   : > { %1160 = vmatpush.bf16.msra.mxu0 %v5451_v29 }
 0x241   : > { %1161 = vmatpush.bf16.msra.mxu0 %v5450_v32 }
 0x244   : > { %1162 = vmatmul.bf16.vlgmr.msra.gmra.mxu0 %v1089_v33 }
 0x2c1   : > { %v1163_v34 = vpop.f32.mrf.mxu0 }
 0x2c2   : > { %v1168_v35 = vmul.f32 %v6708_v22, %v1163_v34 }
 0x2c4   : > { %v1170_v4 = vadd.f32 %v6714_v24, %v1168_v35 }
 0x2c6   : > { %v1172_v15 = vmax.f32 %v1170_v4, 0.0 }
 0x2c9   : > { %v1165_v36 = vpop.f32.mrf.mxu0 }
 0x2ca   : > { %v1169_v37 = vmul.f32 %v6708_v22, %v1165_v36 }
 0x2cc   : > { %v1171_v38 = vadd.f32 %v6714_v24, %v1169_v37 }
 0x2ce   : > { %v1173_v39 = vmax.f32 %v1171_v38, 0.0 }
 0x2d0   : > { %v5619_v40 = vpack.c.bf16 %v1173_v39, %v1172_v15 }
 0x2d2   : > { %5630 = vst [vmem:[#allocation2 + $0x50] sm:$0xff] %v5619_v40  }
 0x2d3 PF: > { %s8211_s18 = sld [smem:[#allocation27_spill]] }
 0x2d9   : > { %p4970_p6 = scmp.ne.s32.totalorder %s8211_s18, 1 }
 0x2db   : > { %1181 = sbr.rel (%p4970_p6) target bundleno = 739 (0x2e3), region = 116 }
 0x2e0   : > { %v6255_v41 = vmov 0  }
 0x2e1   : > { %1182 = vst [vmem:[#allocation2 + $0x50] sm:$0xf] %v6255_v41 }
 0x2e2   : > { %1183 = vst [vmem:[#allocation2 + $0x54] sm:$0xf] %v6255_v41 }
 0x2e3 PF: > { %v5481_v44 = vld [vmem:[#allocation11 + $0x78] sm:$0xff]  ;;  %v1184_v48 = vlaneseq  ;;  %v5480_v22 = vld [vmem:[#allocation11 + $0x70] sm:$0xff]  ;;  %v5479_v57 = vld [vmem:[#allocation11 + $0x68] sm:$0xff]  ;;  %vm6256_vm3 = vmmov 1   ;;  %v8078_v6 = vmov 0   ;;  %s8390_s22 = sld [smem:[#allocation56_spill]] }
 0x2e4   : > { %v6779_v45 = vld [vmem:[#allocation11 + $0xb8] sm:$0xff]  ;;  %1932 = vmatpush.bf16.msra.mxu0 %v5481_v44  ;;  %5655 = vmatpush.bf16.msra.mxu3 %v5481_v44  ;;  %v6787_v50 = vld [vmem:[#allocation11 + $0xb0] sm:$0xff]  ;;  %v6798_v61 = vld [vmem:[#allocation11 + $0xa8] sm:$0xff]  ;;  %v6819_v8 = vunpack.c.l.b16 %v8078_v6  ;;  %v6822_v9 = vunpack.c.h.b16 %v8078_v6  ;;  %vm2291_vm6 = vsmask.f32 256  ;;  %s8391_s10 = sld [smem:[#allocation57_spill]] }
 0x2e5   : > { %v6781_v49 = vld [vmem:[#allocation11 + $0x38] sm:$0xff]  ;;  %v6783_v24 = vshrl.u32 %v1184_v48, 7  ;;  %5671 = vmatpush.bf16.msra.mxu2 %v6779_v45  ;;  %v6789_v51 = vld [vmem:[#allocation11 + $0x30] sm:$0xff]  ;;  %v6800_v62 = vld [vmem:[#allocation11 + $0x28] sm:$0xff]  ;;  %vm2292_vm8 = vsmask.f32 4368 }
 0x2e6   : > { %5663 = vmatpush.bf16.msra.mxu1 %v6781_v49  ;;  %vm1475_vm4 = vmpackc.low %vm6256_vm3, %vm6256_vm3  ;;  %v5478_v10 = vld [vmem:[#allocation11 + $0x60] sm:$0xff]  ;;  %v5477_v31 = vld [vmem:[#allocation11 + $0x58] sm:$0xff]  ;;  %vm1506_vm15 = vsmask.f32 3328  ;;  %s8399_s14 = sld [smem:[#allocation28_spill]]  ;;  %s4649_s26 = sshll.u32 %s6749_s6, 4  ;;  %s4650_s26 = int_to_ptr.vmem [resolvable:$true] %s4649_s26 }
 0x2e7   : > { %v1188_v52 = vadd.s32 24, %v6783_v24  ;;  %v1190_v53 = vadd.s32 40, %v6783_v24  ;;  %v1192_v54 = vadd.s32 56, %v6783_v24  ;;  %v1189_v55 = vadd.s32 32, %v6783_v24  ;;  %v6836_v14 = vld [vmem:[#allocation11 + $0xa0] sm:$0xff]  ;;  %v6860_v32 = vld [vmem:[#allocation11 + $0x98] sm:$0xff]  ;;  %vm6887_vm14 = vmor %vm2291_vm6, %vm2292_vm8 }
 0x2e8   : > { %v1191_v56 = vadd.s32 48, %v6783_v24  ;;  %1933 = vmatpush.bf16.msra.mxu0 %v5480_v22  ;;  %5656 = vmatpush.bf16.msra.mxu3 %v5480_v22  ;;  %v6803_v1 = vadd.s32 72, %v6783_v24  ;;  %v1491_v7 = vsel %vm1475_vm4, 65537, %v8078_v6  ;;  %v6838_v20 = vld [vmem:[#allocation11 + $0x20] sm:$0xff]  ;;  %v6866_v4 = vld [vmem:[#allocation11 + $0x18] sm:$0xff]  ;;  %v6902_v2 = vld [vmem:[#allocation11 + $0x90] sm:$0xff] }
 0x2e9   : > { %v1226_v58 = vand.u32 15, %v1188_v52  ;;  %v1240_v59 = vand.u32 15, %v1190_v53  ;;  %v1254_v60 = vand.u32 15, %v1192_v54  ;;  %5672 = vmatpush.bf16.msra.mxu2 %v6787_v50  ;;  %v1233_v63 = vand.u32 15, %v1189_v55  ;;  %v6904_v3 = vld [vmem:[#allocation11 + $0x10] sm:$0xff]  ;;  %s8400_s9 = sld [smem:[#allocation27_spill]] }
 0x2ea   : > { %5664 = vmatpush.bf16.msra.mxu1 %v6789_v51  ;;  %v1247_v0 = vand.u32 15, %v1191_v56  ;;  %v1519_v11 = vshll.u32 %v1491_v7, 16  ;;  %v1523_v12 = vshrl.u32 %v1491_v7, 16  ;;  %v6895_v54 = vadd.s32 64, %v6783_v24  ;;  %v5520_v42 = vld [vmem:[#allocation11 + $0x170] sm:$0xff]  ;;  %s8401_s5 = sld [smem:[#allocation60_spill]] }
 0x2eb   : > { %vm6805_vm0 = vcmp.ne.s32.totalorder %v1226_v58, 15  ;;  %vm6809_vm1 = vcmp.ne.s32.totalorder %v1240_v59, 15  ;;  %vm6813_vm2 = vcmp.ne.s32.totalorder %v1254_v60, 15  ;;  %vm6830_vm9 = vcmp.ne.s32.totalorder %v1233_v63, 0  ;;  %v5476_v59 = vld [vmem:[#allocation11 + $0x50] sm:$0xff]  ;;  %s4635_s3 = scalar_lea.sflag [#allocation5], %s6586_s11 }
 0x2ec   : > { %vm2262_vm5 = vmpackc.low %vm6805_vm0, %vm6805_vm0  ;;  %1934 = vmatpush.bf16.msra.mxu0 %v5479_v57  ;;  %5657 = vmatpush.bf16.msra.mxu3 %v5479_v57  ;;  %vm6852_vm11 = vcmp.ne.s32.totalorder %v1247_v0, 0  ;;  %v6857_v27 = vrot.slane %v1519_v11, 5  ;;  %v1525_v28 = vrot.slane %v1523_v12, 4  ;;  %v2297_v30 = vrot.slane %v1523_v12, 7  ;;  %s5420_s0 = sshll.u32 %s8399_s14, 1 }
 0x2ed   : > { %vm2264_vm7 = vmpackc.low %vm6809_vm1, %vm6809_vm1  ;;  %5673 = vmatpush.bf16.msra.mxu2 %v6798_v61  ;;  %v6849_v21 = vsel %vm2262_vm5, 65537, %v8078_v6  ;;  %vm1507_vm0 = vsmask.f32 7440 }
 0x2ee   : > { %5665 = vmatpush.bf16.msra.mxu1 %v6800_v62  ;;  %vm2266_vm10 = vmpackc.low %vm6813_vm2, %vm6813_vm2  ;;  %v2280_v23 = vsel %vm2264_vm7, 65537, %v8078_v6  ;;  %v2321_v33 = vshrl.u32 %v6849_v21, 16  ;;  %v1526_v37 = vor.u32 %v1525_v28, %v6857_v27  ;;  %v6869_v38 = vor.u32 %v2297_v30, %v1519_v11  ;;  %v5475_v28 = vld [vmem:[#allocation11 + $0x48] sm:$0xff] }
 0x2ef   : > { %v2282_v29 = vsel %vm2266_vm10, 65537, %v8078_v6  ;;  %v2339_v34 = vshrl.u32 %v2280_v23, 16  ;;  %v2342_v35 = vshll.u32 %v2280_v23, 16  ;;  %vm1478_vm12 = vmpackc.low %vm6830_vm9, %vm6830_vm9  ;;  %v6871_v15 = vrot.slane %v2297_v30, 4  ;;  %s4643_s28 = sadd.s32 %s8400_s9, %s5420_s0 }
 0x2f0   : > { %v2357_v36 = vshrl.u32 %v2282_v29, 16  ;;  %1935 = vmatpush.bf16.msra.mxu0 %v5478_v10  ;;  %5658 = vmatpush.bf16.msra.mxu3 %v5478_v10  ;;  %v2360_v39 = vshll.u32 %v2282_v29, 16  ;;  %vm1480_vm13 = vmpackc.low %vm6852_vm11, %vm6852_vm11  ;;  %v6878_v40 = vrot.slane %v2321_v33, 7  ;;  %v1494_v48 = vsel %vm1478_vm12, 65537, %v8078_v6  ;;  %v2214_v29 = vld [vmem:[#allocation2 + $0x18] sm:$0xf] }
 0x2f1   : > { %5674 = vmatpush.bf16.msra.mxu2 %v6836_v14  ;;  %v2341_v41 = vrot.slane %v2339_v34, 7  ;;  %v6883_v22 = vrot.slane %v1526_v37, 4  ;;  %v6892_v53 = vsel %vm1480_vm13, 65537, %v8078_v6  ;;  %v1549_v60 = vshll.u32 %v1494_v48, 16  ;;  %vm6926_vm4 = vmor %vm1506_vm15, %vm1507_vm0  ;;  %s5570_s27 = sshll.u32 %s4643_s28, 7 }
 0x2f2   : > { %5666 = vmatpush.bf16.msra.mxu1 %v6838_v20  ;;  %v6880_v44 = vrot.slane %v2357_v36, 7  ;;  %v2328_v55 = vrot.slane %v6878_v40, 4  ;;  %v1553_v63 = vshrl.u32 %v1494_v48, 16  ;;  %v1569_v0 = vshll.u32 %v6892_v53, 16  ;;  %v2215_v36 = vld [vmem:[#allocation2 + $0x1c] sm:$0xf]  ;;  %s4648_s7 = scalar_lea.hbm %s8401_s5, %s5570_s27 }
 0x2f3   : > { %v2344_v56 = vor.u32 %v2342_v35, %v2341_v41  ;;  %v2346_v57 = vrot.slane %v2341_v41, 4  ;;  %v1573_v11 = vshrl.u32 %v6892_v53, 16  ;;  %v6919_v35 = vld [vmem:[#allocation11 + $0x88] sm:$0xff]  ;;  %v2216_v48 = vld [vmem:[#allocation2 + $0x20] sm:$0xf]  ;;  %v8226_v53 = vmov 0 }
 0x2f4   : > { %v2362_v58 = vor.u32 %v2360_v39, %v6880_v44  ;;  %1936 = vmatpush.bf16.msra.mxu0 %v5477_v31  ;;  %5659 = vmatpush.bf16.msra.mxu3 %v5477_v31  ;;  %v2336_v5 = vsel %vm6887_vm14, %v2328_v55, %v6869_v38  ;;  %v6932_v41 = vld [vmem:[#allocation11 + $0x8] sm:$0xff]  ;;  %v1551_v55 = vrot.slane %v1549_v60, 5  ;;  %vm8082_vm13 = vsmask.f32 7424  ;;  %s4651_s8 = sshll.u32 %s4648_s7, 4  ;;  %s4652_s8 = int_to_ptr.hbm [resolvable:$true] %s4651_s8 }
 0x2f5   : > { %5675 = vmatpush.bf16.msra.mxu2 %v6860_v32  ;;  %v2345_v7 = vsel %vm6887_vm14, %v6871_v15, %v2344_v56  ;;  %v2354_v10 = vsel %vm6887_vm14, %v2346_v57, %v6869_v38  ;;  %v2465_v13 = vunpack.c.l.b16 %v2336_v5  ;;  %v2466_v23 = vunpack.c.h.b16 %v2336_v5  ;;  %v2217_v56 = vld [vmem:[#allocation2 + $0x24] sm:$0xf]  ;;  %v5507_v39 = vld [vmem:[#allocation11 + $0x108] sm:$0xff]  ;;  %s6096_s1 = sshra.s32 %s4652_s8, 4  ;;  %s6097_s1 = int_to_ptr.hbm [resolvable:$true] %s6096_s1 }
 0x2f6   : > { %5667 = vmatpush.bf16.msra.mxu1 %v6866_v4  ;;  %v2363_v12 = vsel %vm6887_vm14, %v6871_v15, %v2362_v58  ;;  %v2472_v25 = vunpack.c.l.b16 %v2345_v7  ;;  %v2473_v30 = vunpack.c.h.b16 %v2345_v7  ;;  %v2479_v31 = vunpack.c.l.b16 %v2354_v10  ;;  %s6098_s18 = scalar_lea.hbm %s6097_s1, 128  ;;  %p6103_p13 = scmp.lt.s32.totalorder %s6097_s1, %s8401_s5 }
 0x2f7   : > { %v2480_v33 = vunpack.c.h.b16 %v2354_v10  ;;  %v2486_v34 = vunpack.c.l.b16 %v2363_v12  ;;  %vm2469_vm1 = vcmp.ne.s32.totalorder %v2465_v13, %v6819_v8  ;;  %vm2470_vm2 = vcmp.ne.s32.totalorder %v2466_v23, %v6822_v9  ;;  %v5474_v13 = vld [vmem:[#allocation11 + $0x40] sm:$0xff]  ;;  %p6099_p9 = scmp.ne.s32.totalorder %s6097_s1, %s6098_s18 }
 0x2f8   : > { %1937 = vmatpush.bf16.msra.mxu0 %v5476_v59  ;;  %5660 = vmatpush.bf16.msra.mxu3 %v5476_v59  ;;  %vm2476_vm3 = vcmp.ne.s32.totalorder %v2472_v25, %v6819_v8  ;;  %v2487_v37 = vunpack.c.h.b16 %v2363_v12  ;;  %vm6934_vm5 = vmpackc.low %vm2470_vm2, %vm2469_vm1  ;;  %vm2477_vm6 = vcmp.ne.s32.totalorder %v2473_v30, %v6822_v9  ;;  %vm2483_vm7 = vcmp.ne.s32.totalorder %v2479_v31, %v6819_v8  ;;  %v6966_v31 = vld [vmem:[#allocation11 + $0x80] sm:$0xff] }
 0x2f9   : > { %5676 = vmatpush.bf16.msra.mxu2 %v6902_v2  ;;  %v8227_v53 = vsel %vm6934_vm5, 4294967295, %v8226_v53  ;;  %vm2484_vm8 = vcmp.ne.s32.totalorder %v2480_v33, %v6822_v9  ;;  %vm6941_vm9 = vmpackc.low %vm2477_vm6, %vm2476_vm3  ;;  %v8228_v57 = vmov 0  ;;  %vm2490_vm10 = vcmp.ne.s32.totalorder %v2486_v34, %v6819_v8  ;;  %p6100_p5 = pnand %p6099_p9, %p6535_p8 }
 0x2fa   : > { %5668 = vmatpush.bf16.msra.mxu1 %v6904_v3  ;;  %v8229_v57 = vsel %vm6941_vm9, 4294967295, %v8228_v57  ;;  %vm2491_vm11 = vcmp.ne.s32.totalorder %v2487_v37, %v6822_v9  ;;  %v2560_v58 = vsel %vm6934_vm5, %v2214_v29, 0  ;;  %v1555_v59 = vrot.slane %v1553_v63, 4  ;;  %vm6949_vm12 = vmpackc.low %vm2484_vm8, %vm2483_vm7 }
 0x2fb   : > { %v8230_v5 = vmov 0  ;;  %v2561_v60 = vsel %vm6941_vm9, %v2215_v36, 0  ;;  %v2610_v7 = vunpack.c.l.b16 %v2560_v58  ;;  %v1552_v10 = vsel %vm6926_vm4, %v6883_v22, %v1551_v55  ;;  %vm6958_vm15 = vmpackc.low %vm2491_vm11, %vm2490_vm10  ;;  %p6101_p11 = pneg %p6100_p5 }
 0x2fc   : > { %v8231_v5 = vsel %vm6949_vm12, 4294967295, %v8230_v5  ;;  %v1571_v12 = vrot.slane %v1569_v0, 5  ;;  %1938 = vmatpush.bf16.msra.mxu0 %v5475_v28  ;;  %5661 = vmatpush.bf16.msra.mxu3 %v5475_v28  ;;  %v8232_v23 = vmov 0  ;;  %v2562_v63 = vsel %vm6949_vm12, %v2216_v48, 0  ;;  %v5505_v0 = vld [vmem:[#allocation11 + $0xf8] sm:$0xff] }
 0x2fd   : > { %v8233_v23 = vsel %vm6958_vm15, 4294967295, %v8232_v23  ;;  %v2611_v25 = vunpack.c.l.b16 %v2561_v60  ;;  %v1556_v29 = vor.u32 %v1555_v59, %v1551_v55  ;;  %v1575_v30 = vrot.slane %v1573_v11, 4  ;;  %5677 = vmatpush.bf16.msra.mxu2 %v6919_v35  ;;  %v6973_v55 = vld [vmem:[#allocation11] sm:$0xff]  ;;  %v5458_v59 = vld [vmem:[#allocation2 + $0x8] sm:$0xff]  ;;  %v5460_v60 = vld [vmem:[#allocation2 + $0x18] sm:$0xff] }
 0x2fe   : > { %5669 = vmatpush.bf16.msra.mxu1 %v6932_v41  ;;  %v2563_v28 = vsel %vm6958_vm15, %v2217_v56, 0  ;;  %v2612_v33 = vunpack.c.l.b16 %v2562_v63  ;;  %v1572_v34 = vsel %vm6926_vm4, %v6883_v22, %v1571_v12  ;;  %v1696_v36 = vunpack.c.l.b16 %v1552_v10 }
 0x2ff   : > { %v2613_v37 = vunpack.c.l.b16 %v2563_v28  ;;  %v2625_v48 = vpack.c.b16 %v2611_v25, %v2610_v7  ;;  %v1557_v11 = vrot.slane %v1556_v29, 4  ;;  %v1576_v58 = vor.u32 %v1575_v30, %v1571_v12  ;;  %v1429_v7 = vld [vmem:[#allocation2 + $0x14] sm:$0xf] }
 0x300   : > { %v1697_v6 = vunpack.c.h.b16 %v1552_v10  ;;  %vm6976_vm0 = vcmp.ne.s32.totalorder %v1696_v36, %v6819_v8  ;;  %v1710_v56 = vunpack.c.l.b16 %v1572_v34  ;;  %v1711_v63 = vunpack.c.h.b16 %v1572_v34  ;;  %1939 = vmatpush.bf16.msra.mxu0 %v5474_v13  ;;  %5662 = vmatpush.bf16.msra.mxu3 %v5474_v13  ;;  %v5504_v30 = vld [vmem:[#allocation11 + $0xf0] sm:$0xff]  ;;  %v1430_v34 = vld [vmem:[#allocation2 + $0x18] sm:$0xf]  ;;  %v1431_v36 = vld [vmem:[#allocation2 + $0x1c] sm:$0xf] }
 0x301   : > { %v2626_v19 = vpack.c.b16 %v2613_v37, %v2612_v33  ;;  %v2649_v47 = vshll.u32 %v2625_v48, 16  ;;  %v2653_v28 = vshrl.u32 %v2625_v48, 16  ;;  %v1562_v12 = vsel %vm6926_vm4, %v1557_v11, %v6857_v27  ;;  %5678 = vmatpush.bf16.msra.mxu2 %v6966_v31  ;;  %v2829_v37 = vld [vmem:[#allocation2 + $0x28] sm:$0xf] }
 0x302   : > { %v1577_v10 = vrot.slane %v1576_v58, 4  ;;  %vm1701_vm1 = vcmp.ne.s32.totalorder %v1697_v6, %v6822_v9  ;;  %v1703_v25 = vunpack.c.l.b16 %v1562_v12  ;;  %v1704_v29 = vunpack.c.h.b16 %v1562_v12  ;;  %5670 = vmatpush.bf16.msra.mxu1 %v6973_v55 }
 0x303   : > { %v6986_v13 = vrot.slane %v2649_v47, 1  ;;  %v2657_v33 = vshll.u32 %v2626_v19, 16  ;;  %vm6991_vm2 = vmpackc.low %vm1701_vm1, %vm6976_vm0  ;;  %vm1714_vm3 = vcmp.ne.s32.totalorder %v1710_v56, %v6819_v8  ;;  %vm1715_vm6 = vcmp.ne.s32.totalorder %v1711_v63, %v6822_v9  ;;  %1940 = vmatmul.bf16.vlgmr.msra.gmra.mxu0 %v5458_v59  ;;  %1950 = vmatmul.bf16.vlgmr.msra.gmra.mxu3 %v5460_v60  ;;  %v1432_v59 = vld [vmem:[#allocation2 + $0x20] sm:$0xf] }
 0x304   : > { %3051 = vmatpush.bf16.msrb.mxu3 %v5505_v0  ;;  %2161 = vmatpush.bf16.msrb.mxu0 %v6781_v49  ;;  %v1582_v47 = vsel %vm6926_vm4, %v1577_v10, %v6857_v27  ;;  %vm1707_vm7 = vcmp.ne.s32.totalorder %v1703_v25, %v6819_v8  ;;  %vm1708_vm8 = vcmp.ne.s32.totalorder %v1704_v29, %v6822_v9  ;;  %vm7002_vm10 = vmpackc.low %vm1715_vm6, %vm1714_vm3  ;;  %v8238_v49 = vmov 0 }
 0x305   : > { %v8239_v49 = vsel %vm7002_vm10, 4294967295, %v8238_v49  ;;  %v1791_v6 = vsel %vm6991_vm2, %v1429_v7, 0  ;;  %v2655_v26 = vor.u32 %v2653_v28, %v6986_v13  ;;  %v2659_v0 = vrot.slane %v2657_v33, 1  ;;  %vm7009_vm11 = vmpackc.low %vm1708_vm8, %vm1707_vm7 }
 0x306   : > { %v8240_v48 = vmov 0  ;;  %v1717_v11 = vunpack.c.l.b16 %v1582_v47  ;;  %v1718_v58 = vunpack.c.h.b16 %v1582_v47  ;;  %v1792_v60 = vsel %vm7009_vm11, %v1430_v34, 0  ;;  %v5503_v34 = vld [vmem:[#allocation11 + $0xe8] sm:$0xff] }
 0x307   : > { %v8241_v48 = vsel %vm7009_vm11, 4294967295, %v8240_v48  ;;  %v1793_v56 = vsel %vm7002_vm10, %v1431_v36, 0  ;;  %v2002_v63 = vunpack.c.l.b16 %v1791_v6  ;;  %v8242_v7 = vand.u32 15, %v6803_v1 }
 0x308   : > { %3052 = vmatpush.bf16.msrb.mxu3 %v5504_v30  ;;  %v2660_v28 = vsel %vm8082_vm13, %v2655_v26, %v2659_v0  ;;  %2162 = vmatpush.bf16.msrb.mxu0 %v6789_v51  ;;  %vm1721_vm1 = vcmp.ne.s32.totalorder %v1717_v11, %v6819_v8  ;;  %vm1722_vm3 = vcmp.ne.s32.totalorder %v1718_v58, %v6822_v9  ;;  %v2003_v12 = vunpack.c.l.b16 %v1792_v60 }
 0x309   : > { %vm1418_vm0 = vcmp.ne.s32.totalorder %v8242_v7, 15  ;;  %2775 = vmatmul.bf16.vlgmr.msra.gmra.mxu2 %v2660_v28  ;;  %vm7023_vm7 = vmpackc.low %vm1722_vm3, %vm1721_vm1  ;;  %v8243_v10 = vmov 0  ;;  %v2004_v25 = vunpack.c.l.b16 %v1793_v56  ;;  %v8245_v29 = vmov 0  }
 0x30a   : > { %vm2268_vm6 = vmpackc.low %vm1418_vm0, %vm1418_vm0  ;;  %v8244_v10 = vsel %vm7023_vm7, 4294967295, %v8243_v10  ;;  %v2364_v1 = vrot.slane %v6880_v44, 4  ;;  %v2661_v33 = vshrl.u32 %v2626_v19, 16  ;;  %v1794_v51 = vsel %vm7023_vm7, %v1432_v59, 0 }
 0x30b   : > { %v2284_v30 = vsel %vm2268_vm6, 65537, %v8245_v29  ;;  %v2017_v36 = vpack.c.b16 %v2003_v12, %v2002_v63  ;;  %vm8087_vm8 = vsmask.f32 4352  ;;  %v2005_v26 = vunpack.c.l.b16 %v1794_v51 }
 0x30c   : > { %v2375_v47 = vshrl.u32 %v2284_v30, 16  ;;  %v2378_v6 = vshll.u32 %v2284_v30, 16  ;;  %v2372_v11 = vsel %vm6887_vm14, %v2364_v1, %v6869_v38  ;;  %v7034_v58 = vor.u32 %v2661_v33, %v2659_v0  ;;  %3053 = vmatpush.bf16.msrb.mxu3 %v5503_v34  ;;  %2163 = vmatpush.bf16.msrb.mxu0 %v6800_v62  ;;  %v2218_v33 = vld [vmem:[#allocation2 + $0x28] sm:$0xf] }
 0x30d   : > { %v1261_v60 = vand.u32 15, %v6895_v54  ;;  %v2043_v44 = vshrl.u32 %v2017_v36, 16  ;;  %v2046_v19 = vshll.u32 %v2017_v36, 16  ;;  %v2493_v59 = vunpack.c.l.b16 %v2372_v11 }
 0x30e   : > { %v7038_v56 = vrot.slane %v2375_v47, 7  ;;  %v2018_v63 = vpack.c.b16 %v2005_v26, %v2004_v25  ;;  %v2494_v7 = vunpack.c.h.b16 %v2372_v11  ;;  %v1187_v28 = vadd.s32 16, %v6783_v24  ;;  %v5459_v11 = vld [vmem:[#allocation2 + $0x10] sm:$0xff] }
 0x30f   : > { %vm1401_vm0 = vcmp.ne.s32.totalorder %v1261_v60, 0  ;;  %v2045_v12 = vrot.slane %v2043_v44, 3  ;;  %v2048_v30 = vrot.slane %v2046_v19, 4  ;;  %vm2497_vm1 = vcmp.ne.s32.totalorder %v2493_v59, %v6819_v8  ;;  %v5461_v60 = vld [vmem:[#allocation2 + $0x20] sm:$0xff]  ;;  %v2219_v59 = vld [vmem:[#allocation2 + $0x2c] sm:$0xf] }
 0x310   : > { %v2380_v0 = vor.u32 %v2378_v6, %v7038_v56  ;;  %vm1482_vm3 = vmpackc.low %vm1401_vm0, %vm1401_vm0  ;;  %v2052_v54 = vshrl.u32 %v2018_v63, 16  ;;  %v2055_v1 = vshll.u32 %v2018_v63, 16  ;;  %vm2498_vm6 = vcmp.ne.s32.totalorder %v2494_v7, %v6822_v9  ;;  %2164 = vmatpush.bf16.msrb.mxu0 %v6838_v20 }
 0x311   : > { %v1498_v62 = vsel %vm1482_vm3, 65537, %v8245_v29  ;;  %v7045_v34 = vor.u32 %v2048_v30, %v2045_v12  ;;  %vm7051_vm13 = vmpackc.low %vm2498_vm6, %vm2497_vm1  ;;  %v8246_v51 = vmov 0  ;;  %v1205_v12 = vand.u32 15, %v6783_v24 }
 0x312   : > { %v2381_v25 = vsel %vm6887_vm14, %v6871_v15, %v2380_v0  ;;  %v8247_v51 = vsel %vm7051_vm13, 4294967295, %v8246_v51  ;;  %v1589_v36 = vshll.u32 %v1498_v62, 16  ;;  %v1593_v47 = vshrl.u32 %v1498_v62, 16 }
 0x313   : > { %v2054_v6 = vrot.slane %v2052_v54, 3  ;;  %v2057_v26 = vrot.slane %v2055_v1, 4  ;;  %v2500_v44 = vunpack.c.l.b16 %v2381_v25  ;;  %v2501_v19 = vunpack.c.h.b16 %v2381_v25  ;;  %1945 = vmatmul.bf16.gmra.mxu0 %v5459_v11  ;;  %1955 = vmatmul.bf16.gmra.mxu3 %v5461_v60 }
 0x314   : > { %v2564_v20 = vsel %vm7051_vm13, %v2218_v33, 0  ;;  %v1591_v63 = vrot.slane %v1589_v36, 5  ;;  %v1595_v7 = vrot.slane %v1593_v47, 4  ;;  %2165 = vmatpush.bf16.msrb.mxu0 %v6866_v4  ;;  %v8248_v54 = vmov 0 }
 0x315   : > { %v7058_v30 = vor.u32 %v2057_v26, %v2054_v6  ;;  %vm2504_vm0 = vcmp.ne.s32.totalorder %v2500_v44, %v6819_v8  ;;  %vm2505_vm1 = vcmp.ne.s32.totalorder %v2501_v19, %v6822_v9  ;;  %v2614_v0 = vunpack.c.l.b16 %v2564_v20  ;;  %v1433_v26 = vld [vmem:[#allocation2 + $0x24] sm:$0xf] }
 0x316   : > { %vm7063_vm3 = vmpackc.low %vm2505_vm1, %vm2504_vm0  ;;  %v1592_v1 = vsel %vm6926_vm4, %v6883_v22, %v1591_v63  ;;  %v1596_v33 = vor.u32 %v1595_v7, %v1591_v63  ;;  %v1219_v62 = vand.u32 15, %v1187_v28  ;;  %vm1393_vm6 = vcmp.ne.s32.totalorder %v1205_v12, 0 }
 0x317   : > { %v8249_v54 = vsel %vm7063_vm3, 4294967295, %v8248_v54  ;;  %v2059_v25 = vsel %vm8087_vm8, %v7045_v34, %v7058_v30  ;;  %v2565_v4 = vsel %vm7063_vm3, %v2219_v59, 0  ;;  %v1724_v36 = vunpack.c.l.b16 %v1592_v1  ;;  %vm1474_vm0 = vmpackc.low %vm1393_vm6, %vm1393_vm6 }
 0x318   : > { %v1725_v47 = vunpack.c.h.b16 %v1592_v1  ;;  %2179 = vmatmul.bf16.vlgmr.msra.gmra.mxu1 %v2059_v25  ;;  %v2615_v6 = vunpack.c.l.b16 %v2565_v4  ;;  %v1597_v44 = vrot.slane %v1596_v33, 4  ;;  %vm1395_vm1 = vcmp.ne.s32.totalorder %v1219_v62, 0  ;;  %2166 = vmatpush.bf16.msrb.mxu0 %v6904_v3  ;;  %v1434_v62 = vld [vmem:[#allocation2 + $0x28] sm:$0xf] }
 0x319   : > { %v1490_v28 = vsel %vm1474_vm0, 65537, %v8245_v29  ;;  %vm1728_vm13 = vcmp.ne.s32.totalorder %v1724_v36, %v6819_v8  ;;  %vm1476_vm8 = vmpackc.low %vm1395_vm1, %vm1395_vm1  ;;  %v8250_v20 = vmov 0  ;;  %v1196_v7 = vadd.s32 88, %v6783_v24 }
 0x31a   : > { %vm1729_vm15 = vcmp.ne.s32.totalorder %v1725_v47, %v6822_v9  ;;  %v1510_v11 = vshll.u32 %v1490_v28, 16  ;;  %v1513_v60 = vshrl.u32 %v1490_v28, 16  ;;  %v7078_v19 = vpack.c.b16 %v2615_v6, %v2614_v0 }
 0x31b   : > { %v1602_v59 = vsel %vm6926_vm4, %v1597_v44, %v6857_v27  ;;  %vm7084_vm6 = vmpackc.low %vm1729_vm15, %vm1728_vm13  ;;  %v1492_v63 = vsel %vm1476_vm8, 65537, %v8245_v29  ;;  %v8252_v28 = vmov 0  ;;  %vm8256_vm1 = vsmask.f32 7424 }
 0x31c   : > { %v8251_v20 = vsel %vm7084_vm6, 4294967295, %v8250_v20  ;;  %v1731_v12 = vunpack.c.l.b16 %v1602_v59  ;;  %v1732_v1 = vunpack.c.h.b16 %v1602_v59  ;;  %v1795_v0 = vsel %vm7084_vm6, %v1433_v26, 0  ;;  %2167 = vmatpush.bf16.msrb.mxu0 %v6932_v41 }
 0x31d   : > { %v1512_v33 = vrot.slane %v1510_v11, 5  ;;  %v2665_v3 = vshll.u32 %v7078_v19, 16  ;;  %v2006_v25 = vunpack.c.l.b16 %v1795_v0  ;;  %v1515_v4 = vrot.slane %v1513_v60, 4  ;;  %v5502_v0 = vld [vmem:[#allocation11 + $0xe0] sm:$0xff] }
 0x31e   : > { %v1529_v36 = vshll.u32 %v1492_v63, 16  ;;  %vm1735_vm13 = vcmp.ne.s32.totalorder %v1731_v12, %v6819_v8  ;;  %vm1736_vm15 = vcmp.ne.s32.totalorder %v1732_v1, %v6822_v9  ;;  %v1533_v47 = vshrl.u32 %v1492_v63, 16  ;;  %3054 = vmatpush.bf16.msrb.mxu3 %v5502_v0  ;;  %v1427_v63 = vld [vmem:[#allocation2 + $0xc] sm:$0xf] }
 0x31f   : > { %v1668_v6 = vunpack.c.l.b16 %v1512_v33  ;;  %v7095_v44 = vrot.slane %v2665_v3, 1  ;;  %vm7097_vm8 = vmpackc.low %vm1736_vm15, %vm1735_vm13  ;;  %v1516_v26 = vor.u32 %v1515_v4, %v1512_v33  ;;  %v1669_v59 = vunpack.c.h.b16 %v1512_v33 }
 0x320   : > { %v8253_v28 = vsel %vm7097_vm8, 4294967295, %v8252_v28  ;;  %v1531_v11 = vrot.slane %v1529_v36, 5  ;;  %v1796_v60 = vsel %vm7097_vm8, %v1434_v62, 0  ;;  %v1535_v12 = vrot.slane %v1533_v47, 4  ;;  %v1425_v62 = vld [vmem:[#allocation2 + $0x4] sm:$0x8]  ;;  %2168 = vmatpush.bf16.msrb.mxu0 %v6973_v55 }
 0x321   : > { %vm7105_vm0 = vcmp.ne.s32.totalorder %v1668_v6, %v6819_v8  ;;  %v1282_v1 = vand.u32 15, %v1196_v7  ;;  %v2668_v3 = vsel %vm8256_vm1, %v7034_v58, %v7095_v44  ;;  %v2007_v18 = vunpack.c.l.b16 %v1796_v60 }
 0x322   : > { %v1517_v41 = vrot.slane %v1516_v26, 4  ;;  %v1532_v33 = vsel %vm6926_vm4, %v6883_v22, %v1531_v11  ;;  %2780 = vmatmul.bf16.gmra.mxu2 %v2668_v3  ;;  %v1536_v4 = vor.u32 %v1535_v12, %v1531_v11  ;;  %vm1673_vm13 = vcmp.ne.s32.totalorder %v1669_v59, %v6822_v9  ;;  %v5462_v59 = vld [vmem:[#allocation2 + $0x28] sm:$0xff] }
 0x323   : > { %v1682_v36 = vunpack.c.l.b16 %v1532_v33  ;;  %v1683_v47 = vunpack.c.h.b16 %v1532_v33  ;;  %v2019_v6 = vpack.c.b16 %v2007_v18, %v2006_v25  ;;  %vm7122_vm15 = vmpackc.low %vm1673_vm13, %vm7105_vm0  ;;  %vm7126_vm1 = vcmp.ne.s32.totalorder %v1282_v1, 15  ;;  %v1426_v18 = vld [vmem:[#allocation2 + $0x8] sm:$0xf]  ;;  %1960 = vmatmul.bf16.gmra.mxu3 %v5462_v59 }
 0x324   : > { %v1522_v58 = vsel %vm6926_vm4, %v1517_v41, %v6857_v27  ;;  %v2382_v11 = vrot.slane %v7038_v56, 4  ;;  %v1537_v25 = vrot.slane %v1536_v4, 4  ;;  %2757 = vmatpush.bf16.msra.mxu0 %v6779_v45  ;;  %v1787_v1 = vsel %vm7122_vm15, %v1425_v62, 0  ;;  %vm2270_vm13 = vmpackc.low %vm7126_vm1, %vm7126_vm1  ;;  %v5515_v62 = vld [vmem:[#allocation11 + $0x148] sm:$0xff] }
 0x325   : > { %v1675_v55 = vunpack.c.l.b16 %v1522_v58  ;;  %v1676_v0 = vunpack.c.h.b16 %v1522_v58  ;;  %vm1686_vm3 = vcmp.ne.s32.totalorder %v1682_v36, %v6819_v8  ;;  %v2061_v60 = vshrl.u32 %v2019_v6, 16 }
 0x326   : > { %v2064_v12 = vshll.u32 %v2019_v6, 16  ;;  %vm1687_vm0 = vcmp.ne.s32.totalorder %v1683_v47, %v6822_v9  ;;  %v1542_v56 = vsel %vm6926_vm4, %v1537_v25, %v6857_v27  ;;  %v1998_v3 = vunpack.c.l.b16 %v1787_v1  ;;  %v1428_v47 = vld [vmem:[#allocation2 + $0x10] sm:$0xf] }
 0x327   : > { %vm1679_vm12 = vcmp.ne.s32.totalorder %v1675_v55, %v6819_v8  ;;  %vm1680_vm8 = vcmp.ne.s32.totalorder %v1676_v0, %v6822_v9  ;;  %vm7144_vm6 = vmpackc.low %vm1687_vm0, %vm1686_vm3  ;;  %v2063_v41 = vrot.slane %v2061_v60, 3  ;;  %v1689_v4 = vunpack.c.l.b16 %v1542_v56 }
 0x328   : > { %v2066_v33 = vrot.slane %v2064_v12, 4  ;;  %vm7148_vm9 = vmpackc.low %vm1680_vm8, %vm1679_vm12  ;;  %v1690_v36 = vunpack.c.h.b16 %v1542_v56  ;;  %v1789_v58 = vsel %vm7144_vm6, %v1427_v63, 0  ;;  %v2286_v26 = vsel %vm2270_vm13, 65537, %v8245_v29  ;;  %2758 = vmatpush.bf16.msra.mxu0 %v6787_v50 }
 0x329   : > { %v1788_v6 = vsel %vm7148_vm9, %v1426_v18, 0  ;;  %v2390_v25 = vsel %vm6887_vm14, %v2382_v11, %v6869_v38  ;;  %vm1693_vm12 = vcmp.ne.s32.totalorder %v1689_v4, %v6819_v8  ;;  %v2000_v0 = vunpack.c.l.b16 %v1789_v58 }
 0x32a   : > { %v7161_v55 = vor.u32 %v2066_v33, %v2063_v41  ;;  %vm1694_vm3 = vcmp.ne.s32.totalorder %v1690_v36, %v6822_v9  ;;  %v1999_v59 = vunpack.c.l.b16 %v1788_v6  ;;  %v2393_v60 = vshrl.u32 %v2286_v26, 16  ;;  %v2220_v33 = vld [vmem:[#allocation2 + $0x30] sm:$0xf] }
 0x32b   : > { %vm7165_vm8 = vmpackc.low %vm1694_vm3, %vm1693_vm12  ;;  %v2396_v12 = vshll.u32 %v2286_v26, 16  ;;  %v2507_v63 = vunpack.c.l.b16 %v2390_v25  ;;  %vm8267_vm1 = vsmask.f32 4352  ;;  %v2508_v56 = vunpack.c.h.b16 %v2390_v25  ;;  %v5501_v26 = vld [vmem:[#allocation11 + $0xd8] sm:$0xff] }
 0x32c   : > { %v2068_v11 = vsel %vm8267_vm1, %v7058_v30, %v7161_v55  ;;  %v1790_v50 = vsel %vm7165_vm8, %v1428_v47, 0  ;;  %v2015_v1 = vpack.c.b16 %v1999_v59, %v1998_v3  ;;  %v2395_v4 = vrot.slane %v2393_v60, 7  ;;  %2759 = vmatpush.bf16.msra.mxu0 %v6798_v61  ;;  %3055 = vmatpush.bf16.msrb.mxu3 %v5501_v26 }
 0x32d   : > { %2184 = vmatmul.bf16.gmra.mxu1 %v2068_v11  ;;  %v2001_v41 = vunpack.c.l.b16 %v1790_v50  ;;  %vm2511_vm0 = vcmp.ne.s32.totalorder %v2507_v63, %v6819_v8  ;;  %v2669_v36 = vshrl.u32 %v7078_v19, 16  ;;  %vm2512_vm13 = vcmp.ne.s32.totalorder %v2508_v56, %v6822_v9 }
 0x32e   : > { %v2026_v6 = vshrl.u32 %v2015_v1, 16  ;;  %v2029_v58 = vshll.u32 %v2015_v1, 16  ;;  %v1195_v30 = vadd.s32 80, %v6783_v24  ;;  %v2398_v3 = vor.u32 %v2396_v12, %v2395_v4  ;;  %vm7179_vm12 = vmpackc.low %vm2512_vm13, %vm2511_vm0 }
 0x32f   : > { %v2016_v47 = vpack.c.b16 %v2001_v41, %v2000_v0  ;;  %v8268_v25 = vmov 0  ;;  %v7184_v59 = vor.u32 %v2669_v36, %v7095_v44  ;;  %v1198_v19 = vadd.s32 104, %v6783_v24 }
 0x330   : > { %v8269_v25 = vsel %vm7179_vm12, 4294967295, %v8268_v25  ;;  %v2028_v60 = vrot.slane %v2026_v6, 3  ;;  %v2031_v61 = vrot.slane %v2029_v58, 4  ;;  %v2566_v63 = vsel %vm7179_vm12, %v2220_v33, 0  ;;  %2760 = vmatpush.bf16.msra.mxu0 %v6836_v14  ;;  %v2221_v58 = vld [vmem:[#allocation2 + $0x34] sm:$0xf] }
 0x331   : > { %v1275_v11 = vand.u32 15, %v1195_v30  ;;  %v2034_v50 = vshrl.u32 %v2016_v47, 16  ;;  %v2037_v1 = vshll.u32 %v2016_v47, 16  ;;  %v2399_v0 = vsel %vm6887_vm14, %v6871_v15, %v2398_v3 }
 0x332   : > { %v2616_v12 = vunpack.c.l.b16 %v2566_v63  ;;  %v2032_v44 = vor.u32 %v2031_v61, %v2028_v60  ;;  %v2514_v56 = vunpack.c.l.b16 %v2399_v0  ;;  %v2515_v41 = vunpack.c.h.b16 %v2399_v0  ;;  %v5463_v63 = vld [vmem:[#allocation2 + $0x30] sm:$0xff] }
 0x333   : > { %vm1403_vm3 = vcmp.ne.s32.totalorder %v1275_v11, 0  ;;  %v2036_v36 = vrot.slane %v2034_v50, 3  ;;  %v2039_v6 = vrot.slane %v2037_v1, 4  ;;  %v1296_v33 = vand.u32 15, %v1198_v19  ;;  %1965 = vmatmul.bf16.gmra.mxu3 %v5463_v63 }
 0x334   : > { %vm1484_vm1 = vmpackc.low %vm1403_vm3, %vm1403_vm3  ;;  %v2400_v30 = vrot.slane %v2395_v4, 4  ;;  %vm2518_vm0 = vcmp.ne.s32.totalorder %v2514_v56, %v6819_v8  ;;  %vm2519_vm13 = vcmp.ne.s32.totalorder %v2515_v41, %v6822_v9  ;;  %v1197_v47 = vadd.s32 96, %v6783_v24  ;;  %2761 = vmatpush.bf16.msra.mxu0 %v6860_v32 }
 0x335   : > { %v1500_v26 = vsel %vm1484_vm1, 65537, %v8245_v29  ;;  %v2040_v3 = vor.u32 %v2039_v6, %v2036_v36  ;;  %vm7197_vm12 = vmpackc.low %vm2519_vm13, %vm2518_vm0  ;;  %v8270_v14 = vmov 0  ;;  %vm1422_vm3 = vcmp.ne.s32.totalorder %v1296_v33, 15 }
 0x336   : > { %v8271_v14 = vsel %vm7197_vm12, 4294967295, %v8270_v14  ;;  %v1609_v60 = vshll.u32 %v1500_v26, 16  ;;  %v1613_v61 = vshrl.u32 %v1500_v26, 16  ;;  %v2567_v4 = vsel %vm7197_vm12, %v2221_v58, 0  ;;  %vm2272_vm5 = vmpackc.low %vm1422_vm3, %vm1422_vm3 }
 0x337   : > { %v2408_v19 = vsel %vm6887_vm14, %v2400_v30, %v6869_v38  ;;  %v1289_v11 = vand.u32 15, %v1197_v47  ;;  %v7208_v50 = vadd.s32 8, %v6783_v24  ;;  %vm8272_vm1 = vsmask.f32 4352 }
 0x338   : > { %v2041_v1 = vsel %vm8272_vm1, %v2032_v44, %v2040_v3  ;;  %v2617_v0 = vunpack.c.l.b16 %v2567_v4  ;;  %v1611_v56 = vrot.slane %v1609_v60, 5  ;;  %v1615_v41 = vrot.slane %v1613_v61, 4  ;;  %vm8273_vm0 = vmmov %vm8272_vm1  ;;  %2762 = vmatpush.bf16.msra.mxu0 %v6902_v2  ;;  %v2222_v61 = vld [vmem:[#allocation2 + $0x38] sm:$0xf] }
 0x339   : > { %2169 = vmatmul.bf16.vlgmr.msrb.gmra.mxu0 %v2041_v1  ;;  %v7213_v32 = vsel %vm8273_vm0, %v2040_v3, %v7045_v34  ;;  %v2288_v36 = vsel %vm2272_vm5, 65537, %v8245_v29  ;;  %v2521_v6 = vunpack.c.l.b16 %v2408_v19  ;;  %v2522_v58 = vunpack.c.h.b16 %v2408_v19  ;;  %v1435_v3 = vld [vmem:[#allocation2 + $0x2c] sm:$0xf] }
 0x33a   : > { %v2628_v33 = vpack.c.b16 %v2617_v0, %v2616_v12  ;;  %v1612_v30 = vsel %vm6926_vm4, %v6883_v22, %v1611_v56  ;;  %v1616_v26 = vor.u32 %v1615_v41, %v1611_v56  ;;  %v2411_v44 = vshrl.u32 %v2288_v36, 16 }
 0x33b   : > { %v1738_v47 = vunpack.c.l.b16 %v1612_v30  ;;  %v1739_v60 = vunpack.c.h.b16 %v1612_v30  ;;  %v2414_v4 = vshll.u32 %v2288_v36, 16  ;;  %vm2525_vm13 = vcmp.ne.s32.totalorder %v2521_v6, %v6819_v8 }
 0x33c   : > { %v2673_v34 = vshll.u32 %v2628_v33, 16  ;;  %v1617_v1 = vrot.slane %v1616_v26, 4  ;;  %v7221_v19 = vrot.slane %v2411_v44, 7  ;;  %vm2526_vm5 = vcmp.ne.s32.totalorder %v2522_v58, %v6822_v9  ;;  %2763 = vmatpush.bf16.msra.mxu0 %v6919_v35  ;;  %v5500_v26 = vld [vmem:[#allocation11 + $0xd0] sm:$0xff] }
 0x33d   : > { %vm1742_vm3 = vcmp.ne.s32.totalorder %v1738_v47, %v6819_v8  ;;  %vm1743_vm1 = vcmp.ne.s32.totalorder %v1739_v60, %v6822_v9  ;;  %vm7226_vm0 = vmpackc.low %vm2526_vm5, %vm2525_vm13  ;;  %v8274_v12 = vmov 0  ;;  %v2677_v2 = vshrl.u32 %v2628_v33, 16  ;;  %v1436_v47 = vld [vmem:[#allocation2 + $0x30] sm:$0xf]  ;;  %3056 = vmatpush.bf16.msrb.mxu3 %v5500_v26 }
 0x33e   : > { %v8275_v12 = vsel %vm7226_vm0, 4294967295, %v8274_v12  ;;  %vm7230_vm12 = vcmp.ne.s32.totalorder %v1289_v11, 0  ;;  %v2675_v0 = vrot.slane %v2673_v34, 1  ;;  %v1622_v56 = vsel %vm6926_vm4, %v1617_v1, %v6857_v27  ;;  %vm7237_vm7 = vmpackc.low %vm1743_vm1, %vm1742_vm3 }
 0x33f   : > { %v8278_v41 = vmov 0  ;;  %v2416_v36 = vor.u32 %v2414_v4, %v7221_v19  ;;  %v2568_v6 = vsel %vm7226_vm0, %v2222_v61, 0  ;;  %v1745_v11 = vunpack.c.l.b16 %v1622_v56  ;;  %v5513_v4 = vld [vmem:[#allocation11 + $0x138] sm:$0xff] }
 0x340   : > { %v8279_v41 = vsel %vm7237_vm7, 4294967295, %v8278_v41  ;;  %v1746_v58 = vunpack.c.h.b16 %v1622_v56  ;;  %v1797_v33 = vsel %vm7237_vm7, %v1435_v3, 0  ;;  %v2618_v30 = vunpack.c.l.b16 %v2568_v6  ;;  %2764 = vmatpush.bf16.msra.mxu0 %v6966_v31 }
 0x341   : > { %vm8280_vm5 = vsmask.f32 7424  ;;  %v2008_v60 = vunpack.c.l.b16 %v1797_v33  ;;  %v2417_v35 = vsel %vm6887_vm14, %v6871_v15, %v2416_v36  ;;  %v7255_v61 = vor.u32 %v2677_v2, %v2675_v0 }
 0x342   : > { %v2676_v44 = vsel %vm8280_vm5, %v7184_v59, %v2675_v0  ;;  %vm1749_vm3 = vcmp.ne.s32.totalorder %v1745_v11, %v6819_v8  ;;  %vm1750_vm1 = vcmp.ne.s32.totalorder %v1746_v58, %v6822_v9  ;;  %v2528_v34 = vunpack.c.l.b16 %v2417_v35  ;;  %v2223_v59 = vld [vmem:[#allocation2 + $0x3c] sm:$0xf]  ;;  %vm8283_vm5 = vmpackc.low %vm7230_vm12, %vm7230_vm12 }
 0x343   : > { %2785 = vmatmul.bf16.gmra.mxu2 %v2676_v44  ;;  %v2529_v3 = vunpack.c.h.b16 %v2417_v35  ;;  %vm7259_vm13 = vmpackc.low %vm1750_vm1, %vm1749_vm3  ;;  %v8281_v1 = vmov 0  ;;  %v1502_v2 = vsel %vm8283_vm5, 65537, %v8245_v29  ;;  %v1212_v0 = vand.u32 15, %v7208_v50 }
 0x344   : > { %v8282_v1 = vsel %vm7259_vm13, 4294967295, %v8281_v1  ;;  %v2324_v56 = vshll.u32 %v6849_v21, 16  ;;  %v2437_v36 = vunpack.c.l.b16 %v6869_v38  ;;  %v1798_v6 = vsel %vm7259_vm13, %v1436_v47, 0  ;;  %3228 = vmatpush.bf16.msrb.mxu0 %v5513_v4 }
 0x345   : > { %vm2532_vm3 = vcmp.ne.s32.totalorder %v2528_v34, %v6819_v8  ;;  %vm2533_vm1 = vcmp.ne.s32.totalorder %v2529_v3, %v6822_v9  ;;  %v1629_v11 = vshll.u32 %v1502_v2, 16  ;;  %v2009_v63 = vunpack.c.l.b16 %v1798_v6  ;;  %v5464_v34 = vld [vmem:[#allocation2 + $0x38] sm:$0xff] }
 0x346   : > { %vm7277_vm12 = vmpackc.low %vm2533_vm1, %vm2532_vm3  ;;  %v8284_v58 = vmov 0  ;;  %v1633_v31 = vshrl.u32 %v1502_v2, 16  ;;  %vm1410_vm5 = vcmp.ne.s32.totalorder %v1212_v0, 15  ;;  %v2326_v21 = vor.u32 %v2324_v56, %v6878_v40  ;;  %1970 = vmatmul.bf16.gmra.mxu3 %v5464_v34 }
 0x347   : > { %v8285_v58 = vsel %vm7277_vm12, 4294967295, %v8284_v58  ;;  %v2569_v50 = vsel %vm7277_vm12, %v2223_v59, 0  ;;  %v1631_v33 = vrot.slane %v1629_v11, 5  ;;  %vm2260_vm0 = vmpackc.low %vm1410_vm5, %vm1410_vm5  ;;  %v2438_v26 = vunpack.c.h.b16 %v6869_v38 }
 0x348   : > { %vm7286_vm13 = vcmp.ne.s32.totalorder %v2437_v36, %v6819_v8  ;;  %v2020_v47 = vpack.c.b16 %v2009_v63, %v2008_v60  ;;  %v2619_v35 = vunpack.c.l.b16 %v2569_v50  ;;  %v1635_v4 = vrot.slane %v1633_v31, 4 }
 0x349   : > { %v2276_v3 = vsel %vm2260_vm0, 65537, %v8245_v29  ;;  %v1632_v40 = vsel %vm6926_vm4, %v6883_v22, %v1631_v33  ;;  %v2327_v0 = vsel %vm6887_vm14, %v6871_v15, %v2326_v21  ;;  %2174 = vmatmul.bf16.gmra.mxu0 %v7213_v32  ;;  %vm7301_vm0 = vcmp.ne.s32.totalorder %v2438_v26, %v6822_v9  ;;  %v1437_v21 = vld [vmem:[#allocation2 + $0x34] sm:$0xf] }
 0x34a   : > { %v2303_v59 = vshrl.u32 %v2276_v3, 16  ;;  %v2306_v2 = vshll.u32 %v2276_v3, 16  ;;  %v2070_v56 = vshrl.u32 %v2020_v47, 16  ;;  %v2073_v36 = vshll.u32 %v2020_v47, 16 }
 0x34b   : > { %v7297_v6 = vpack.c.b16 %v2619_v35, %v2618_v30  ;;  %v1636_v60 = vor.u32 %v1635_v4, %v1631_v33  ;;  %v1752_v11 = vunpack.c.l.b16 %v1632_v40  ;;  %v1753_v63 = vunpack.c.h.b16 %v1632_v40 }
 0x34c   : > { %v2305_v31 = vrot.slane %v2303_v59, 7  ;;  %v2072_v3 = vrot.slane %v2070_v56, 3  ;;  %v2075_v46 = vrot.slane %v2073_v36, 4  ;;  %v8290_v35 = vmov 0  ;;  %v2210_v36 = vld [vmem:[#allocation2 + $0x8] sm:$0xf] }
 0x34d   : > { %v2681_v17 = vshll.u32 %v7297_v6, 16  ;;  %v1637_v43 = vrot.slane %v1636_v60, 4  ;;  %vm1756_vm3 = vcmp.ne.s32.totalorder %v1752_v11, %v6819_v8  ;;  %vm1757_vm1 = vcmp.ne.s32.totalorder %v1753_v63, %v6822_v9  ;;  %v5512_v63 = vld [vmem:[#allocation11 + $0x130] sm:$0xff] }
 0x34e   : > { %v2308_v32 = vor.u32 %v2306_v2, %v2305_v31  ;;  %v2310_v30 = vrot.slane %v2305_v31, 4  ;;  %v7308_v33 = vor.u32 %v2075_v46, %v2072_v3  ;;  %vm7315_vm5 = vmpackc.low %vm1757_vm1, %vm1756_vm3  ;;  %v2458_v4 = vunpack.c.l.b16 %v2327_v0  ;;  %v1438_v2 = vld [vmem:[#allocation2 + $0x38] sm:$0xf]  ;;  %v2211_v3 = vld [vmem:[#allocation2 + $0xc] sm:$0xf]  ;;  %3229 = vmatpush.bf16.msrb.mxu0 %v5512_v63 }
 0x34f   : > { %v7310_v47 = vrot.slane %v2681_v17, 1  ;;  %v1642_v26 = vsel %vm6926_vm4, %v1637_v43, %v6857_v27  ;;  %v8291_v35 = vsel %vm7315_vm5, 4294967295, %v8290_v35  ;;  %v1799_v59 = vsel %vm7315_vm5, %v1437_v21, 0  ;;  %vm7337_vm1 = vmpackc.low %vm7301_vm0, %vm7286_vm13 }
 0x350   : > { %v1759_v34 = vunpack.c.l.b16 %v1642_v26  ;;  %v1760_v40 = vunpack.c.h.b16 %v1642_v26  ;;  %v2309_v46 = vsel %vm6887_vm14, %v6871_v15, %v2308_v32  ;;  %vm8292_vm12 = vsmask.f32 4352  ;;  %v2212_v26 = vld [vmem:[#allocation2 + $0x10] sm:$0xf] }
 0x351   : > { %v2077_v17 = vsel %vm8292_vm12, %v7161_v55, %v7308_v33  ;;  %vm8293_vm3 = vsmask.f32 7424  ;;  %v2010_v56 = vunpack.c.l.b16 %v1799_v59  ;;  %v2318_v60 = vsel %vm6887_vm14, %v2310_v30, %v6869_v38 }
 0x352   : > { %v2684_v43 = vsel %vm8293_vm3, %v7255_v61, %v7310_v47  ;;  %2189 = vmatmul.bf16.gmra.mxu1 %v2077_v17  ;;  %vm1763_vm12 = vcmp.ne.s32.totalorder %v1759_v34, %v6819_v8  ;;  %vm1764_vm3 = vcmp.ne.s32.totalorder %v1760_v40, %v6822_v9  ;;  %v2444_v55 = vunpack.c.l.b16 %v2309_v46 }
 0x353   : > { %v2445_v61 = vunpack.c.h.b16 %v2309_v46  ;;  %vm7343_vm5 = vmpackc.low %vm1764_vm3, %vm1763_vm12  ;;  %v8296_v31 = vmov 0  ;;  %v2451_v44 = vunpack.c.l.b16 %v2318_v60  ;;  %v2452_v21 = vunpack.c.h.b16 %v2318_v60  ;;  %2790 = vmatmul.bf16.gmra.mxu2 %v2684_v43 }
 0x354   : > { %v8297_v31 = vsel %vm7343_vm5, 4294967295, %v8296_v31  ;;  %v2459_v50 = vunpack.c.h.b16 %v2327_v0  ;;  %vm7348_vm13 = vcmp.ne.s32.totalorder %v2458_v4, %v6819_v8  ;;  %v1800_v30 = vsel %vm7343_vm5, %v1438_v2, 0  ;;  %v2213_v0 = vld [vmem:[#allocation2 + $0x14] sm:$0xf] }
 0x355   : > { %vm2448_vm0 = vcmp.ne.s32.totalorder %v2444_v55, %v6819_v8  ;;  %vm2449_vm12 = vcmp.ne.s32.totalorder %v2445_v61, %v6822_v9  ;;  %v2556_v34 = vsel %vm7337_vm1, %v2210_v36, 0  ;;  %v2011_v40 = vunpack.c.l.b16 %v1800_v30 }
 0x356   : > { %vm7358_vm3 = vmpackc.low %vm2449_vm12, %vm2448_vm0  ;;  %vm2455_vm7 = vcmp.ne.s32.totalorder %v2451_v44, %v6819_v8  ;;  %vm2456_vm10 = vcmp.ne.s32.totalorder %v2452_v21, %v6822_v9  ;;  %vm2463_vm5 = vcmp.ne.s32.totalorder %v2459_v50, %v6822_v9  ;;  %v2606_v17 = vunpack.c.l.b16 %v2556_v34 }
 0x357   : > { %vm7365_vm11 = vmpackc.low %vm2456_vm10, %vm2455_vm7  ;;  %v2557_v46 = vsel %vm7358_vm3, %v2211_v3, 0  ;;  %v1200_v43 = vadd.s32 120, %v6783_v24  ;;  %v2418_v2 = vrot.slane %v7221_v19, 4  ;;  %v2021_v36 = vpack.c.b16 %v2011_v40, %v2010_v56 }
 0x358   : > { %vm7375_vm0 = vmpackc.low %vm2463_vm5, %vm7348_vm13  ;;  %v2558_v55 = vsel %vm7365_vm11, %v2212_v26, 0  ;;  %v2607_v61 = vunpack.c.l.b16 %v2557_v46  ;;  %vm8310_vm12 = vsmask.f32 4352 }
 0x359   : > { %v2559_v63 = vsel %vm7375_vm0, %v2213_v0, 0  ;;  %v2608_v3 = vunpack.c.l.b16 %v2558_v55  ;;  %v1310_v44 = vand.u32 15, %v1200_v43  ;;  %v2426_v19 = vsel %vm6887_vm14, %v2418_v2, %v6869_v38 }
 0x35a   : > { %v2079_v56 = vshrl.u32 %v2021_v36, 16  ;;  %v2082_v21 = vshll.u32 %v2021_v36, 16  ;;  %v2609_v50 = vunpack.c.l.b16 %v2559_v63  ;;  %v2623_v32 = vpack.c.b16 %v2607_v61, %v2606_v17  ;;  %v5537_v63 = vld [vmem:[#allocation11 + $0x1b8] sm:$0xff] }
 0x35b   : > { %vm1424_vm10 = vcmp.ne.s32.totalorder %v1310_v44, 15  ;;  %v2535_v30 = vunpack.c.l.b16 %v2426_v19  ;;  %v2536_v34 = vunpack.c.h.b16 %v2426_v19  ;;  %v1199_v44 = vadd.s32 112, %v6783_v24  ;;  %v5499_v19 = vld [vmem:[#allocation11 + $0xc8] sm:$0xff]  ;;  %3804 = vmatpush.bf16.msrb.mxu2 %v5537_v63  ;;  %v5536_v24 = vld [vmem:[#allocation11 + $0x1b0] sm:$0xff]  ;;  %v5498_v63 = vld [vmem:[#allocation11 + $0xc0] sm:$0xff] }
 0x35c   : > { %v2081_v40 = vrot.slane %v2079_v56, 3  ;;  %v2084_v16 = vrot.slane %v2082_v21, 4  ;;  %v7386_v26 = vpack.c.b16 %v2609_v50, %v2608_v3  ;;  %v2634_v46 = vshrl.u32 %v2623_v32, 16  ;;  %vm2274_vm7 = vmpackc.low %vm1424_vm10, %vm1424_vm10  ;;  %v5511_v56 = vld [vmem:[#allocation11 + $0x128] sm:$0xff]  ;;  %v5521_v21 = vld [vmem:[#allocation11 + $0x178] sm:$0xff]  ;;  %3057 = vmatpush.bf16.msrb.mxu3 %v5499_v19 }
 0x35d   : > { %v2636_v0 = vshll.u32 %v2623_v32, 16  ;;  %v2290_v43 = vsel %vm2274_vm7, 65537, %v8245_v29  ;;  %vm7390_vm5 = vcmp.ne.s32.totalorder %v2535_v30, %v6819_v8  ;;  %vm7395_vm13 = vcmp.ne.s32.totalorder %v2536_v34, %v6822_v9  ;;  %v2224_v30 = vld [vmem:[#allocation2 + $0x40] sm:$0xf]  ;;  %3230 = vmatpush.bf16.msrb.mxu0 %v5511_v56  ;;  %3510 = vmatpush.bf16.msrb.mxu1 %v5521_v21  ;;  %v2225_v56 = vld [vmem:[#allocation2 + $0x44] sm:$0xf] }
 0x35e   : > { %v7399_v17 = vor.u32 %v2084_v16, %v2081_v40  ;;  %v2641_v2 = vshll.u32 %v7386_v26, 16  ;;  %v2429_v36 = vshrl.u32 %v2290_v43, 16  ;;  %v2432_v61 = vshll.u32 %v2290_v43, 16  ;;  %vm7412_vm10 = vmpackc.low %vm7395_vm13, %vm7390_vm5  ;;  %v5510_v43 = vld [vmem:[#allocation11 + $0x120] sm:$0xff] }
 0x35f   : > { %v2638_v3 = vrot.slane %v2636_v0, 1  ;;  %v8311_v34 = vmov 0  ;;  %v1303_v0 = vand.u32 15, %v1199_v44  ;;  %vm8313_vm7 = vsmask.f32 7424  ;;  %3805 = vmatpush.bf16.msrb.mxu2 %v5536_v24  ;;  %v5519_v24 = vld [vmem:[#allocation11 + $0x168] sm:$0xff] }
 0x360   : > { %v2086_v50 = vsel %vm8310_vm12, %v7308_v33, %v7399_v17  ;;  %v7406_v32 = vrot.slane %v2641_v2, 1  ;;  %v2431_v16 = vrot.slane %v2429_v36, 7  ;;  %v8312_v34 = vsel %vm7412_vm10, 4294967295, %v8311_v34  ;;  %v5465_v33 = vld [vmem:[#allocation2 + $0x40] sm:$0xff]  ;;  %3058 = vmatpush.bf16.msrb.mxu3 %v5498_v63 }
 0x361   : > { %v2639_v40 = vor.u32 %v2638_v3, %v2634_v46  ;;  %v2570_v38 = vsel %vm7412_vm10, %v2224_v30, 0  ;;  %vm1407_vm5 = vcmp.ne.s32.totalorder %v1303_v0, 0  ;;  %1975 = vmatmul.bf16.gmra.mxu3 %v5465_v33  ;;  %v1780_v19 = vunpack.c.l.b16 %v6883_v22  ;;  %3231 = vmatpush.bf16.msrb.mxu0 %v5510_v43 }
 0x362   : > { %v2434_v2 = vor.u32 %v2432_v61, %v2431_v16  ;;  %v2436_v36 = vrot.slane %v2431_v16, 4  ;;  %2194 = vmatmul.bf16.gmra.mxu1 %v2086_v50  ;;  %vm1488_vm13 = vmpackc.low %vm1407_vm5, %vm1407_vm5  ;;  %v5535_v61 = vld [vmem:[#allocation11 + $0x1a8] sm:$0xff]  ;;  %v5509_v16 = vld [vmem:[#allocation11 + $0x118] sm:$0xff]  ;;  %v8314_v43 = vmov 0  ;;  %v8317_v33 = vmov 0 }
 0x363   : > { %v2644_v55 = vsel %vm8313_vm7, %v2639_v40, %v7406_v32  ;;  %v1504_v30 = vsel %vm1488_vm13, 65537, %v8245_v29  ;;  %v1781_v40 = vunpack.c.h.b16 %v6883_v22  ;;  %3511 = vmatpush.bf16.msrb.mxu1 %v5520_v42  ;;  %v2645_v29 = vshrl.u32 %v7386_v26, 16  ;;  %3806 = vmatpush.bf16.msrb.mxu2 %v5535_v61 }
 0x364   : > { %2765 = vmatmul.bf16.vlgmr.msra.gmra.mxu0 %v2644_v55  ;;  %v2435_v46 = vsel %vm6887_vm14, %v6871_v15, %v2434_v2  ;;  %v2549_v3 = vunpack.c.l.b16 %v2436_v36  ;;  %v2550_v44 = vunpack.c.h.b16 %v2436_v36  ;;  %v1649_v0 = vshll.u32 %v1504_v30, 16  ;;  %v2226_v15 = vld [vmem:[#allocation2 + $0x48] sm:$0x1]  ;;  %v5534_v55 = vld [vmem:[#allocation11 + $0x1a0] sm:$0xff] }
 0x365   : > { %v2542_v21 = vunpack.c.l.b16 %v2435_v46  ;;  %v2543_v50 = vunpack.c.h.b16 %v2435_v46  ;;  %v1653_v52 = vshrl.u32 %v1504_v30, 16  ;;  %v2620_v42 = vunpack.c.l.b16 %v2570_v38  ;;  %3232 = vmatpush.bf16.msrb.mxu0 %v5509_v16 }
 0x366   : > { %vm2553_vm14 = vcmp.ne.s32.totalorder %v2549_v3, %v6819_v8  ;;  %vm2554_vm12 = vcmp.ne.s32.totalorder %v2550_v44, %v6822_v9  ;;  %v1651_v2 = vrot.slane %v1649_v0, 5  ;;  %v2685_v46 = vshrl.u32 %v7297_v6, 16  ;;  %v5508_v3 = vld [vmem:[#allocation11 + $0x110] sm:$0xff]  ;;  %v1439_v6 = vld [vmem:[#allocation2 + $0x3c] sm:$0xf] }
 0x367   : > { %vm2546_vm7 = vcmp.ne.s32.totalorder %v2542_v21, %v6819_v8  ;;  %vm2547_vm5 = vcmp.ne.s32.totalorder %v2543_v50, %v6822_v9  ;;  %vm7431_vm13 = vmpackc.low %vm2554_vm12, %vm2553_vm14  ;;  %v1655_v36 = vrot.slane %v1653_v52, 4  ;;  %vm7445_vm14 = vcmp.ne.s32.totalorder %v1780_v19, %v6819_v8  ;;  %3512 = vmatpush.bf16.msrb.mxu1 %v5519_v24  ;;  %3807 = vmatpush.bf16.msrb.mxu2 %v5534_v55  ;;  %v1441_v52 = vld [vmem:[#allocation2 + $0x44] sm:$0xf]  ;;  %v5533_v55 = vld [vmem:[#allocation11 + $0x198] sm:$0xff] }
 0x368   : > { %v8315_v43 = vsel %vm7431_vm13, 4294967295, %v8314_v43  ;;  %vm7435_vm10 = vmpackc.low %vm2547_vm5, %vm2546_vm7  ;;  %v2572_v26 = vsel %vm7431_vm13, %v2226_v15, 0  ;;  %v1652_v61 = vsel %vm6926_vm4, %v6883_v22, %v1651_v2  ;;  %vm1785_vm12 = vcmp.ne.s32.totalorder %v1781_v40, %v6822_v9  ;;  %v2822_v15 = vld [vmem:[#allocation2 + $0xc] sm:$0x8]  ;;  %v2823_v40 = vld [vmem:[#allocation2 + $0x10] sm:$0xf] }
 0x369   : > { %8316 = vst [vmem:[#allocation44_spill] sm:$0xff] %v8315_v43  ;;  %v8318_v33 = vsel %vm7435_vm10, 4294967295, %v8317_v33  ;;  %v2571_v63 = vsel %vm7435_vm10, %v2225_v56, 0  ;;  %v1656_v21 = vor.u32 %v1655_v36, %v1651_v2  ;;  %v1766_v56 = vunpack.c.l.b16 %v1652_v61  ;;  %3233 = vmatpush.bf16.msrb.mxu0 %v5508_v3  ;;  %vm7460_vm13 = vmpackc.low %vm1785_vm12, %vm7445_vm14  ;;  %v5518_v36 = vld [vmem:[#allocation11 + $0x160] sm:$0xff] }
 0x36a   : > { %v2621_v38 = vunpack.c.l.b16 %v2571_v63  ;;  %v1767_v50 = vunpack.c.h.b16 %v1652_v61  ;;  %v2647_v30 = vor.u32 %v2645_v29, %v7406_v32  ;;  %v2622_v0 = vunpack.c.l.b16 %v2572_v26  ;;  %v2824_v32 = vld [vmem:[#allocation2 + $0x14] sm:$0xf]  ;;  %v1440_v26 = vld [vmem:[#allocation2 + $0x40] sm:$0xf] }
 0x36b   : > { %v1657_v19 = vrot.slane %v1656_v21, 4  ;;  %vm1770_vm7 = vcmp.ne.s32.totalorder %v1766_v56, %v6819_v8  ;;  %v2687_v24 = vor.u32 %v2685_v46, %v7310_v47  ;;  %v2839_v63 = vsel %vm7122_vm15, %v2822_v15, 0  ;;  %3513 = vmatpush.bf16.msrb.mxu1 %v5518_v36  ;;  %3808 = vmatpush.bf16.msrb.mxu2 %v5533_v55  ;;  %v5517_v21 = vld [vmem:[#allocation11 + $0x158] sm:$0xff]  ;;  %v5532_v56 = vld [vmem:[#allocation11 + $0x190] sm:$0xff] }
 0x36c   : > { %v7454_v16 = vpack.c.b16 %v2621_v38, %v2620_v42  ;;  %vm1771_vm5 = vcmp.ne.s32.totalorder %v1767_v50, %v6822_v9  ;;  %vm8325_vm14 = vsmask.f32 7424  ;;  %v2631_v38 = vpack.c.b16 %v2622_v0, %v2622_v0  ;;  %v5545_v0 = vld [vmem:[#allocation11 + $0x1f8] sm:$0xff]  ;;  %v3575_v36 = vld [vmem:[#allocation2 + $0x14] sm:$0x8] }
 0x36d   : > { %v1662_v42 = vsel %vm6926_vm4, %v1657_v19, %v6857_v27  ;;  %vm7469_vm10 = vmpackc.low %vm1771_vm5, %vm1770_vm7  ;;  %v2652_v46 = vsel %vm8325_vm14, %v2647_v30, %v6986_v13  ;;  %v1803_v61 = vsel %vm7460_vm13, %v1441_v52, 0  ;;  %v2840_v50 = vsel %vm7148_vm9, %v2823_v40, 0  ;;  %3234 = vmatpush.bf16.msrb.mxu0 %v5507_v39  ;;  %v5506_v13 = vld [vmem:[#allocation11 + $0x100] sm:$0xff]  ;;  %3981 = vmatpush.bf16.msra.mxu3 %v5545_v0  ;;  %v3576_v55 = vld [vmem:[#allocation2 + $0x18] sm:$0xf] }
 0x36e   : > { %v2689_v29 = vshll.u32 %v7454_v16, 16  ;;  %v1773_v3 = vunpack.c.l.b16 %v1662_v42  ;;  %v1774_v44 = vunpack.c.h.b16 %v1662_v42  ;;  %v1801_v47 = vsel %vm7469_vm10, %v1439_v6, 0  ;;  %v2825_v6 = vld [vmem:[#allocation2 + $0x18] sm:$0xf]  ;;  %vm8326_vm7 = vmmov %vm8325_vm14  ;;  %v3578_v39 = vld [vmem:[#allocation2 + $0x20] sm:$0xf] }
 0x36f   : > { %v2841_v30 = vsel %vm7144_vm6, %v2824_v32, 0  ;;  %v2889_v19 = vunpack.c.l.b16 %v2839_v63  ;;  %v2012_v40 = vunpack.c.l.b16 %v1801_v47  ;;  %3514 = vmatpush.bf16.msrb.mxu1 %v5517_v21  ;;  %v3577_v47 = vld [vmem:[#allocation2 + $0x1c] sm:$0xf]  ;;  %3809 = vmatpush.bf16.msrb.mxu2 %v5532_v56 }
 0x370   : > { %v7479_v27 = vrot.slane %v2689_v29, 1  ;;  %vm1777_vm4 = vcmp.ne.s32.totalorder %v1773_v3, %v6819_v8  ;;  %vm1778_vm12 = vcmp.ne.s32.totalorder %v1774_v44, %v6822_v9  ;;  %v2842_v8 = vsel %vm7165_vm8, %v2825_v6, 0  ;;  %v5516_v44 = vld [vmem:[#allocation11 + $0x150] sm:$0xff]  ;;  %v5531_v6 = vld [vmem:[#allocation11 + $0x188] sm:$0xff] }
 0x371   : > { %vm7491_vm5 = vmpackc.low %vm1778_vm12, %vm1777_vm4  ;;  %v2890_v29 = vunpack.c.l.b16 %v2840_v50  ;;  %v2891_v42 = vunpack.c.l.b16 %v2841_v30  ;;  %v2892_v32 = vunpack.c.l.b16 %v2842_v8  ;;  %v2014_v3 = vunpack.c.l.b16 %v1803_v61  ;;  %3235 = vmatpush.bf16.msrb.mxu0 %v5506_v13  ;;  %v5553_v30 = vld [vmem:[#allocation11 + $0x238] sm:$0xff] }
 0x372   : > { %v2692_v52 = vsel %vm8326_vm7, %v2687_v24, %v7479_v27  ;;  %v1802_v9 = vsel %vm7491_vm5, %v1440_v26, 0  ;;  %v2697_v24 = vshll.u32 %v2631_v38, 16  ;;  %v3592_v26 = vsel %vm7122_vm15, %v3575_v36, 0  ;;  %vm8331_vm15 = vmmov %vm8326_vm7 }
 0x373   : > { %2795 = vmatmul.bf16.gmra.mxu2 %v2692_v52  ;;  %v2013_v63 = vunpack.c.l.b16 %v1802_v9  ;;  %v2906_v52 = vpack.c.b16 %v2890_v29, %v2889_v19  ;;  %v2907_v43 = vpack.c.b16 %v2892_v32, %v2891_v42  ;;  %v3593_v50 = vsel %vm7148_vm9, %v3576_v55, 0  ;;  %3515 = vmatpush.bf16.msrb.mxu1 %v5516_v44  ;;  %v5530_v32 = vld [vmem:[#allocation11 + $0x180] sm:$0xff] }
 0x374   : > { %2770 = vmatmul.bf16.gmra.mxu0 %v2652_v46  ;;  %v2693_v46 = vshrl.u32 %v7454_v16, 16  ;;  %v3594_v38 = vsel %vm7144_vm6, %v3577_v47, 0  ;;  %v3595_v61 = vsel %vm7165_vm8, %v3578_v39, 0  ;;  %v3642_v9 = vunpack.c.l.b16 %v3592_v26  ;;  %3810 = vmatpush.bf16.msrb.mxu2 %v5531_v6  ;;  %v5514_v26 = vld [vmem:[#allocation11 + $0x140] sm:$0xff] }
 0x375   : > { %v2022_v0 = vpack.c.b16 %v2013_v63, %v2012_v40  ;;  %v2916_v21 = vshrl.u32 %v2906_v52, 16  ;;  %v2919_v56 = vshll.u32 %v2906_v52, 16  ;;  %v2924_v13 = vshrl.u32 %v2907_v43, 16  ;;  %4263 = vmatpush.bf16.msra.mxu0 %v5553_v30 }
 0x376   : > { %v2927_v19 = vshll.u32 %v2907_v43, 16  ;;  %v3643_v29 = vunpack.c.l.b16 %v3593_v50  ;;  %v2023_v55 = vpack.c.b16 %v2014_v3, %v2014_v3  ;;  %v3644_v43 = vunpack.c.l.b16 %v3594_v38  ;;  %v2827_v38 = vld [vmem:[#allocation2 + $0x20] sm:$0xf] }
 0x377   : > { %v2088_v7 = vshrl.u32 %v2022_v0, 16  ;;  %v2091_v8 = vshll.u32 %v2022_v0, 16  ;;  %v2918_v40 = vrot.slane %v2916_v21, 3  ;;  %v2921_v16 = vrot.slane %v2919_v56, 4  ;;  %3516 = vmatpush.bf16.msrb.mxu1 %v5515_v62  ;;  %v2826_v0 = vld [vmem:[#allocation2 + $0x1c] sm:$0xf] }
 0x378   : > { %v2926_v42 = vrot.slane %v2924_v13, 3  ;;  %v2929_v45 = vrot.slane %v2927_v19, 4  ;;  %v3645_v39 = vunpack.c.l.b16 %v3595_v61  ;;  %v2695_v44 = vor.u32 %v2693_v46, %v7479_v27  ;;  %3811 = vmatpush.bf16.msrb.mxu2 %v5530_v32  ;;  %v5544_v13 = vld [vmem:[#allocation11 + $0x1f0] sm:$0xff] }
 0x379   : > { %v2090_v36 = vrot.slane %v2088_v7, 3  ;;  %v2093_v18 = vrot.slane %v2091_v8, 4  ;;  %v2922_v63 = vor.u32 %v2921_v16, %v2918_v40  ;;  %v2699_v30 = vrot.slane %v2697_v24, 1  ;;  %v5490_v24 = vld [vmem:[#allocation2 + $0x10] sm:$0xff]  ;;  %3982 = vmatpush.bf16.msra.mxu3 %v5544_v13 }
 0x37a   : > { %v7508_v47 = vor.u32 %v2929_v45, %v2926_v42  ;;  %vm8329_vm9 = vsmask.f32 4352  ;;  %v3659_v50 = vpack.c.b16 %v3643_v29, %v3642_v9  ;;  %v2097_v21 = vshrl.u32 %v2023_v55, 16  ;;  %v3293_v46 = vld [vmem:[#allocation2 + $0x10] sm:$0xf] }
 0x37b   : > { %v2094_v52 = vor.u32 %v2093_v18, %v2090_v36  ;;  %vm8330_vm6 = vmmov %vm8329_vm9  ;;  %v2100_v56 = vshll.u32 %v2023_v55, 16  ;;  %v3660_v61 = vpack.c.b16 %v3645_v39, %v3644_v43  ;;  %v2700_v27 = vsel %vm8331_vm15, %v2695_v44, %v2699_v30  ;;  %3517 = vmatpush.bf16.msrb.mxu1 %v5514_v26  ;;  %v3294_v62 = vld [vmem:[#allocation2 + $0x14] sm:$0xf]  ;;  %v3295_v36 = vld [vmem:[#allocation2 + $0x18] sm:$0xf] }
 0x37c   : > { %v2931_v6 = vsel %vm8329_vm9, %v2922_v63, %v7508_v47  ;;  %v2843_v19 = vsel %vm6991_vm2, %v2826_v0, 0  ;;  %v3669_v7 = vshrl.u32 %v3659_v50, 16  ;;  %v3672_v8 = vshll.u32 %v3659_v50, 16  ;;  %v5552_v45 = vld [vmem:[#allocation11 + $0x230] sm:$0xff]  ;;  %v3296_v44 = vld [vmem:[#allocation2 + $0x1c] sm:$0xf]  ;;  %vm8333_vm14 = vmmov %vm8330_vm6 }
 0x37d   : > { %v2095_v3 = vsel %vm8330_vm6, %v7399_v17, %v2094_v52  ;;  %3059 = vmatmul.bf16.vlgmr.msrb.gmra.mxu3 %v2931_v6  ;;  %vm8332_vm8 = vnez %v8241_v48  ;;  %v2893_v9 = vunpack.c.l.b16 %v2843_v19  ;;  %v2099_v29 = vrot.slane %v2097_v21, 3  ;;  %4264 = vmatpush.bf16.msra.mxu0 %v5552_v45  ;;  %v3579_v50 = vld [vmem:[#allocation2 + $0x24] sm:$0xf]  ;;  %v3580_v0 = vld [vmem:[#allocation2 + $0x28] sm:$0xf]  ;;  %vm8334_vm4 = vmmov %vm8330_vm6 }
 0x37e   : > { %2199 = vmatmul.bf16.gmra.mxu1 %v2095_v3  ;;  %v2844_v17 = vsel %vm8332_vm8, %v2827_v38, 0  ;;  %v2102_v40 = vrot.slane %v2100_v56, 4  ;;  %v3677_v42 = vshrl.u32 %v3660_v61, 16  ;;  %v3680_v32 = vshll.u32 %v3660_v61, 16  ;;  %vm8337_vm7 = vmmov %vm8334_vm4 }
 0x37f   : > { %v2894_v16 = vunpack.c.l.b16 %v2844_v17  ;;  %v3310_v18 = vsel %vm7337_vm1, %v3293_v46, 0  ;;  %v3311_v55 = vsel %vm7358_vm3, %v3294_v62, 0  ;;  %v3671_v43 = vrot.slane %v3669_v7, 3  ;;  %vm8340_vm15 = vmmov %vm8334_vm4 }
 0x380   : > { %v3674_v39 = vrot.slane %v3672_v8, 4  ;;  %v2103_v30 = vor.u32 %v2102_v40, %v2099_v29  ;;  %v3679_v3 = vrot.slane %v3677_v42, 3  ;;  %v3312_v21 = vsel %vm7365_vm11, %v3295_v36, 0 }
 0x381   : > { %v2908_v63 = vpack.c.b16 %v2894_v16, %v2893_v9  ;;  %v3360_v56 = vunpack.c.l.b16 %v3310_v18  ;;  %v3361_v38 = vunpack.c.l.b16 %v3311_v55  ;;  %v3682_v61 = vrot.slane %v3680_v32, 4  ;;  %v2828_v32 = vld [vmem:[#allocation2 + $0x24] sm:$0xf] }
 0x382   : > { %v3313_v13 = vsel %vm7375_vm0, %v3296_v44, 0  ;;  %v3596_v46 = vsel %vm6991_vm2, %v3579_v50, 0  ;;  %v3597_v19 = vsel %vm8332_vm8, %v3580_v0, 0  ;;  %v2104_v7 = vsel %vm8333_vm14, %v2094_v52, %v2103_v30 }
 0x383   : > { %2800 = vmatmul.bf16.gmra.mxu2 %v2700_v27  ;;  %v2933_v26 = vshrl.u32 %v2908_v63, 16  ;;  %v2936_v6 = vshll.u32 %v2908_v63, 16  ;;  %v3675_v62 = vor.u32 %v3674_v39, %v3671_v43  ;;  %v3362_v17 = vunpack.c.l.b16 %v3312_v21  ;;  %v5543_v43 = vld [vmem:[#allocation11 + $0x1e8] sm:$0xff]  ;;  %v5491_v39 = vld [vmem:[#allocation2 + $0x18] sm:$0xff] }
 0x384   : > { %3236 = vmatmul.bf16.vlgmr.msrb.gmra.mxu0 %v5490_v24  ;;  %v3363_v9 = vunpack.c.l.b16 %v3313_v13  ;;  %v3377_v29 = vpack.c.b16 %v3361_v38, %v3360_v56  ;;  %v7533_v40 = vor.u32 %v3682_v61, %v3679_v3  ;;  %v3646_v42 = vunpack.c.l.b16 %v3596_v46  ;;  %3983 = vmatpush.bf16.msra.mxu3 %v5543_v43  ;;  %v3297_v56 = vld [vmem:[#allocation2 + $0x20] sm:$0xf]  ;;  %v5551_v38 = vld [vmem:[#allocation11 + $0x228] sm:$0xff] }
 0x385   : > { %v2935_v27 = vrot.slane %v2933_v26, 3  ;;  %v2938_v24 = vrot.slane %v2936_v6, 4  ;;  %v3647_v45 = vunpack.c.l.b16 %v3597_v19  ;;  %vm8335_vm2 = vnez %v8239_v49  ;;  %v7545_v26 = vpop.f32.mrf.mxu0  ;;  %4265 = vmatpush.bf16.msra.mxu0 %v5551_v38  ;;  %v2830_v49 = vld [vmem:[#allocation2 + $0x2c] sm:$0xf] }
 0x386   : > { %v2845_v48 = vsel %vm8335_vm2, %v2828_v32, 0  ;;  %vm8336_vm12 = vnez %v8244_v10  ;;  %v7541_v55 = vpack.c.b16 %v3363_v9, %v3362_v17  ;;  %v3389_v63 = vshll.u32 %v3377_v29, 16  ;;  %v1951_v19 = vpop.f32.mrf.mxu3 }
 0x387   : > { %v2939_v8 = vor.u32 %v2938_v24, %v2935_v27  ;;  %v2846_v52 = vsel %vm8336_vm12, %v2829_v37, 0  ;;  %v2895_v36 = vunpack.c.l.b16 %v2845_v48  ;;  %v3661_v44 = vpack.c.b16 %v3647_v45, %v3646_v42  ;;  %v3298_v27 = vld [vmem:[#allocation2 + $0x24] sm:$0xf] }
 0x388   : > { %v2896_v18 = vunpack.c.l.b16 %v2846_v52  ;;  %v3387_v0 = vshrl.u32 %v3377_v29, 16  ;;  %v3391_v3 = vrot.slane %v3389_v63, 1  ;;  %v3394_v21 = vshll.u32 %v7541_v55, 16 }
 0x389   : > { %v2940_v16 = vsel %vm8334_vm4, %v7508_v47, %v2939_v8  ;;  %v3684_v47 = vsel %vm8337_vm7, %v3675_v62, %v7533_v40  ;;  %v3686_v61 = vshrl.u32 %v3661_v44, 16  ;;  %v3689_v13 = vshll.u32 %v3661_v44, 16  ;;  %v3582_v62 = vld [vmem:[#allocation2 + $0x30] sm:$0xf] }
 0x38a   : > { %v2909_v30 = vpack.c.b16 %v2896_v18, %v2895_v36  ;;  %vm8338_vm9 = vnez %v8227_v53  ;;  %vm8339_vm6 = vnez %v8229_v57  ;;  %v3396_v42 = vrot.slane %v3394_v21, 1 }
 0x38b   : > { %v3314_v17 = vsel %vm8338_vm9, %v3297_v56, 0  ;;  %v3315_v9 = vsel %vm8339_vm6, %v3298_v27, 0  ;;  %v3688_v45 = vrot.slane %v3686_v61, 3  ;;  %v3691_v32 = vrot.slane %v3689_v13, 4  ;;  %v5542_v13 = vld [vmem:[#allocation11 + $0x1e0] sm:$0xff] }
 0x38c   : > { %v2942_v6 = vshrl.u32 %v2909_v30, 16  ;;  %v2945_v50 = vshll.u32 %v2909_v30, 16  ;;  %v3599_v48 = vsel %vm8336_vm12, %v3582_v62, 0  ;;  %v2776_v52 = vpop.f32.mrf.mxu2  ;;  %v3364_v36 = vunpack.c.l.b16 %v3314_v17  ;;  %3984 = vmatpush.bf16.msra.mxu3 %v5542_v13 }
 0x38d   : > { %3064 = vmatmul.bf16.gmra.mxu3 %v2940_v16  ;;  %v3392_v16 = vor.u32 %v3391_v3, %v3387_v0  ;;  %v3365_v18 = vunpack.c.l.b16 %v3315_v9  ;;  %vm8341_vm8 = vsmask.f32 7424  ;;  %v7563_v44 = vpop.f32.mrf.mxu0  ;;  %vm8342_vm14 = vnez %v8251_v20 }
 0x38e   : > { %2204 = vmatmul.bf16.gmra.mxu1 %v2104_v7  ;;  %v2944_v24 = vrot.slane %v2942_v6, 3  ;;  %v2947_v46 = vrot.slane %v2945_v50, 4  ;;  %v3581_v7 = vld [vmem:[#allocation2 + $0x2c] sm:$0xf]  ;;  %v3649_v6 = vunpack.c.l.b16 %v3599_v48  ;;  %v2831_v50 = vld [vmem:[#allocation2 + $0x30] sm:$0xf]  ;;  %vm8343_vm4 = vnez %v8253_v28  ;;  %v7573_v61 = vpop.f32.mrf.mxu3 }
 0x38f   : > { %v3598_v37 = vsel %vm8335_vm2, %v3581_v7, 0  ;;  %v3397_v43 = vsel %vm8341_vm8, %v3392_v16, %v3396_v42  ;;  %v2847_v10 = vsel %vm8342_vm14, %v2830_v49, 0  ;;  %v2848_v3 = vsel %vm8343_vm4, %v2831_v50, 0  ;;  %vm8344_vm2 = vmmov %vm8337_vm7  ;;  %v5550_v16 = vld [vmem:[#allocation11 + $0x220] sm:$0xff] }
 0x390   : > { %v7552_v29 = vor.u32 %v2947_v46, %v2944_v24  ;;  %v3648_v30 = vunpack.c.l.b16 %v3598_v37  ;;  %v2898_v21 = vunpack.c.l.b16 %v2848_v3  ;;  %v7569_v56 = vpack.c.b16 %v3365_v18, %v3364_v36  ;;  %v5492_v24 = vld [vmem:[#allocation2 + $0x20] sm:$0xff]  ;;  %v3300_v36 = vld [vmem:[#allocation2 + $0x2c] sm:$0xf]  ;;  %4266 = vmatpush.bf16.msra.mxu0 %v5550_v16 }
 0x391   : > { %v3398_v17 = vshrl.u32 %v7541_v55, 16  ;;  %vm8345_vm12 = vnez %v8231_v5  ;;  %vm8346_vm7 = vnez %v8233_v23 }
 0x392   : > { %v2949_v63 = vsel %vm8340_vm15, %v2939_v8, %v7552_v29  ;;  %v2897_v8 = vunpack.c.l.b16 %v2847_v10  ;;  %v3662_v46 = vpack.c.b16 %v3649_v6, %v3648_v30  ;;  %v3402_v9 = vshll.u32 %v7569_v56, 16  ;;  %vm8347_vm15 = vmmov %vm8344_vm2 }
 0x393   : > { %3812 = vmatmul.bf16.vlgmr.msrb.gmra.mxu2 %v3684_v47  ;;  %v7561_v47 = vor.u32 %v3691_v32, %v3688_v45  ;;  %v3400_v55 = vor.u32 %v3398_v17, %v3396_v42  ;;  %v3317_v3 = vsel %vm8346_vm7, %v3300_v36, 0  ;;  %v2833_v17 = vld [vmem:[#allocation2 + $0x38] sm:$0xf]  ;;  %v5493_v36 = vld [vmem:[#allocation2 + $0x28] sm:$0xff] }
 0x394   : > { %3241 = vmatmul.bf16.gmra.mxu0 %v5491_v39  ;;  %v3695_v45 = vshrl.u32 %v3662_v46, 16  ;;  %v3698_v32 = vshll.u32 %v3662_v46, 16  ;;  %v7580_v37 = vpop.f32.mrf.mxu2  ;;  %v3404_v30 = vrot.slane %v3402_v9, 1  ;;  %v3367_v42 = vunpack.c.l.b16 %v3317_v3 }
 0x395   : > { %v2180_v39 = vpop.f32.mrf.mxu1  ;;  %v3693_v27 = vsel %vm8344_vm2, %v7533_v40, %v7561_v47  ;;  %v3299_v40 = vld [vmem:[#allocation2 + $0x28] sm:$0xf]  ;;  %vm8348_vm2 = vnez %v8279_v41 }
 0x396   : > { %v2181_v0 = vadd.f32 %v2180_v39, %v1951_v19  ;;  %v2910_v19 = vpack.c.b16 %v2898_v21, %v2897_v8  ;;  %v3584_v39 = vld [vmem:[#allocation2 + $0x38] sm:$0xf]  ;;  %v1956_v49 = vpop.f32.mrf.mxu3  ;;  %v3697_v50 = vrot.slane %v3695_v45, 3  ;;  %v3316_v10 = vsel %vm8345_vm12, %v3299_v40, 0 }
 0x397   : > { %v3601_v21 = vsel %vm8343_vm4, %v3584_v39, 0  ;;  %v3366_v13 = vunpack.c.l.b16 %v3316_v10  ;;  %vm8350_vm4 = vmmov %vm8347_vm15 }
 0x398   : > { %v7571_v38 = vadd.f32 %v2776_v52, %v2181_v0  ;;  %v2951_v7 = vshrl.u32 %v2910_v19, 16  ;;  %v2954_v62 = vshll.u32 %v2910_v19, 16  ;;  %v3700_v0 = vrot.slane %v3698_v32, 4 }
 0x39a   : > { %v2953_v48 = vrot.slane %v2951_v7, 3  ;;  %v2956_v52 = vrot.slane %v2954_v62, 4  ;;  %v7600_v46 = vor.u32 %v3700_v0, %v3697_v50  ;;  %v3651_v7 = vunpack.c.l.b16 %v3601_v21  ;;  %v2832_v62 = vld [vmem:[#allocation2 + $0x34] sm:$0xf] }
 0x39b   : > { %v2849_v20 = vsel %vm8348_vm2, %v2832_v62, 0  ;;  %v3302_v62 = vld [vmem:[#allocation2 + $0x34] sm:$0xf] }
 0x39c   : > { %v7586_v6 = vor.u32 %v2956_v52, %v2953_v48  ;;  %v2899_v16 = vunpack.c.l.b16 %v2849_v20  ;;  %v5541_v52 = vld [vmem:[#allocation11 + $0x1d8] sm:$0xff]  ;;  %v3702_v40 = vsel %vm8350_vm4, %v7561_v47, %v7600_v46 }
 0x39d   : > { %3069 = vmatmul.bf16.gmra.mxu3 %v2949_v63  ;;  %v7582_v18 = vpop.f32.mrf.mxu1  ;;  %v7584_v63 = vpop.f32.mrf.mxu0 }
 0x39e   : > { %3518 = vmatmul.bf16.vlgmr.msrb.gmra.mxu1 %v3397_v43  ;;  %v3583_v43 = vld [vmem:[#allocation2 + $0x34] sm:$0xf]  ;;  %v7608_v48 = vpop.f32.mrf.mxu3  ;;  %3985 = vmatpush.bf16.msra.mxu3 %v5541_v52 }
 0x39f   : > { %v3600_v8 = vsel %vm8342_vm14, %v3583_v43, 0  ;;  %vm8349_vm14 = vnez %v8282_v1 }
 0x3a0   : > { %v3650_v19 = vunpack.c.l.b16 %v3600_v8  ;;  %v2850_v28 = vsel %vm8349_vm14, %v2833_v17, 0  ;;  %v3406_v8 = vshrl.u32 %v7569_v56, 16 }
 0x3a1   : > { %v2900_v45 = vunpack.c.l.b16 %v2850_v28 }
 0x3a2   : > { %v3408_v17 = vor.u32 %v3406_v8, %v3404_v30 }
 0x3a3   : > { %3817 = vmatmul.bf16.gmra.mxu2 %v3693_v27  ;;  %v2958_v27 = vsel %vm8347_vm15, %v7552_v29, %v7586_v6  ;;  %v7606_v29 = vpack.c.b16 %v3367_v42, %v3366_v13  ;;  %v2911_v50 = vpack.c.b16 %v2900_v45, %v2899_v16  ;;  %v5549_v13 = vld [vmem:[#allocation11 + $0x218] sm:$0xff]  ;;  %vm8351_vm15 = vnez %v8247_v51 }
 0x3a4   : > { %3246 = vmatmul.bf16.gmra.mxu0 %v5492_v24  ;;  %v3405_v24 = vsel %vm8341_vm8, %v3400_v55, %v3404_v30  ;;  %v3663_v55 = vpack.c.b16 %v3651_v7, %v3650_v19  ;;  %v3585_v19 = vld [vmem:[#allocation2 + $0x3c] sm:$0xf]  ;;  %v3586_v7 = vld [vmem:[#allocation2 + $0x40] sm:$0xf]  ;;  %vm8352_vm8 = vnez %v8249_v54 }
 0x3a5   : > { %v2781_v9 = vpop.f32.mrf.mxu2  ;;  %v7613_v39 = vpop.f32.mrf.mxu0  ;;  %v2960_v10 = vshrl.u32 %v2911_v50, 16  ;;  %v2963_v3 = vshll.u32 %v2911_v50, 16  ;;  %v3410_v21 = vshll.u32 %v7606_v29, 16  ;;  %4267 = vmatpush.bf16.msra.mxu0 %v5549_v13  ;;  %v3602_v52 = vsel %vm8348_vm2, %v3585_v19, 0  ;;  %v2835_v13 = vld [vmem:[#allocation2 + $0x40] sm:$0xf] }
 0x3a6   : > { %v3704_v42 = vshrl.u32 %v3663_v55, 16  ;;  %v3707_v47 = vshll.u32 %v3663_v55, 16  ;;  %v3652_v8 = vunpack.c.l.b16 %v3602_v52  ;;  %vm8354_vm2 = vnez %v8291_v35 }
 0x3a7   : > { %v3412_v20 = vrot.slane %v3410_v21, 1  ;;  %v2834_v21 = vld [vmem:[#allocation2 + $0x3c] sm:$0xf] }
 0x3a8   : > { %v3706_v56 = vrot.slane %v3704_v42, 3  ;;  %v3709_v16 = vrot.slane %v3707_v47, 4  ;;  %v2851_v1 = vsel %vm8354_vm2, %v2834_v21, 0  ;;  %v3588_v21 = vld [vmem:[#allocation2 + $0x48] sm:$0xf] }
 0x3aa   : > { %v2185_v32 = vpop.f32.mrf.mxu1 }
 0x3ab   : > { %v2186_v43 = vadd.f32 %v2185_v32, %v1956_v49  ;;  %v2965_v49 = vrot.slane %v2963_v3, 4  ;;  %v3319_v32 = vsel %vm8352_vm8, %v3302_v62, 0  ;;  %v7638_v3 = vor.u32 %v3709_v16, %v3706_v56  ;;  %v5494_v62 = vld [vmem:[#allocation2 + $0x30] sm:$0xff] }
 0x3ac   : > { %vm8359_vm8 = vsmask.f32 4352 }
 0x3ad   : > { %3074 = vmatmul.bf16.gmra.mxu3 %v2958_v27  ;;  %v7615_v0 = vadd.f32 %v2781_v9, %v2186_v43  ;;  %v2962_v27 = vrot.slane %v2960_v10, 3  ;;  %v7621_v9 = vpop.f32.mrf.mxu3  ;;  %v3369_v43 = vunpack.c.l.b16 %v3319_v32  ;;  %v3414_v32 = vshrl.u32 %v7606_v29, 16 }
 0x3ae   : > { %3523 = vmatmul.bf16.gmra.mxu1 %v3405_v24  ;;  %v3301_v24 = vld [vmem:[#allocation2 + $0x30] sm:$0xf] }
 0x3af   : > { %v7619_v28 = vor.u32 %v2965_v49, %v2962_v27  ;;  %v3318_v45 = vsel %vm8351_vm15, %v3301_v24, 0  ;;  %vm8353_vm15 = vsmask.f32 7424  ;;  %v5540_v49 = vld [vmem:[#allocation11 + $0x1d0] sm:$0xff] }
 0x3b0   : > { %v3413_v10 = vsel %vm8353_vm15, %v3408_v17, %v3412_v20  ;;  %vm8356_vm15 = vmmov %vm8350_vm4  ;;  %3986 = vmatpush.bf16.msra.mxu3 %v5540_v49  ;;  %v7651_v17 = vpop.f32.mrf.mxu2 }
 0x3b1   : > { %v2967_v50 = vsel %vm8350_vm4, %v7586_v6, %v7619_v28  ;;  %v3711_v24 = vsel %vm8356_vm15, %v7600_v46, %v7638_v3  ;;  %vm8357_vm4 = vnez %v8269_v25  ;;  %vm8358_vm15 = vnez %v8271_v14 }
 0x3b3   : > { %3822 = vmatmul.bf16.gmra.mxu2 %v3702_v40  ;;  %v3603_v40 = vsel %vm8349_vm14, %v3586_v7, 0  ;;  %vm8355_vm14 = vnez %v8297_v31  ;;  %v2837_v31 = vld [vmem:[#allocation2 + $0x48] sm:$0xf] }
 0x3b4   : > { %3251 = vmatmul.bf16.gmra.mxu0 %v5493_v36  ;;  %v3368_v36 = vunpack.c.l.b16 %v3318_v45  ;;  %v3653_v41 = vunpack.c.l.b16 %v3603_v40  ;;  %v2852_v42 = vsel %vm8355_vm14, %v2835_v13, 0  ;;  %v5548_v40 = vld [vmem:[#allocation11 + $0x210] sm:$0xff]  ;;  %v3416_v13 = vor.u32 %v3414_v32, %v3412_v20 }
 0x3b5   : > { %v2902_v47 = vunpack.c.l.b16 %v2852_v42  ;;  %v7646_v6 = vpop.f32.mrf.mxu3  ;;  %4268 = vmatpush.bf16.msra.mxu0 %v5548_v40 }
 0x3b6   : > { %v2170_v30 = vpop.f32.mrf.mxu0  ;;  %v7644_v27 = vpack.c.b16 %v3369_v43, %v3368_v36  ;;  %v3664_v19 = vpack.c.b16 %v3653_v41, %v3652_v8  ;;  %v7657_v8 = vpop.f32.mrf.mxu1  ;;  %v3587_v41 = vld [vmem:[#allocation2 + $0x44] sm:$0xf] }
 0x3b7   : > { %v7632_v55 = vadd.f32 %v2170_v30, %v7545_v26  ;;  %v2901_v26 = vunpack.c.l.b16 %v2851_v1 }
 0x3b8   : > { %v3418_v52 = vshll.u32 %v7644_v27, 16  ;;  %v3713_v30 = vshrl.u32 %v3664_v19, 16  ;;  %v3716_v36 = vshll.u32 %v3664_v19, 16  ;;  %v3605_v19 = vsel %vm8355_vm14, %v3588_v21, 0  ;;  %v5539_v21 = vld [vmem:[#allocation11 + $0x1c8] sm:$0xff] }
 0x3b9   : > { %v2912_v7 = vpack.c.b16 %v2902_v47, %v2901_v26  ;;  %3987 = vmatpush.bf16.msra.mxu3 %v5539_v21  ;;  %vm8362_vm14 = vnez %v8285_v58 }
 0x3ba   : > { %v3420_v1 = vrot.slane %v3418_v52, 1  ;;  %v3715_v26 = vrot.slane %v3713_v30, 3  ;;  %v3718_v47 = vrot.slane %v3716_v36, 4  ;;  %v3655_v36 = vunpack.c.l.b16 %v3605_v19 }
 0x3bb   : > { %v2969_v16 = vshrl.u32 %v2912_v7, 16  ;;  %v2972_v45 = vshll.u32 %v2912_v7, 16 }
 0x3bc   : > { %v7678_v30 = vor.u32 %v3718_v47, %v3715_v26  ;;  %v5495_v47 = vld [vmem:[#allocation2 + $0x38] sm:$0xff] }
 0x3bd   : > { %3079 = vmatmul.bf16.gmra.mxu3 %v2967_v50  ;;  %v2971_v46 = vrot.slane %v2969_v16, 3  ;;  %v2974_v43 = vrot.slane %v2972_v45, 4  ;;  %v3303_v50 = vld [vmem:[#allocation2 + $0x38] sm:$0xf]  ;;  %v7661_v29 = vpop.f32.mrf.mxu3 }
 0x3be   : > { %3528 = vmatmul.bf16.gmra.mxu1 %v3413_v10  ;;  %v7653_v56 = vpop.f32.mrf.mxu0  ;;  %v3304_v10 = vld [vmem:[#allocation2 + $0x3c] sm:$0xf]  ;;  %v3320_v49 = vsel %vm8357_vm4, %v3303_v50, 0  ;;  %vm8360_vm4 = vsmask.f32 7424  ;;  %v3720_v26 = vsel %vm8359_vm8, %v7638_v3, %v7678_v30 }
 0x3bf   : > { %v7659_v42 = vor.u32 %v2974_v43, %v2971_v46  ;;  %v3370_v7 = vunpack.c.l.b16 %v3320_v49  ;;  %v3421_v52 = vsel %vm8360_vm4, %v3416_v13, %v3420_v1  ;;  %v2836_v46 = vld [vmem:[#allocation2 + $0x44] sm:$0xf]  ;;  %vm8363_vm4 = vmmov %vm8359_vm8 }
 0x3c0   : > { %v2853_v43 = vsel %vm7469_vm10, %v2836_v46, 0 }
 0x3c1   : > { %v2976_v32 = vsel %vm8359_vm8, %v7619_v28, %v7659_v42  ;;  %v2903_v50 = vunpack.c.l.b16 %v2853_v43  ;;  %v3305_v43 = vld [vmem:[#allocation2 + $0x40] sm:$0xf]  ;;  %vm8364_vm8 = vsmask.f32 7424 }
 0x3c3   : > { %3827 = vmatmul.bf16.gmra.mxu2 %v3711_v24  ;;  %v3321_v24 = vsel %vm8358_vm15, %v3304_v10, 0 }
 0x3c4   : > { %3256 = vmatmul.bf16.gmra.mxu0 %v5494_v62  ;;  %v3604_v62 = vsel %vm8354_vm2, %v3587_v41, 0  ;;  %v3371_v16 = vunpack.c.l.b16 %v3321_v24  ;;  %vm8361_vm2 = vnez %v8275_v12 }
 0x3c5   : > { %v3654_v35 = vunpack.c.l.b16 %v3604_v62  ;;  %v7686_v41 = vpop.f32.mrf.mxu3 }
 0x3c6   : > { %v2175_v20 = vpop.f32.mrf.mxu0  ;;  %v2786_v40 = vpop.f32.mrf.mxu2  ;;  %v7684_v28 = vpack.c.b16 %v3371_v16, %v3370_v7  ;;  %v3422_v7 = vshrl.u32 %v7644_v27, 16 }
 0x3c7   : > { %v7672_v45 = vadd.f32 %v2175_v20, %v7584_v63  ;;  %v2854_v63 = vsel %vm7491_vm5, %v2837_v31, 0  ;;  %v3665_v49 = vpack.c.b16 %v3655_v36, %v3654_v35  ;;  %v3306_v35 = vld [vmem:[#allocation2 + $0x44] sm:$0xf] }
 0x3c8   : > { %v2904_v10 = vunpack.c.l.b16 %v2854_v63  ;;  %v3426_v16 = vshll.u32 %v7684_v28, 16  ;;  %v3590_v63 = vld [vmem:[#allocation2 + $0x50] sm:$0xf] }
 0x3c9   : > { %v3725_v46 = vshll.u32 %v3665_v49, 16 }
 0x3ca   : > { %v2913_v24 = vpack.c.b16 %v2904_v10, %v2903_v50  ;;  %v3424_v50 = vor.u32 %v3422_v7, %v3420_v1  ;;  %v3428_v10 = vrot.slane %v3426_v16, 1  ;;  %v3607_v1 = vsel %vm7491_vm5, %v3590_v63, 0 }
 0x3cb   : > { %vm8367_vm5 = vnez %v8312_v34 }
 0x3cc   : > { %v2978_v19 = vshrl.u32 %v2913_v24, 16  ;;  %v2981_v20 = vshll.u32 %v2913_v24, 16  ;;  %v3429_v16 = vsel %vm8364_vm8, %v3424_v50, %v3428_v10  ;;  %v5496_v50 = vld [vmem:[#allocation2 + $0x40] sm:$0xff] }
 0x3cd   : > { %3084 = vmatmul.bf16.gmra.mxu3 %v2976_v32  ;;  %v7706_v24 = vpop.f32.mrf.mxu3 }
 0x3ce   : > { %3533 = vmatmul.bf16.gmra.mxu1 %v3421_v52  ;;  %v3722_v52 = vshrl.u32 %v3665_v49, 16  ;;  %v2980_v31 = vrot.slane %v2978_v19, 3  ;;  %v2983_v3 = vrot.slane %v2981_v20, 4  ;;  %v7696_v36 = vpop.f32.mrf.mxu2  ;;  %v3323_v49 = vsel %vm8362_vm14, %v3306_v35, 0  ;;  %v5547_v35 = vld [vmem:[#allocation11 + $0x208] sm:$0xff] }
 0x3cf   : > { %v2190_v13 = vpop.f32.mrf.mxu1  ;;  %v3373_v20 = vunpack.c.l.b16 %v3323_v49  ;;  %4269 = vmatpush.bf16.msra.mxu0 %v5547_v35 }
 0x3d0   : > { %v2191_v62 = vadd.f32 %v2190_v13, %v7621_v9  ;;  %v3589_v9 = vld [vmem:[#allocation2 + $0x4c] sm:$0xf]  ;;  %v2984_v21 = vor.u32 %v2983_v3, %v2980_v31  ;;  %v3724_v27 = vrot.slane %v3722_v52, 3  ;;  %v3657_v31 = vunpack.c.l.b16 %v3607_v1 }
 0x3d1   : > { %v2838_v3 = vld [vmem:[#allocation2 + $0x4c] sm:$0xf] }
 0x3d2   : > { %v7692_v32 = vadd.f32 %v2786_v40, %v2191_v62  ;;  %v7698_v40 = vpop.f32.mrf.mxu0  ;;  %v3606_v62 = vsel %vm7469_vm10, %v3589_v9, 0  ;;  %v2985_v7 = vsel %vm8363_vm4, %v7659_v42, %v2984_v21  ;;  %vm8365_vm10 = vmmov %vm8363_vm4  ;;  %vm8368_vm4 = vnez %v8318_v33 }
 0x3d3   : > { %3832 = vmatmul.bf16.gmra.mxu2 %v3720_v26  ;;  %v3727_v26 = vrot.slane %v3725_v46, 4  ;;  %v3656_v46 = vunpack.c.l.b16 %v3606_v62 }
 0x3d4   : > { %3261 = vmatmul.bf16.gmra.mxu0 %v5495_v47  ;;  %v3322_v47 = vsel %vm8361_vm2, %v3305_v43, 0  ;;  %v2855_v43 = vsel %vm7460_vm13, %v2838_v3, 0 }
 0x3d5   : > { %v3372_v19 = vunpack.c.l.b16 %v3322_v47  ;;  %v7715_v52 = vor.u32 %v3727_v26, %v3724_v27  ;;  %v2905_v2 = vunpack.c.l.b16 %v2855_v43  ;;  %v3666_v27 = vpack.c.b16 %v3657_v31, %v3656_v46  ;;  %v3307_v43 = vld [vmem:[#allocation2 + $0x48] sm:$0xf] }
 0x3d6   : > { %v2791_v63 = vpop.f32.mrf.mxu2 }
 0x3d7   : > { %v7700_v13 = vpop.f32.mrf.mxu1  ;;  %v7719_v15 = vpack.c.b16 %v3373_v20, %v3372_v19  ;;  %v3729_v42 = vsel %vm8365_vm10, %v7678_v30, %v7715_v52  ;;  %v2914_v26 = vpack.c.b16 %v2905_v2, %v2905_v2  ;;  %v7732_v30 = vpop.f32.mrf.mxu3  ;;  %v3731_v46 = vshrl.u32 %v3666_v27, 16  ;;  %v3308_v2 = vld [vmem:[#allocation2 + $0x4c] sm:$0xf] }
 0x3d8   : > { %8366 = vst [vmem:[#allocation45_spill] sm:$0xff] %v7732_v30  ;;  %v3734_v31 = vshll.u32 %v3666_v27, 16 }
 0x3d9   : > { %v2987_v1 = vshrl.u32 %v2914_v26, 16  ;;  %v2990_v19 = vshll.u32 %v2914_v26, 16  ;;  %v3438_v60 = vshrl.u32 %v7719_v15, 16 }
 0x3db   : > { %v2992_v3 = vrot.slane %v2990_v19, 4 }
 0x3dd   : > { %3089 = vmatmul.bf16.gmra.mxu3 %v2985_v7  ;;  %v3430_v7 = vshrl.u32 %v7684_v28, 16  ;;  %v3324_v28 = vsel %vm8367_vm5, %v3307_v43, 0 }
 0x3de   : > { %3538 = vmatmul.bf16.gmra.mxu1 %v3429_v16  ;;  %v3434_v16 = vshll.u32 %v7719_v15, 16 }
 0x3df   : > { %v2195_v9 = vpop.f32.mrf.mxu1  ;;  %v3432_v35 = vor.u32 %v3430_v7, %v3428_v10  ;;  %v3374_v7 = vunpack.c.l.b16 %v3324_v28  ;;  %v5497_v28 = vld [vmem:[#allocation2 + $0x48] sm:$0xff] }
 0x3e0   : > { %v2196_v47 = vadd.f32 %v2195_v9, %v7661_v29  ;;  %v2989_v29 = vrot.slane %v2987_v1, 3  ;;  %v3436_v9 = vrot.slane %v3434_v16, 1 }
 0x3e1   : > { %v2766_v49 = vpop.f32.mrf.mxu0 }
 0x3e2   : > { %v7726_v62 = vadd.f32 %v2766_v49, %v7632_v55  ;;  %v7728_v20 = vadd.f32 %v2791_v63, %v2196_v47  ;;  %v3591_v55 = vld [vmem:[#allocation2 + $0x54] sm:$0xf]  ;;  %v2993_v26 = vor.u32 %v2992_v3, %v2989_v29  ;;  %v5538_v63 = vld [vmem:[#allocation11 + $0x1c0] sm:$0xff]  ;;  %v3733_v47 = vrot.slane %v3731_v46, 3  ;;  %v4047_v29 = vld [vmem:[#allocation2 + $0x1c] sm:$0xf] }
 0x3e3   : > { %3837 = vmatmul.bf16.gmra.mxu2 %v3729_v42  ;;  %v3736_v42 = vrot.slane %v3734_v31, 4  ;;  %3988 = vmatpush.bf16.msra.mxu3 %v5538_v63  ;;  %v3608_v27 = vsel %vm7460_vm13, %v3591_v55, 0  ;;  %v3437_v1 = vsel %vm8364_vm8, %v3432_v35, %v3436_v9  ;;  %v4046_v31 = vld [vmem:[#allocation2 + $0x18] sm:$0xf]  ;;  %v4064_v22 = vsel %vm7358_vm3, %v4047_v29, 0  ;;  %vm8373_vm3 = vmmov %vm8364_vm8 }
 0x3e4   : > { %3266 = vmatmul.bf16.gmra.mxu0 %v5496_v50  ;;  %v3325_v50 = vsel %vm8368_vm4, %v3308_v2, 0  ;;  %v2994_v10 = vsel %vm8365_vm10, %v2984_v21, %v2993_v26  ;;  %v3658_v46 = vunpack.c.l.b16 %v3608_v27  ;;  %v7746_v3 = vpop.f32.mrf.mxu3  ;;  %v4063_v43 = vsel %vm7337_vm1, %v4046_v31, 0  ;;  %v7752_v2 = vpop.f32.mrf.mxu2  ;;  %v4048_v55 = vld [vmem:[#allocation2 + $0x20] sm:$0xf]  ;;  %v4049_v21 = vld [vmem:[#allocation2 + $0x24] sm:$0xf]  ;;  %vm8369_vm1 = vmmov %vm8365_vm10 }
 0x3e5   : > { %v7744_v19 = vor.u32 %v3736_v42, %v3733_v47  ;;  %v3375_v16 = vunpack.c.l.b16 %v3325_v50  ;;  %v4113_v35 = vunpack.c.l.b16 %v4063_v43  ;;  %v5546_v26 = vld [vmem:[#allocation11 + $0x200] sm:$0xff]  ;;  %v4065_v63 = vsel %vm7365_vm11, %v4048_v55, 0  ;;  %vm8375_vm13 = vmmov %vm8373_vm3 }
 0x3e6   : > { %v4066_v47 = vsel %vm7375_vm0, %v4049_v21, 0  ;;  %v4114_v42 = vunpack.c.l.b16 %v4064_v22  ;;  %v3667_v50 = vpack.c.b16 %v3658_v46, %v3658_v46  ;;  %4270 = vmatpush.bf16.msra.mxu0 %v5546_v26  ;;  %v3309_v22 = vld [vmem:[#allocation2 + $0x50] sm:$0x1]  ;;  %v2178_v55 = vadd.f32 %v7698_v40, %v7613_v39  ;;  %vm8374_vm0 = vmmov %vm8369_vm1 }
 0x3e7   : > { %v3738_v11 = vsel %vm8369_vm1, %v7715_v52, %v7744_v19  ;;  %v7761_v4 = vpack.c.b16 %v3375_v16, %v3374_v7  ;;  %v7763_v29 = vpop.f32.mrf.mxu1  ;;  %vm8380_vm8 = vmmov %vm8373_vm3  ;;  %vm8381_vm10 = vnez %v8269_v25 }
 0x3e8   : > { %v4130_v31 = vpack.c.b16 %v4114_v42, %v4113_v35  ;;  %v3740_v52 = vshrl.u32 %v3667_v50, 16  ;;  %v3743_v7 = vshll.u32 %v3667_v50, 16  ;;  %v8371_v42 = vld [vmem:[#allocation44_spill] sm:$0xff]  ;;  %vm8382_vm1 = vmmov %vm8373_vm3 }
 0x3e9   : > { %v7734_v49 = vpop.f32.mrf.mxu0  ;;  %v3442_v43 = vshll.u32 %v7761_v4, 16  ;;  %vm8372_vm11 = vnez %v8371_v42  ;;  %v3446_v57 = vshrl.u32 %v7761_v4, 16 }
 0x3ea   : > { %v4142_v46 = vshll.u32 %v4130_v31, 16 }
 0x3eb   : > { %v3444_v26 = vrot.slane %v3442_v43, 1 }
 0x3ec   : > { %v7774_v21 = vpop.f32.mrf.mxu3  ;;  %v4144_v50 = vrot.slane %v4142_v46, 1 }
 0x3ed   : > { %3094 = vmatmul.bf16.gmra.mxu3 %v2994_v10  ;;  %v4115_v10 = vunpack.c.l.b16 %v4065_v63  ;;  %8370 = vst [vmem:[#allocation46_spill] sm:$0xff] %v7774_v21  ;;  %v3742_v63 = vrot.slane %v3740_v52, 3  ;;  %v4050_v52 = vld [vmem:[#allocation2 + $0x28] sm:$0xf] }
 0x3ee   : > { %3543 = vmatmul.bf16.gmra.mxu1 %v3437_v1  ;;  %v4116_v1 = vunpack.c.l.b16 %v4066_v47  ;;  %v3745_v47 = vrot.slane %v3743_v7, 4  ;;  %v4051_v7 = vld [vmem:[#allocation2 + $0x2c] sm:$0xf] }
 0x3ef   : > { %v4068_v46 = vsel %vm8339_vm6, %v4051_v7, 0  ;;  %v5523_v7 = vld [vmem:[#allocation2 + $0x20] sm:$0xff]  ;;  %vm8377_vm6 = vmmov %vm8373_vm3 }
 0x3f0   : > { %v7770_v16 = vpack.c.b16 %v4116_v1, %v4115_v10  ;;  %v5522_v1 = vld [vmem:[#allocation2 + $0x18] sm:$0xff]  ;;  %v3746_v40 = vor.u32 %v3745_v47, %v3742_v63 }
 0x3f1   : > { %v2771_v27 = vpop.f32.mrf.mxu0 }
 0x3f2   : > { %v7766_v59 = vadd.f32 %v2771_v27, %v7672_v45  ;;  %v3440_v45 = vor.u32 %v3438_v60, %v3436_v9  ;;  %v4147_v27 = vshll.u32 %v7770_v16, 16 }
 0x3f3   : > { %3842 = vmatmul.bf16.gmra.mxu2 %v3738_v11  ;;  %v3326_v11 = vsel %vm8372_vm11, %v3309_v22, 0 }
 0x3f4   : > { %3271 = vmatmul.bf16.gmra.mxu0 %v5497_v28  ;;  %v4140_v28 = vshrl.u32 %v4130_v31, 16  ;;  %v3445_v39 = vsel %vm8373_vm3, %v3440_v45, %v3444_v26  ;;  %v3376_v21 = vunpack.c.l.b16 %v3326_v11  ;;  %v4149_v43 = vrot.slane %v4147_v27, 1 }
 0x3f5   : > { %v4067_v31 = vsel %vm8338_vm9, %v4050_v52, 0  ;;  %vm8376_vm9 = vmmov %vm8373_vm3 }
 0x3f6   : > { %v2796_v35 = vpop.f32.mrf.mxu2  ;;  %v4145_v60 = vor.u32 %v4144_v50, %v4140_v28  ;;  %v3385_v45 = vpack.c.b16 %v3376_v21, %v3376_v21  ;;  %v4117_v47 = vunpack.c.l.b16 %v4067_v31  ;;  %v2173_v21 = vadd.f32 %v7653_v56, %v7563_v44 }
 0x3f8   : > { %v3450_v28 = vshll.u32 %v3385_v45, 16  ;;  %v2807_v27 = vadd.f32 %v7734_v49, %v2173_v21  ;;  %v5561_v49 = vld [vmem:[#allocation12 + $0x38] sm:$0xff] }
 0x3f9   : > { %v2773_v15 = vpop.f32.mrf.mxu0  ;;  %4569 = vmatpush.bf16.msra.mxu2 %v5561_v49 }
 0x3fa   : > { %v7779_v10 = vadd.f32 %v2773_v15, %v2178_v55  ;;  %v3747_v55 = vsel %vm8374_vm0, %v7744_v19, %v3746_v40  ;;  %v4118_v15 = vunpack.c.l.b16 %v4068_v46 }
 0x3fb   : > { %v2200_v30 = vpop.f32.mrf.mxu1 }
 0x3fc   : > { %v2201_v9 = vadd.f32 %v2200_v30, %v7706_v24  ;;  %v4150_v24 = vsel %vm8375_vm13, %v4145_v60, %v4149_v43  ;;  %v4132_v19 = vpack.c.b16 %v4118_v15, %v4117_v47 }
 0x3fd   : > { %3989 = vmatmul.bf16.vlgmr.msra.gmra.mxu3 %v5522_v1  ;;  %v3448_v1 = vor.u32 %v3446_v57, %v3444_v26  ;;  %v4052_v26 = vld [vmem:[#allocation2 + $0x30] sm:$0xf] }
 0x3fe   : > { %v7783_v22 = vadd.f32 %v2796_v35, %v2201_v9  ;;  %3548 = vmatmul.bf16.gmra.mxu1 %v3445_v39  ;;  %v7792_v11 = vpop.f32.mrf.mxu2  ;;  %v3452_v39 = vrot.slane %v3450_v28, 1  ;;  %v4155_v60 = vshll.u32 %v4132_v19, 16  ;;  %v4159_v5 = vshrl.u32 %v4132_v19, 16 }
 0x400   : > { %v3060_v30 = vpop.f32.mrf.mxu3  ;;  %v3453_v46 = vsel %vm8376_vm9, %v3448_v1, %v3452_v39  ;;  %v4157_v56 = vrot.slane %v4155_v60, 1 }
 0x401   : > { %v3237_v63 = vpop.f32.mrf.mxu0  ;;  %v3100_v35 = vadd.f32 %v3060_v30, %v7726_v62  ;;  %v4151_v62 = vshrl.u32 %v7770_v16, 16  ;;  %v5569_v16 = vld [vmem:[#allocation14 + $0x38] sm:$0xff]  ;;  %v4069_v30 = vsel %vm8345_vm12, %v4052_v26, 0  ;;  %vm8378_vm12 = vnez %v8247_v51 }
 0x402   : > { %4472 = vmatpush.bf16.msra.mxu1 %v5569_v16  ;;  %v4161_v60 = vor.u32 %v4159_v5, %v4157_v56 }
 0x403   : > { %3847 = vmatmul.bf16.gmra.mxu2 %v3747_v55  ;;  %v7795_v53 = vpop.f32.mrf.mxu1  ;;  %v7798_v50 = vadd.f32 %v3237_v63, %v3100_v35  ;;  %v4153_v44 = vor.u32 %v4151_v62, %v4149_v43  ;;  %v4053_v63 = vld [vmem:[#allocation2 + $0x34] sm:$0xf]  ;;  %v4119_v35 = vunpack.c.l.b16 %v4069_v30 }
 0x404   : > { %4271 = vmatmul.bf16.vlgmr.msra.gmra.mxu0 %v4150_v24  ;;  %v4070_v47 = vsel %vm8346_vm7, %v4053_v63, 0  ;;  %vm8379_vm7 = vnez %v8249_v54  ;;  %v2183_v63 = vadd.f32 %v7582_v18, %v7573_v61  ;;  %v4057_v61 = vld [vmem:[#allocation2 + $0x44] sm:$0xf]  ;;  %v5567_v18 = vld [vmem:[#allocation14 + $0x28] sm:$0xff] }
 0x405   : > { %v4120_v57 = vunpack.c.l.b16 %v4070_v47 }
 0x406   : > { %v2801_v31 = vpop.f32.mrf.mxu2  ;;  %v2811_v30 = vadd.f32 %v7580_v37, %v2183_v63  ;;  %v4074_v37 = vsel %vm8358_vm15, %v4057_v61, 0  ;;  %vm8383_vm15 = vmmov %vm8382_vm1 }
 0x408   : > { %v3062_v9 = vpop.f32.mrf.mxu3 }
 0x409   : > { %v3239_v40 = vpop.f32.mrf.mxu0  ;;  %v3101_v52 = vadd.f32 %v3062_v9, %v2807_v27  ;;  %v4133_v27 = vpack.c.b16 %v4120_v57, %v4119_v35  ;;  %v5524_v9 = vld [vmem:[#allocation2 + $0x28] sm:$0xff]  ;;  %v5525_v35 = vld [vmem:[#allocation2 + $0x30] sm:$0xff] }
 0x40b   : > { %v2205_v4 = vpop.f32.mrf.mxu1  ;;  %v7805_v55 = vadd.f32 %v3239_v40, %v3101_v52  ;;  %v4163_v40 = vshll.u32 %v4133_v27, 16 }
 0x40c   : > { %v2206_v45 = vadd.f32 %v2205_v4, %v7746_v3  ;;  %v4158_v3 = vsel %vm8377_vm6, %v4153_v44, %v4157_v56  ;;  %v4054_v4 = vld [vmem:[#allocation2 + $0x38] sm:$0xf] }
 0x40d   : > { %3994 = vmatmul.bf16.gmra.mxu3 %v5523_v7  ;;  %v4165_v52 = vrot.slane %v4163_v40, 1  ;;  %v5560_v7 = vld [vmem:[#allocation12 + $0x30] sm:$0xff] }
 0x40e   : > { %v7808_v24 = vadd.f32 %v2801_v31, %v2206_v45  ;;  %3553 = vmatmul.bf16.gmra.mxu1 %v3453_v46  ;;  %v4055_v31 = vld [vmem:[#allocation2 + $0x3c] sm:$0xf]  ;;  %4570 = vmatpush.bf16.msra.mxu2 %v5560_v7  ;;  %v4071_v46 = vsel %vm8378_vm12, %v4054_v4, 0  ;;  %v2188_v7 = vadd.f32 %v7657_v8, %v7608_v48  ;;  %v4059_v48 = vld [vmem:[#allocation2 + $0x4c] sm:$0xf]  ;;  %v5566_v8 = vld [vmem:[#allocation14 + $0x20] sm:$0xff] }
 0x40f   : > { %v4072_v19 = vsel %vm8379_vm7, %v4055_v31, 0  ;;  %v4121_v49 = vunpack.c.l.b16 %v4071_v46 }
 0x410   : > { %v3065_v43 = vpop.f32.mrf.mxu3  ;;  %v4122_v56 = vunpack.c.l.b16 %v4072_v19  ;;  %v2813_v31 = vadd.f32 %v7651_v17, %v2188_v7  ;;  %v4076_v17 = vsel %vm8362_vm14, %v4059_v48, 0  ;;  %v5528_v48 = vld [vmem:[#allocation2 + $0x48] sm:$0xff]  ;;  %vm8385_vm14 = vmmov %vm8382_vm1 }
 0x411   : > { %v3242_v15 = vpop.f32.mrf.mxu0  ;;  %v3102_v28 = vadd.f32 %v3065_v43, %v7766_v59  ;;  %v5568_v59 = vld [vmem:[#allocation14 + $0x30] sm:$0xff] }
 0x412   : > { %4473 = vmatpush.bf16.msra.mxu1 %v5568_v59  ;;  %v4134_v51 = vpack.c.b16 %v4122_v56, %v4121_v49 }
 0x413   : > { %v7816_v21 = vadd.f32 %v3242_v15, %v3102_v28  ;;  %v4167_v15 = vshrl.u32 %v4133_v27, 16 }
 0x414   : > { %4276 = vmatmul.bf16.gmra.mxu0 %v4158_v3  ;;  %v4171_v3 = vshll.u32 %v4134_v51, 16  ;;  %v4175_v46 = vshrl.u32 %v4134_v51, 16 }
 0x415   : > { %v4169_v28 = vor.u32 %v4167_v15, %v4165_v52  ;;  %v4126_v15 = vunpack.c.l.b16 %v4076_v17  ;;  %v5556_v17 = vld [vmem:[#allocation12 + $0x10] sm:$0xff] }
 0x416   : > { %4474 = vmatpush.bf16.msra.mxu1 %v5567_v18  ;;  %v5527_v18 = vld [vmem:[#allocation2 + $0x40] sm:$0xff] }
 0x418   : > { %v3067_v39 = vpop.f32.mrf.mxu3 }
 0x419   : > { %v3244_v1 = vpop.f32.mrf.mxu0  ;;  %v3103_v23 = vadd.f32 %v3067_v39, %v7779_v10  ;;  %v4166_v10 = vsel %vm8380_vm8, %v4161_v60, %v4165_v52  ;;  %v4056_v39 = vld [vmem:[#allocation2 + $0x40] sm:$0xf]  ;;  %v4124_v60 = vunpack.c.l.b16 %v4074_v37 }
 0x41a   : > { %v4073_v5 = vsel %vm8381_vm10, %v4056_v39, 0  ;;  %4475 = vmatpush.bf16.msra.mxu1 %v5566_v8 }
 0x41b   : > { %v7819_v62 = vadd.f32 %v3244_v1, %v3103_v23  ;;  %v4173_v1 = vrot.slane %v4171_v3, 1 }
 0x41d   : > { %3999 = vmatmul.bf16.gmra.mxu3 %v5524_v9  ;;  %v4174_v40 = vsel %vm8382_vm1, %v4169_v28, %v4173_v1  ;;  %v4123_v9 = vunpack.c.l.b16 %v4073_v5  ;;  %v4177_v49 = vor.u32 %v4175_v46, %v4173_v1 }
 0x41f   : > { %v4135_v25 = vpack.c.b16 %v4124_v60, %v4123_v9 }
 0x420   : > { %v3070_v44 = vpop.f32.mrf.mxu3 }
 0x421   : > { %v3247_v45 = vpop.f32.mrf.mxu0  ;;  %v3104_v26 = vadd.f32 %v3070_v44, %v7571_v38  ;;  %v5559_v38 = vld [vmem:[#allocation12 + $0x28] sm:$0xff]  ;;  %v4179_v19 = vshll.u32 %v4135_v25, 16 }
 0x422   : > { %4571 = vmatpush.bf16.msra.mxu2 %v5559_v38  ;;  %v4183_v38 = vshrl.u32 %v4135_v25, 16 }
 0x423   : > { %v7829_v16 = vadd.f32 %v3247_v45, %v3104_v26  ;;  %v4181_v56 = vrot.slane %v4179_v19, 1  ;;  %v4058_v26 = vld [vmem:[#allocation2 + $0x48] sm:$0xf]  ;;  %v2803_v19 = vpop.f32.mrf.mxu2 }
 0x424   : > { %4281 = vmatmul.bf16.gmra.mxu0 %v4166_v10  ;;  %v5526_v10 = vld [vmem:[#allocation2 + $0x38] sm:$0xff]  ;;  %v4075_v63 = vsel %vm8361_vm2, %v4058_v26, 0  ;;  %vm8384_vm2 = vmmov %vm8382_vm1 }
 0x425   : > { %v4185_v37 = vor.u32 %v4183_v38, %v4181_v56 }
 0x428   : > { %v3072_v47 = vpop.f32.mrf.mxu3 }
 0x429   : > { %v3249_v54 = vpop.f32.mrf.mxu0  ;;  %v3105_v43 = vadd.f32 %v3072_v47, %v2811_v30  ;;  %v4182_v30 = vsel %vm8383_vm15, %v4177_v49, %v4181_v56  ;;  %v4125_v47 = vunpack.c.l.b16 %v4075_v63 }
 0x42b   : > { %v7832_v57 = vadd.f32 %v3249_v54, %v3105_v43  ;;  %v2193_v43 = vadd.f32 %v7700_v13, %v7646_v6  ;;  %v4136_v12 = vpack.c.b16 %v4126_v15, %v4125_v47  ;;  %v4061_v6 = vld [vmem:[#allocation2 + $0x54] sm:$0xf]  ;;  %v5565_v13 = vld [vmem:[#allocation14 + $0x18] sm:$0xff] }
 0x42c   : > { %4476 = vmatpush.bf16.msra.mxu1 %v5565_v13  ;;  %v5555_v13 = vld [vmem:[#allocation12 + $0x8] sm:$0xff] }
 0x42d   : > { %4004 = vmatmul.bf16.gmra.mxu3 %v5525_v35  ;;  %v2815_v28 = vadd.f32 %v7696_v36, %v2193_v43  ;;  %v4187_v39 = vshll.u32 %v4136_v12, 16  ;;  %v4078_v36 = vsel %vm8368_vm4, %v4061_v6, 0  ;;  %v4191_v49 = vshrl.u32 %v4136_v12, 16  ;;  %v8386_v43 = vld [vmem:[#allocation45_spill] sm:$0xff] }
 0x42e   : > { %v4128_v25 = vunpack.c.l.b16 %v4078_v36  ;;  %v2203_v12 = vadd.f32 %v7795_v53, %v8386_v43 }
 0x430   : > { %v3075_v23 = vpop.f32.mrf.mxu3  ;;  %v2819_v38 = vadd.f32 %v7792_v11, %v2203_v12 }
 0x431   : > { %v3252_v27 = vpop.f32.mrf.mxu0  ;;  %v3106_v52 = vadd.f32 %v3075_v23, %v7615_v0  ;;  %v5558_v0 = vld [vmem:[#allocation12 + $0x20] sm:$0xff] }
 0x432   : > { %4572 = vmatpush.bf16.msra.mxu2 %v5558_v0 }
 0x433   : > { %v7842_v4 = vadd.f32 %v3252_v27, %v3106_v52  ;;  %v4189_v27 = vrot.slane %v4187_v39, 1 }
 0x434   : > { %4286 = vmatmul.bf16.gmra.mxu0 %v4174_v40  ;;  %v4060_v40 = vld [vmem:[#allocation2 + $0x50] sm:$0xf] }
 0x435   : > { %v4077_v23 = vsel %vm8367_vm5, %v4060_v40, 0  ;;  %v4190_v60 = vsel %vm8384_vm2, %v4185_v37, %v4189_v27  ;;  %vm8387_vm5 = vmmov %vm8382_vm1 }
 0x436   : > { %v4127_v7 = vunpack.c.l.b16 %v4077_v23  ;;  %v5563_v23 = vld [vmem:[#allocation14 + $0x8] sm:$0xff] }
 0x438   : > { %v3077_v59 = vpop.f32.mrf.mxu3  ;;  %v4137_v34 = vpack.c.b16 %v4128_v25, %v4127_v7  ;;  %v8388_v7 = vld [vmem:[#allocation46_spill] sm:$0xff] }
 0x439   : > { %v3254_v14 = vpop.f32.mrf.mxu0  ;;  %v3107_v45 = vadd.f32 %v3077_v59, %v2813_v31  ;;  %v2207_v31 = vpop.f32.mrf.mxu1  ;;  %v2198_v59 = vadd.f32 %v7763_v29, %v7686_v41  ;;  %v4062_v29 = vld [vmem:[#allocation2 + $0x58] sm:$0x1] }
 0x43a   : > { %v4195_v56 = vshll.u32 %v4137_v34, 16  ;;  %v3813_v41 = vpop.f32.mrf.mxu2  ;;  %v2208_v25 = vadd.f32 %v2207_v31, %v8388_v7 }
 0x43b   : > { %v7845_v44 = vadd.f32 %v3254_v14, %v3107_v45  ;;  %v2817_v33 = vadd.f32 %v7752_v2, %v2198_v59  ;;  %v4079_v2 = vsel %vm8372_vm11, %v4062_v29, 0  ;;  %v5554_v59 = vld [vmem:[#allocation12] sm:$0xff] }
 0x43c   : > { %v4197_v63 = vrot.slane %v4195_v56, 1  ;;  %v4129_v15 = vunpack.c.l.b16 %v4079_v2 }
 0x43d   : > { %4009 = vmatmul.bf16.gmra.mxu3 %v5526_v10 }
 0x440   : > { %v3080_v54 = vpop.f32.mrf.mxu3 }
 0x441   : > { %v3257_v51 = vpop.f32.mrf.mxu0  ;;  %v3108_v3 = vadd.f32 %v3080_v54, %v7692_v32  ;;  %v5557_v32 = vld [vmem:[#allocation12 + $0x18] sm:$0xff]  ;;  %v3519_v0 = vpop.f32.mrf.mxu1 }
 0x442   : > { %4573 = vmatpush.bf16.msra.mxu2 %v5557_v32  ;;  %v3815_v42 = vpop.f32.mrf.mxu2  ;;  %v5529_v32 = vld [vmem:[#allocation2 + $0x50] sm:$0xff] }
 0x443   : > { %v7855_v35 = vadd.f32 %v3257_v51, %v3108_v3  ;;  %v5564_v51 = vld [vmem:[#allocation14 + $0x10] sm:$0xff] }
 0x444   : > { %4291 = vmatmul.bf16.gmra.mxu0 %v4182_v30  ;;  %4477 = vmatpush.bf16.msra.mxu1 %v5564_v51 }
 0x446   : > { %4574 = vmatpush.bf16.msra.mxu2 %v5556_v17 }
 0x448   : > { %v3082_v1 = vpop.f32.mrf.mxu3  ;;  %4478 = vmatpush.bf16.msra.mxu1 %v5563_v23 }
 0x449   : > { %v3259_v58 = vpop.f32.mrf.mxu0  ;;  %v3109_v61 = vadd.f32 %v3082_v1, %v2815_v28  ;;  %v3521_v28 = vpop.f32.mrf.mxu1  ;;  %v4138_v1 = vpack.c.b16 %v4129_v15, %v4129_v15 }
 0x44a   : > { %4575 = vmatpush.bf16.msra.mxu2 %v5555_v13 }
 0x44b   : > { %v7858_v5 = vadd.f32 %v3259_v58, %v3109_v61  ;;  %v4203_v37 = vshll.u32 %v4138_v1, 16 }
 0x44d   : > { %4014 = vmatmul.bf16.gmra.mxu3 %v5527_v18  ;;  %v4199_v18 = vshrl.u32 %v4137_v34, 16  ;;  %v4205_v6 = vrot.slane %v4203_v37, 1  ;;  %v2821_v34 = vadd.f32 %v2803_v19, %v2208_v25  ;;  %v3560_v19 = vadd.f32 %v3521_v28, %v7805_v55  ;;  %v8392_v28 = vld [vmem:[#allocation40_spill] sm:$0xff] }
 0x44e   : > { %4576 = vmatpush.bf16.msra.mxu2 %v5554_v59  ;;  %v8393_v59 = vld [vmem:[#allocation37_spill] sm:$0xff] }
 0x450   : > { %v3085_v52 = vpop.f32.mrf.mxu3 }
 0x451   : > { %v3262_v9 = vpop.f32.mrf.mxu0  ;;  %v3110_v14 = vadd.f32 %v3085_v52, %v7728_v20  ;;  %v4193_v20 = vor.u32 %v4191_v49, %v4189_v27  ;;  %v3524_v53 = vpop.f32.mrf.mxu1 }
 0x452   : > { %v3561_v55 = vadd.f32 %v3524_v53, %v7816_v21 }
 0x453   : > { %v7868_v46 = vadd.f32 %v3262_v9, %v3110_v14  ;;  %v4198_v54 = vsel %vm8385_vm14, %v4193_v20, %v4197_v63 }
 0x454   : > { %4296 = vmatmul.bf16.gmra.mxu0 %v4190_v60  ;;  %v3818_v60 = vpop.f32.mrf.mxu2 }
 0x458   : > { %v3087_v10 = vpop.f32.mrf.mxu3 }
 0x459   : > { %v3264_v45 = vpop.f32.mrf.mxu0  ;;  %v3111_v26 = vadd.f32 %v3087_v10, %v2817_v33  ;;  %v3526_v33 = vpop.f32.mrf.mxu1 }
 0x45b   : > { %v7871_v8 = vadd.f32 %v3264_v45, %v3111_v26  ;;  %v5562_v45 = vld [vmem:[#allocation14] sm:$0xff]  ;;  %v3559_v26 = vadd.f32 %v3519_v0, %v7798_v50  ;;  %v3854_v50 = vadd.f32 %v3815_v42, %v3560_v19  ;;  %v3855_v42 = vadd.f32 %v3818_v60, %v3561_v55 }
 0x45c   : > { %4479 = vmatpush.bf16.msra.mxu1 %v5562_v45 }
 0x45d   : > { %4019 = vmatmul.bf16.gmra.mxu3 %v5528_v48  ;;  %v3820_v48 = vpop.f32.mrf.mxu2  ;;  %v3853_v31 = vadd.f32 %v3813_v41, %v3559_v26  ;;  %v7903_v41 = vld [vmem:[%s8391_s10] ss:$0 sm:$0xff] }
 0x460   : > { %v3090_v47 = vpop.f32.mrf.mxu3 }
 0x461   : > { %v3267_v30 = vpop.f32.mrf.mxu0  ;;  %v3112_v3 = vadd.f32 %v3090_v47, %v7783_v22  ;;  %v4201_v22 = vor.u32 %v4199_v18, %v4197_v63  ;;  %v3529_v29 = vpop.f32.mrf.mxu1 }
 0x462   : > { %v3563_v7 = vadd.f32 %v3529_v29, %v7829_v16 }
 0x463   : > { %v7879_v58 = vadd.f32 %v3267_v30, %v3112_v3  ;;  %v4206_v9 = vsel %vm8387_vm5, %v4201_v22, %v4205_v6  ;;  %v3562_v6 = vadd.f32 %v3526_v33, %v7819_v62 }
 0x464   : > { %4301 = vmatmul.bf16.gmra.mxu0 %v4198_v54  ;;  %v7897_v54 = vld [vmem:[%s8390_s22] ss:$0 sm:$0xff]  ;;  %s6102_s22 = scalar_lea.hbm %s8401_s5, 512 }
 0x465   : > { %v3823_v2 = vpop.f32.mrf.mxu2  ;;  %v3856_v23 = vadd.f32 %v3820_v48, %v3562_v6  ;;  %p6104_p4 = scmp.lt.s32.totalorder %s6102_s22, %s6098_s18 }
 0x466   : > { %v3857_v33 = vadd.f32 %v3823_v2, %v3563_v7 }
 0x467   : > { %p6105_p10 = por %p6104_p4, %p6103_p13 }
 0x468   : > { %v3092_v61 = vpop.f32.mrf.mxu3 }
 0x469   : > { %v3269_v39 = vpop.f32.mrf.mxu0  ;;  %v3113_v27 = vadd.f32 %v3092_v61, %v2819_v38  ;;  %v3531_v43 = vpop.f32.mrf.mxu1  ;;  %p6106_p2 = pnand %p6105_p10, %p6101_p11 }
 0x46b   : > { %v7882_v40 = vadd.f32 %v3269_v39, %v3113_v27 }
 0x46d   : > { %4024 = vmatmul.bf16.gmra.mxu3 %v5529_v32  ;;  %v3825_v39 = vpop.f32.mrf.mxu2 }
 0x470   : > { %v3095_v11 = vpop.f32.mrf.mxu3 }
 0x471   : > { %v3272_v36 = vpop.f32.mrf.mxu0  ;;  %v3114_v52 = vadd.f32 %v3095_v11, %v7808_v24  ;;  %v8389_v24 = vld [vmem:[#allocation36_spill] sm:$0xff]  ;;  %v3534_v13 = vpop.f32.mrf.mxu1 }
 0x472   : > { %4480 = vmatmul.bf16.vlgmr.msra.gmra.mxu1 %v8389_v24 }
 0x473   : > { %v7887_v14 = vadd.f32 %v3272_v36, %v3114_v52 }
 0x474   : > { %4306 = vmatmul.bf16.gmra.mxu0 %v4206_v9 }
 0x475   : > { %v3828_v11 = vpop.f32.mrf.mxu2 }
 0x478   : > { %v3097_v49 = vpop.f32.mrf.mxu3 }
 0x479   : > { %v3274_v10 = vpop.f32.mrf.mxu0  ;;  %v3115_v56 = vadd.f32 %v3097_v49, %v2821_v34  ;;  %v3536_v45 = vpop.f32.mrf.mxu1 }
 0x47b   : > { %v7890_v20 = vadd.f32 %v3274_v10, %v3115_v56 }
 0x480   : > { %v3990_v17 = vpop.f32.mrf.mxu3 }
 0x481   : > { %v4272_v63 = vpop.f32.mrf.mxu0  ;;  %v4030_v51 = vadd.f32 %v3990_v17, %v3853_v31  ;;  %v3564_v31 = vadd.f32 %v3531_v43, %v7832_v57 }
 0x482   : > { %4485 = vmatmul.bf16.gmra.mxu1 %v8392_v28 }
 0x483   : > { %v4312_v30 = vadd.f32 %v4272_v63, %v4030_v51  ;;  %v3830_v63 = vpop.f32.mrf.mxu2  ;;  %v3858_v29 = vadd.f32 %v3825_v39, %v3564_v31 }
 0x485   : > { %v4332_v15 = vmul.f32 %v7897_v54, %v4312_v30  ;;  %v3539_v30 = vpop.f32.mrf.mxu1 }
 0x487   : > { %v4352_v1 = vadd.f32 %v7903_v41, %v4332_v15  ;;  %v8394_v15 = vld [vmem:[#allocation41_spill] sm:$0xff] }
 0x488   : > { %v3992_v47 = vpop.f32.mrf.mxu3 }
 0x489   : > { %v4274_v0 = vpop.f32.mrf.mxu0  ;;  %v4031_v3 = vadd.f32 %v3992_v47, %v3854_v50  ;;  %v4368_v27 = vmax.f32 %v4352_v1, 0.0 }
 0x48b   : > { %v4313_v12 = vadd.f32 %v4274_v0, %v4031_v3  ;;  %v3565_v0 = vadd.f32 %v3534_v13, %v7842_v4  ;;  %v3833_v3 = vpop.f32.mrf.mxu2 }
 0x48d   : > { %v4333_v38 = vmul.f32 %v7897_v54, %v4313_v12  ;;  %v3859_v43 = vadd.f32 %v3828_v11, %v3565_v0 }
 0x48f   : > { %v4353_v61 = vadd.f32 %v7903_v41, %v4333_v38 }
 0x490   : > { %v3995_v37 = vpop.f32.mrf.mxu3 }
 0x491   : > { %v4277_v18 = vpop.f32.mrf.mxu0  ;;  %v4369_v32 = vmax.f32 %v4353_v61, 0.0  ;;  %v4032_v22 = vadd.f32 %v3995_v37, %v3855_v42  ;;  %v3566_v61 = vadd.f32 %v3536_v45, %v7845_v44 }
 0x492   : > { %4490 = vmatmul.bf16.gmra.mxu1 %v8393_v59 }
 0x493   : > { %v4384_v21 = vpack.c.bf16 %v4369_v32, %v4368_v27  ;;  %v4314_v53 = vadd.f32 %v4277_v18, %v4032_v22  ;;  %v3541_v18 = vpop.f32.mrf.mxu1  ;;  %v3860_v27 = vadd.f32 %v3830_v63, %v3566_v61  ;;  %v3835_v32 = vpop.f32.mrf.mxu2 }
 0x494   : > { %v3568_v45 = vadd.f32 %v3541_v18, %v7858_v5 }
 0x495   : > { %4577 = vmatmul.bf16.vlgmr.msra.gmra.mxu2 %v4384_v21  ;;  %v4334_v60 = vmul.f32 %v7897_v54, %v4314_v53  ;;  %v3567_v53 = vadd.f32 %v3539_v30, %v7855_v35 }
 0x497   : > { %v4354_v62 = vadd.f32 %v7903_v41, %v4334_v60  ;;  %v3861_v60 = vadd.f32 %v3833_v3, %v3567_v53 }
 0x498   : > { %v3997_v9 = vpop.f32.mrf.mxu3 }
 0x499   : > { %v4279_v36 = vpop.f32.mrf.mxu0  ;;  %v4033_v52 = vadd.f32 %v3997_v9, %v3856_v23  ;;  %v4370_v48 = vmax.f32 %v4354_v62, 0.0 }
 0x49b   : > { %v4315_v25 = vadd.f32 %v4279_v36, %v4033_v52  ;;  %v8395_v36 = vld [vmem:[#allocation38_spill] sm:$0xff]  ;;  %v3544_v9 = vpop.f32.mrf.mxu1  ;;  %v3838_v59 = vpop.f32.mrf.mxu2 }
 0x49c   : > { %v3569_v63 = vadd.f32 %v3544_v9, %v7868_v46 }
 0x49d   : > { %v4335_v34 = vmul.f32 %v7897_v54, %v4315_v25 }
 0x49f   : > { %v4355_v10 = vadd.f32 %v7903_v41, %v4335_v34 }
 0x4a0   : > { %v4000_v56 = vpop.f32.mrf.mxu3 }
 0x4a1   : > { %v4282_v49 = vpop.f32.mrf.mxu0  ;;  %v4034_v26 = vadd.f32 %v4000_v56, %v3857_v33  ;;  %v4371_v24 = vmax.f32 %v4355_v10, 0.0 }
 0x4a2   : > { %4495 = vmatmul.bf16.gmra.mxu1 %v8394_v15 }
 0x4a3   : > { %v4385_v16 = vpack.c.bf16 %v4371_v24, %v4370_v48  ;;  %v4316_v17 = vadd.f32 %v4282_v49, %v4034_v26  ;;  %v3862_v49 = vadd.f32 %v3835_v32, %v3568_v45  ;;  %v3546_v56 = vpop.f32.mrf.mxu1 }
 0x4a5   : > { %4582 = vmatmul.bf16.gmra.mxu2 %v4385_v16  ;;  %v4336_v2 = vmul.f32 %v7897_v54, %v4316_v17  ;;  %v3840_v16 = vpop.f32.mrf.mxu2 }
 0x4a7   : > { %v4356_v57 = vadd.f32 %v7903_v41, %v4336_v2 }
 0x4a8   : > { %v4002_v19 = vpop.f32.mrf.mxu3 }
 0x4a9   : > { %v4284_v51 = vpop.f32.mrf.mxu0  ;;  %v4035_v50 = vadd.f32 %v4002_v19, %v3858_v29  ;;  %v4372_v42 = vmax.f32 %v4356_v57, 0.0  ;;  %v8396_v29 = vld [vmem:[#allocation42_spill] sm:$0xff]  ;;  %v3863_v19 = vadd.f32 %v3838_v59, %v3569_v63 }
 0x4ab   : > { %v4317_v47 = vadd.f32 %v4284_v51, %v4035_v50  ;;  %v3549_v0 = vpop.f32.mrf.mxu1 }
 0x4ad   : > { %v4337_v55 = vmul.f32 %v7897_v54, %v4317_v47  ;;  %v3843_v57 = vpop.f32.mrf.mxu2 }
 0x4af   : > { %v4357_v12 = vadd.f32 %v7903_v41, %v4337_v55  ;;  %v3570_v55 = vadd.f32 %v3546_v56, %v7871_v8 }
 0x4b0   : > { %v4005_v1 = vpop.f32.mrf.mxu3 }
 0x4b1   : > { %v4287_v28 = vpop.f32.mrf.mxu0  ;;  %v4036_v38 = vadd.f32 %v4005_v1, %v3859_v43  ;;  %v4373_v39 = vmax.f32 %v4357_v12, 0.0  ;;  %v3864_v12 = vadd.f32 %v3840_v16, %v3570_v55 }
 0x4b2   : > { %4500 = vmatmul.bf16.gmra.mxu1 %v8395_v36 }
 0x4b3   : > { %v4386_v4 = vpack.c.bf16 %v4373_v39, %v4372_v42  ;;  %v4318_v37 = vadd.f32 %v4287_v28, %v4036_v38  ;;  %v3571_v39 = vadd.f32 %v3549_v0, %v7879_v58  ;;  %v3551_v61 = vpop.f32.mrf.mxu1 }
 0x4b4   : > { %v3572_v36 = vadd.f32 %v3551_v61, %v7882_v40 }
 0x4b5   : > { %4587 = vmatmul.bf16.gmra.mxu2 %v4386_v4  ;;  %v4338_v21 = vmul.f32 %v7897_v54, %v4318_v37  ;;  %v8397_v4 = vld [vmem:[#allocation39_spill] sm:$0xff]  ;;  %v3845_v32 = vpop.f32.mrf.mxu2 }
 0x4b7   : > { %v4358_v44 = vadd.f32 %v7903_v41, %v4338_v21 }
 0x4b8   : > { %v4007_v6 = vpop.f32.mrf.mxu3 }
 0x4b9   : > { %v4289_v22 = vpop.f32.mrf.mxu0  ;;  %v4037_v13 = vadd.f32 %v4007_v6, %v3860_v27  ;;  %v4374_v62 = vmax.f32 %v4358_v44, 0.0  ;;  %v3865_v27 = vadd.f32 %v3843_v57, %v3571_v39  ;;  %v3866_v44 = vadd.f32 %v3845_v32, %v3572_v36 }
 0x4bb   : > { %v4319_v23 = vadd.f32 %v4289_v22, %v4037_v13  ;;  %v3554_v9 = vpop.f32.mrf.mxu1 }
 0x4bd   : > { %v4339_v11 = vmul.f32 %v7897_v54, %v4319_v23  ;;  %v3848_v59 = vpop.f32.mrf.mxu2 }
 0x4bf   : > { %v4359_v52 = vadd.f32 %v7903_v41, %v4339_v11 }
 0x4c0   : > { %v4010_v25 = vpop.f32.mrf.mxu3 }
 0x4c1   : > { %v4292_v7 = vpop.f32.mrf.mxu0  ;;  %v4038_v34 = vadd.f32 %v4010_v25, %v3861_v60  ;;  %v4375_v33 = vmax.f32 %v4359_v52, 0.0 }
 0x4c2   : > { %4505 = vmatmul.bf16.gmra.mxu1 %v8396_v29 }
 0x4c3   : > { %v4387_v35 = vpack.c.bf16 %v4375_v33, %v4374_v62  ;;  %v4320_v10 = vadd.f32 %v4292_v7, %v4038_v34  ;;  %v3573_v34 = vadd.f32 %v3554_v9, %v7887_v14  ;;  %v8398_v33 = vld [vmem:[#allocation43_spill] sm:$0xff] }
 0x4c5   : > { %4592 = vmatmul.bf16.gmra.mxu2 %v4387_v35  ;;  %v4340_v24 = vmul.f32 %v7897_v54, %v4320_v10  ;;  %v3867_v35 = vadd.f32 %v3848_v59, %v3573_v34  ;;  %v3556_v10 = vpop.f32.mrf.mxu1  ;;  %v3850_v14 = vpop.f32.mrf.mxu2 }
 0x4c6   : > { %v3574_v63 = vadd.f32 %v3556_v10, %v7890_v20 }
 0x4c7   : > { %v4360_v5 = vadd.f32 %v7903_v41, %v4340_v24 }
 0x4c8   : > { %v4012_v48 = vpop.f32.mrf.mxu3  ;;  %v3868_v29 = vadd.f32 %v3850_v14, %v3574_v63 }
 0x4c9   : > { %v4294_v26 = vpop.f32.mrf.mxu0  ;;  %v4039_v31 = vadd.f32 %v4012_v48, %v3862_v49  ;;  %v4376_v15 = vmax.f32 %v4360_v5, 0.0 }
 0x4cb   : > { %v4321_v17 = vadd.f32 %v4294_v26, %v4039_v31 }
 0x4cd   : > { %v4341_v51 = vmul.f32 %v7897_v54, %v4321_v17 }
 0x4cf   : > { %v4361_v30 = vadd.f32 %v7903_v41, %v4341_v51 }
 0x4d0   : > { %v4015_v50 = vpop.f32.mrf.mxu3 }
 0x4d1   : > { %v4297_v2 = vpop.f32.mrf.mxu0  ;;  %v4040_v47 = vadd.f32 %v4015_v50, %v3863_v19  ;;  %v4377_v3 = vmax.f32 %v4361_v30, 0.0 }
 0x4d2   : > { %4510 = vmatmul.bf16.gmra.mxu1 %v8397_v4 }
 0x4d3   : > { %v4388_v46 = vpack.c.bf16 %v4377_v3, %v4376_v15  ;;  %v4322_v43 = vadd.f32 %v4297_v2, %v4040_v47 }
 0x4d5   : > { %4597 = vmatmul.bf16.gmra.mxu2 %v4388_v46  ;;  %v4342_v38 = vmul.f32 %v7897_v54, %v4322_v43 }
 0x4d7   : > { %v4362_v8 = vadd.f32 %v7903_v41, %v4342_v38 }
 0x4d8   : > { %v4017_v1 = vpop.f32.mrf.mxu3 }
 0x4d9   : > { %v4299_v28 = vpop.f32.mrf.mxu0  ;;  %v4041_v42 = vadd.f32 %v4017_v1, %v3864_v12  ;;  %v4378_v53 = vmax.f32 %v4362_v8, 0.0 }
 0x4db   : > { %v4323_v18 = vadd.f32 %v4299_v28, %v4041_v42 }
 0x4dd   : > { %v4343_v37 = vmul.f32 %v7897_v54, %v4323_v18 }
 0x4df   : > { %v4363_v22 = vadd.f32 %v7903_v41, %v4343_v37 }
 0x4e0   : > { %v4020_v21 = vpop.f32.mrf.mxu3 }
 0x4e1   : > { %v4302_v6 = vpop.f32.mrf.mxu0  ;;  %v4042_v13 = vadd.f32 %v4020_v21, %v3865_v27  ;;  %v4379_v23 = vmax.f32 %v4363_v22, 0.0 }
 0x4e2   : > { %4515 = vmatmul.bf16.gmra.mxu1 %v8398_v33 }
 0x4e3   : > { %v4389_v58 = vpack.c.bf16 %v4379_v23, %v4378_v53  ;;  %v4324_v11 = vadd.f32 %v4302_v6, %v4042_v13 }
 0x4e5   : > { %4602 = vmatmul.bf16.gmra.mxu2 %v4389_v58  ;;  %v4344_v7 = vmul.f32 %v7897_v54, %v4324_v11 }
 0x4e7   : > { %v4364_v40 = vadd.f32 %v7903_v41, %v4344_v7 }
 0x4e8   : > { %v4022_v52 = vpop.f32.mrf.mxu3 }
 0x4e9   : > { %v4304_v60 = vpop.f32.mrf.mxu0  ;;  %v4043_v25 = vadd.f32 %v4022_v52, %v3866_v44  ;;  %v4380_v24 = vmax.f32 %v4364_v40, 0.0 }
 0x4eb   : > { %v4325_v62 = vadd.f32 %v4304_v60, %v4043_v25 }
 0x4ed   : > { %v4345_v45 = vmul.f32 %v7897_v54, %v4325_v62 }
 0x4ef   : > { %v4365_v49 = vadd.f32 %v7903_v41, %v4345_v45  ;;  %v4481_v2 = vpop.f32.mrf.mxu1 }
 0x4f0   : > { %v4025_v26 = vpop.f32.mrf.mxu3 }
 0x4f1   : > { %v4307_v56 = vpop.f32.mrf.mxu0  ;;  %v4044_v48 = vadd.f32 %v4025_v26, %v3867_v35  ;;  %v4381_v31 = vmax.f32 %v4365_v49, 0.0 }
 0x4f3   : > { %v4390_v16 = vpack.c.bf16 %v4381_v31, %v4380_v24  ;;  %v4326_v17 = vadd.f32 %v4307_v56, %v4044_v48 }
 0x4f5   : > { %4607 = vmatmul.bf16.gmra.mxu2 %v4390_v16  ;;  %v4346_v5 = vmul.f32 %v7897_v54, %v4326_v17 }
 0x4f7   : > { %v4366_v47 = vadd.f32 %v7903_v41, %v4346_v5  ;;  %v4483_v46 = vpop.f32.mrf.mxu1 }
 0x4f8   : > { %v4027_v51 = vpop.f32.mrf.mxu3 }
 0x4f9   : > { %v4045_v19 = vadd.f32 %v4027_v51, %v3868_v29  ;;  %v4309_v30 = vpop.f32.mrf.mxu0  ;;  %v4382_v15 = vmax.f32 %v4366_v47, 0.0 }
 0x4fb   : > { %v4327_v50 = vadd.f32 %v4309_v30, %v4045_v19 }
 0x4fd   : > { %v4347_v0 = vmul.f32 %v7897_v54, %v4327_v50 }
 0x4ff   : > { %v4367_v20 = vadd.f32 %v7903_v41, %v4347_v0  ;;  %v4486_v57 = vpop.f32.mrf.mxu1 }
 0x501   : > { %v4383_v3 = vmax.f32 %v4367_v20, 0.0 }
 0x503   : > { %v4391_v55 = vpack.c.bf16 %v4383_v3, %v4382_v15 }
 0x505   : > { %4612 = vmatmul.bf16.gmra.mxu2 %v4391_v55 }
 0x507   : > { %v4488_v12 = vpop.f32.mrf.mxu1 }
 0x50f   : > { %v4491_v38 = vpop.f32.mrf.mxu1 }
 0x517   : > { %v4493_v39 = vpop.f32.mrf.mxu1 }
 0x518   : > { %v4578_v43 = vpop.f32.mrf.mxu2 }
 0x519   : > { %v4579_v28 = vadd.f32 %v4578_v43, %v4481_v2 }
 0x51b   : > { %4618 = vst [vmem:[%s6749_s6] sm:$0xff] %v4579_v28 }
 0x51f   : > { %v4496_v4 = vpop.f32.mrf.mxu1 }
 0x520   : > { %v4580_v1 = vpop.f32.mrf.mxu2 }
 0x521   : > { %v4581_v54 = vadd.f32 %v4580_v1, %v4483_v46 }
 0x523   : > { %4619 = vst [vmem:[%s6749_s6 + $0x8] sm:$0xff] %v4581_v54 }
 0x527   : > { %v4498_v32 = vpop.f32.mrf.mxu1 }
 0x528   : > { %v4583_v42 = vpop.f32.mrf.mxu2 }
 0x529   : > { %v4584_v41 = vadd.f32 %v4583_v42, %v4486_v57 }
 0x52b   : > { %4620 = vst [vmem:[%s6749_s6 + $0x10] sm:$0xff] %v4584_v41 }
 0x52f   : > { %v4501_v13 = vpop.f32.mrf.mxu1 }
 0x530   : > { %v4585_v61 = vpop.f32.mrf.mxu2 }
 0x531   : > { %v4586_v18 = vadd.f32 %v4585_v61, %v4488_v12 }
 0x533   : > { %4621 = vst [vmem:[%s6749_s6 + $0x18] sm:$0xff] %v4586_v18 }
 0x537   : > { %v4503_v36 = vpop.f32.mrf.mxu1 }
 0x538   : > { %v4588_v37 = vpop.f32.mrf.mxu2 }
 0x539   : > { %v4589_v8 = vadd.f32 %v4588_v37, %v4491_v38 }
 0x53b   : > { %4622 = vst [vmem:[%s6749_s6 + $0x20] sm:$0xff] %v4589_v8 }
 0x53f   : > { %v4506_v11 = vpop.f32.mrf.mxu1 }
 0x540   : > { %v4590_v27 = vpop.f32.mrf.mxu2 }
 0x541   : > { %v4591_v22 = vadd.f32 %v4590_v27, %v4493_v39 }
 0x543   : > { %4623 = vst [vmem:[%s6749_s6 + $0x28] sm:$0xff] %v4591_v22 }
 0x547   : > { %v4508_v52 = vpop.f32.mrf.mxu1 }
 0x548   : > { %v4593_v6 = vpop.f32.mrf.mxu2 }
 0x549   : > { %v4594_v21 = vadd.f32 %v4593_v6, %v4496_v4 }
 0x54b   : > { %4624 = vst [vmem:[%s6749_s6 + $0x30] sm:$0xff] %v4594_v21 }
 0x54f   : > { %v4511_v62 = vpop.f32.mrf.mxu1 }
 0x550   : > { %v4595_v53 = vpop.f32.mrf.mxu2 }
 0x551   : > { %v4596_v23 = vadd.f32 %v4595_v53, %v4498_v32 }
 0x553   : > { %4625 = vst [vmem:[%s6749_s6 + $0x38] sm:$0xff] %v4596_v23 }
 0x557   : > { %v4513_v40 = vpop.f32.mrf.mxu1 }
 0x558   : > { %v4598_v58 = vpop.f32.mrf.mxu2 }
 0x559   : > { %v4599_v9 = vadd.f32 %v4598_v58, %v4501_v13 }
 0x55b   : > { %4626 = vst [vmem:[%s6749_s6 + $0x40] sm:$0xff] %v4599_v9 }
 0x55f   : > { %v4516_v49 = vpop.f32.mrf.mxu1 }
 0x560   : > { %v4600_v44 = vpop.f32.mrf.mxu2 }
 0x561   : > { %v4601_v60 = vadd.f32 %v4600_v44, %v4503_v36 }
 0x563   : > { %4627 = vst [vmem:[%s6749_s6 + $0x48] sm:$0xff] %v4601_v60 }
 0x567   : > { %v4518_v48 = vpop.f32.mrf.mxu1 }
 0x568   : > { %v4603_v7 = vpop.f32.mrf.mxu2 }
 0x569   : > { %v4604_v25 = vadd.f32 %v4603_v7, %v4506_v11 }
 0x56b   : > { %4628 = vst [vmem:[%s6749_s6 + $0x50] sm:$0xff] %v4604_v25 }
 0x570   : > { %v4605_v59 = vpop.f32.mrf.mxu2 }
 0x571   : > { %v4606_v34 = vadd.f32 %v4605_v59, %v4508_v52 }
 0x573   : > { %4629 = vst [vmem:[%s6749_s6 + $0x58] sm:$0xff] %v4606_v34 }
 0x578   : > { %v4608_v33 = vpop.f32.mrf.mxu2 }
 0x579   : > { %v4609_v45 = vadd.f32 %v4608_v33, %v4511_v62 }
 0x57b   : > { %4630 = vst [vmem:[%s6749_s6 + $0x60] sm:$0xff] %v4609_v45 }
 0x580   : > { %v4610_v35 = vpop.f32.mrf.mxu2 }
 0x581   : > { %v4611_v10 = vadd.f32 %v4610_v35, %v4513_v40 }
 0x583   : > { %4631 = vst [vmem:[%s6749_s6 + $0x68] sm:$0xff] %v4611_v10 }
 0x588   : > { %v4613_v56 = vpop.f32.mrf.mxu2 }
 0x589   : > { %v4614_v26 = vadd.f32 %v4613_v56, %v4516_v49 }
 0x58b   : > { %4632 = vst [vmem:[%s6749_s6 + $0x70] sm:$0xff] %v4614_v26 }
 0x590   : > { %v4615_v24 = vpop.f32.mrf.mxu2 }
 0x591   : > { %v4616_v31 = vadd.f32 %v4615_v24, %v4518_v48 }
 0x593   : > { %4633 = vst [vmem:[%s6749_s6 + $0x78] sm:$0xff] %v4616_v31 }
 0x594   : > { %6109 = shalt.err (!%p6106_p2)
}
 0x595   : > { %s6258_s11 = smov 128   ;;  %s6259_s6 = smov 8  }
 0x596   : > { %5701 = dma.vmem_to_hbm [thread:$0]  (%p6535_p8), %s4650_s26, 2048, %s4652_s8, %s4635_s3, %s6258_s11, %s6258_s11, %s6259_s6  }
 0x597 PF: > { %s8402_s10 = sld [smem:[#allocation26_spill]]  ;;  %p5739_p7 = scmp.ge.s32.totalorder %s6244_s21, 2 }
 0x599   : > { %p5727_p1 = pnand %p5739_p7, %p6540_p12 }
 0x59b   : > { %p5728_p3 = pneg %p5727_p1 }
 0x59d   : > { %s4666_s14 = sand.u32 1, %s8402_s10  }
 0x59e   : > { %s4667_s9 = scalar_lea.sflag [#allocation5], %s4666_s14 }
 0x59f   : > { %6187 = dma.done.wait (%p5728_p3), %s4667_s9, 2048  }
 0x5a0   : > { %6189 = vsyncadd (%p5728_p3), %s4667_s9, 4294965248  ;;  %s34_s21 = sadd.s32 1, %s6244_s21   ;;  %s8404_s25 = sld [smem:[#allocation23_spill]] }
 0x5a1   : > { %p7995_p0 = scmp.ge.s32.totalorder %s34_s21, 6   ;;  %s8405_s26 = sld [smem:[#allocation24_spill]] }
 0x5a2   : > { %s8406_s28 = sld [smem:[#allocation25_spill]]  ;;  %s8411_s27 = smov %s6560_s13 }
 0x5a3   : > { %s8407_s4 = sld [smem:[#allocation35_spill]]  ;;  %s8412_s29 = smov %s6212_s30 }
 0x5a4   : > { %s8408_s18 = sld [smem:[#allocation29_spill]]  ;;  %s8414_s14 = smov %s6220_s15 }
 0x5a5   : > { %s8409_s20 = sld [smem:[#allocation32_spill]]  ;;  %s8415_s15 = smov %s6224_s16 }
 0x5a6   : > { %s8410_s7 = sld [smem:[#allocation33_spill]]  ;;  %s8416_s16 = smov %s6527_s23 }
 0x5a7   : > { %s8417_s17 = smov %s6236_s19 }
 0x5a8   :  { %33 = sbr.rel (!%p7995_p0) target bundleno = 29 (0x1d), region = 173 }
 0x5a9   : > { %s8413_s30 = smov %s8407_s4 }
 0x5ab   : > { %s8418_s19 = smov %s8409_s20 }
 0x5ac   : > { %s8419_s20 = smov %s8410_s7 }
 0x5ad   :  { %4673 = vsyncpa [#allocation4], 1 }
 0x5ae   :  { %4675 = vsyncpa [#allocation4 + $0x1], 1 }
 0x5af   :  { %4676 = vsyncpa [#allocation7], 1 }
 0x5b0   :  { %4678 = vsyncpa [#allocation7 + $0x1], 1 }
 0x5b1   :  { %4679 = vsyncpa [#allocation10], 1 }
 0x5b2   :  { %4680 = vsyncpa [#allocation13], 1 }
 0x5b3   :  { %4681 = vsyncpa [#allocation5], 1 }
 0x5b4   :  { %4683 = vsyncpa [#allocation5 + $0x1], 1 }

</bundles_post_ra>
